<compile_context>
chip_gen: v6e
topology: v6e:2x2x1
jax: 0.10.0
libtpu: 0.0.40
codegen_flags: <defaults>
</compile_context>

<pallas_src>
import functools
import math
from collections import namedtuple

import jax
import jax.numpy as jnp
import numpy as np
from jax import lax
from jax.experimental import pallas as pl
from jax.experimental.pallas import tpu as pltpu

LossBreakdown = namedtuple(
    "LossBreakdown", ["per_sample_entropy", "batch_entropy", "commitment"]
)

# Hyper-parameters fixed by SimpleReconstructor.__init__ / LFQ defaults
INV_TEMPERATURE = 100.0
ENTROPY_LOSS_WEIGHT = 0.01
COMMITMENT_LOSS_WEIGHT = 1.0
DIVERSITY_GAMMA = 1.0
EPS_NORM = 1e-12
EPS_LOG = 1e-20

# Per-step footprint here is tiny (<2 MiB); keep the cap safe for v7x's 64 MiB.
VMEM_LIMIT_BYTES = 48 * 1024 * 1024


# --------------------------------------------------------------------------
# Fused kernel:
#   gather (manual HBM->VMEM row DMAs) -> project_in -> l2norm -> sign quantize
#   -> indices -> entropy partials -> commitment partial -> folded projection
# --------------------------------------------------------------------------
def _fused_kernel(tok_sref, emb_hbm,
                  w_in_ref, b_in_ref, bitw_ref, cb_t_ref, w_fold_ref, b_fold_ref,
                  logits_ref, idx_ref, prob_part_ref, ent_part_ref, cmt_part_ref,
                  emb_buf, copy_sem):
    i = pl.program_id(0)
    tm, H = emb_buf.shape
    CD = w_in_ref.shape[1]
    CS = cb_t_ref.shape[1]
    base = i * tm

    # ---- fused embedding gather: tm row DMAs (512B each at H=128) ----------
    # All copies share one DMA semaphore (identical sizes), issue-all then
    # wait-all so the row fetches overlap each other.
    # TODO(synk): could double-buffer emb_buf across grid steps to hide the
    #             gather latency behind the previous tile's compute.
    @pl.loop(0, tm)
    def _issue(r):
        tok = tok_sref[base + r]
        pltpu.make_async_copy(emb_hbm.at[pl.ds(tok, 1)],
                              emb_buf.at[pl.ds(r, 1)],
                              copy_sem.at[0]).start()

    @pl.loop(0, tm)
    def _wait(r):
        pltpu.make_async_copy(emb_hbm.at[pl.ds(0, 1)],
                              emb_buf.at[pl.ds(r, 1)],
                              copy_sem.at[0]).wait()

    emb = emb_buf[...]                                                     # (tm, H) f32

    # project_in (f32, HIGHEST) so sign quantization / indices match the f32 ref
    z = jnp.dot(emb, w_in_ref[...], preferred_element_type=jnp.float32,
                precision=lax.Precision.HIGHEST) + b_in_ref[...]           # (tm, CD)

    # spherical l2norm via rsqrt (EUP)
    ss = jnp.sum(z * z, axis=-1, keepdims=True)
    zn = z * lax.rsqrt(jnp.maximum(ss, jnp.float32(EPS_NORM * EPS_NORM)))

    pos = zn > 0
    quant = jnp.where(pos, jnp.float32(1.0), jnp.float32(-1.0))
    # l2norm(quantized) == quantized / sqrt(CD) exactly (entries are +-1)
    qn = quant * jnp.float32(1.0 / math.sqrt(CD))

    # indices: int32 bit-pack, written lane-dense as a (1, 1, tm) tile
    idx_col = jnp.sum(pos.astype(jnp.int32) * bitw_ref[...],
                      axis=-1, keepdims=True)                              # (tm, 1)
    idx_ref[...] = idx_col.T.reshape(1, 1, tm)

    # entropy aux terms: softmax(2 * inv_temp * <zn, code>)
    sim = jnp.dot(zn, cb_t_ref[...], preferred_element_type=jnp.float32,
                  precision=lax.Precision.HIGHEST)                         # (tm, CS)
    lq = (2.0 * INV_TEMPERATURE) * sim
    lq = lq - jnp.max(lq, axis=-1, keepdims=True)
    e = jnp.exp(lq)
    zsum = jnp.sum(e, axis=-1, keepdims=True)                              # (tm, 1)
    prob = e * pl.reciprocal(zsum, approx=True)                            # (tm, CS)
    # analytic per-row entropy: H = log(Z) - sum(p * lq)
    row_ent = jnp.log(zsum) - jnp.sum(prob * lq, axis=-1, keepdims=True)   # (tm, 1)

    d = zn - qn
    # per-tile partial sums (reduced in the wrapper) -> grid axis stays parallel
    prob_part_ref[...] = jnp.sum(prob, axis=0, keepdims=True).reshape(1, 1, CS)
    ent_part_ref[...] = jnp.sum(row_ent, axis=0, keepdims=True).reshape(1, 1, 1)
    cmt_part_ref[...] = jnp.sum(jnp.sum(d * d, axis=-1, keepdims=True),
                                axis=0, keepdims=True).reshape(1, 1, 1)

    # folded projection: logits = qn @ (w_out @ w_o) + (b_out @ w_o + b_o)
    logits = jnp.dot(qn, w_fold_ref[...], preferred_element_type=jnp.float32,
                     precision=lax.Precision.HIGHEST) + b_fold_ref[...]    # (tm, V)
    logits_ref[...] = logits.astype(logits_ref.dtype)


def _pick_tile(dim, candidates):
    for c in candidates:
        if dim % c == 0:
            return c
    return dim


def simple_reconstructor_forward(tokens, params, *, tm=None):
    B, N = tokens.shape
    M = B * N
    embed = params["embed"]
    H = embed.shape[1]
    w_in, b_in = params["w_in"], params["b_in"]
    bitw, cb_t = params["bit_weights"], params["cb_t"]
    w_fold, b_fold = params["w_fold"], params["b_fold"]
    CD = w_in.shape[1]
    CS = cb_t.shape[1]
    V_out = w_fold.shape[1]

    if tm is None:
        tm = _pick_tile(M, (256, 128, 64, 32, 16, 8))
    assert M % tm == 0, "demo shapes must divide the row tile"
    grid_m = M // tm

    tok_flat = tokens.reshape(M).astype(jnp.int32)

    flops = 2 * M * (H * CD + CD * CS + CD * V_out)
    bytes_accessed = (M * H * 4 + M * V_out * 4 + M * 8
                      + (H * CD + CD * CS + CD * V_out + V_out + 2 * CD) * 4)

    logits_flat, idx_tiles, prob_part, ent_part, cmt_part = pl.pallas_call(
        _fused_kernel,
        grid_spec=pltpu.PrefetchScalarGridSpec(
            num_scalar_prefetch=1,                      # token ids -> SMEM
            grid=(grid_m,),
            in_specs=[
                pl.BlockSpec(memory_space=pl.ANY),                  # embed (HBM)
                pl.BlockSpec((H, CD), lambda i, tok: (0, 0)),       # w_in (resident)
                pl.BlockSpec((1, CD), lambda i, tok: (0, 0)),       # b_in
                pl.BlockSpec((1, CD), lambda i, tok: (0, 0)),       # bit weights
                pl.BlockSpec((CD, CS), lambda i, tok: (0, 0)),      # codebook^T
                pl.BlockSpec((CD, V_out), lambda i, tok: (0, 0)),   # folded weight
                pl.BlockSpec((1, V_out), lambda i, tok: (0, 0)),    # folded bias
            ],
            out_specs=[
                pl.BlockSpec((tm, V_out), lambda i, tok: (i, 0)),     # logits
                pl.BlockSpec((1, 1, tm), lambda i, tok: (i, 0, 0)),   # indices (lane-dense)
                pl.BlockSpec((1, 1, CS), lambda i, tok: (i, 0, 0)),   # prob partial
                pl.BlockSpec((1, 1, 1), lambda i, tok: (i, 0, 0)),    # entropy partial
                pl.BlockSpec((1, 1, 1), lambda i, tok: (i, 0, 0)),    # commitment partial
            ],
            scratch_shapes=[
                pltpu.VMEM((tm, H), jnp.float32),       # gathered embedding rows
                pltpu.SemaphoreType.DMA((1,)),          # shared gather semaphore
            ],
        ),
        out_shape=(
            jax.ShapeDtypeStruct((M, V_out), jnp.float32),
            jax.ShapeDtypeStruct((grid_m, 1, tm), jnp.int32),
            jax.ShapeDtypeStruct((grid_m, 1, CS), jnp.float32),
            jax.ShapeDtypeStruct((grid_m, 1, 1), jnp.float32),
            jax.ShapeDtypeStruct((grid_m, 1, 1), jnp.float32),
        ),
        compiler_params=pltpu.CompilerParams(
            dimension_semantics=("parallel",),          # megacore-shardable on v7x
            vmem_limit_bytes=VMEM_LIMIT_BYTES,
        ),
        cost_estimate=pl.CostEstimate(
            flops=flops, transcendentals=M * (CS + 4), bytes_accessed=bytes_accessed),
    )(tok_flat, embed, w_in, b_in, bitw, cb_t, w_fold, b_fold)

    # Tiny cross-tile reductions (O(grid_m * CS) scalars) done in plain XLA.
    per_sample = jnp.sum(ent_part) / M
    commitment = jnp.sum(cmt_part) / (M * CD)
    avg_prob = jnp.sum(prob_part[:, 0, :], axis=0) / M
    batch_entropy = -jnp.sum(avg_prob * jnp.log(jnp.maximum(avg_prob, EPS_LOG)))
    aux = commitment - DIVERSITY_GAMMA * ENTROPY_LOSS_WEIGHT * batch_entropy

    logits = logits_flat.reshape(B, N, V_out)
    indices = idx_tiles.reshape(B, N)
    return logits, indices, aux, LossBreakdown(per_sample, batch_entropy, commitment)


# --------------------------------------------------------------------------
# Parameters / reference
# --------------------------------------------------------------------------
def init_params(key, extern_vocab_size, hidden_size, idea_token_vocab_size):
    CS = idea_token_vocab_size
    CD = int(math.log2(CS))
    ks = jax.random.split(key, 6)
    f32 = jnp.float32
    embed = jax.random.normal(ks[0], (extern_vocab_size, hidden_size), f32)
    w_in = jax.random.normal(ks[1], (hidden_size, CD), f32) / math.sqrt(hidden_size)
    b_in = 0.01 * jax.random.normal(ks[2], (1, CD), f32)
    w_out = jax.random.normal(ks[3], (CD, hidden_size), f32) / math.sqrt(CD)
    b_out = jnp.zeros((1, hidden_size), f32)
    w_o = jax.random.normal(ks[4], (hidden_size, extern_vocab_size), f32) / math.sqrt(hidden_size)
    b_o = 0.01 * jax.random.normal(ks[5], (1, extern_vocab_size), f32)

    # LFQ codebook buffer: code c -> bits of c mapped to {-1,+1}; spherical -> l2norm
    codes = np.arange(CS)
    bit_mask = 2 ** np.arange(CD - 1, -1, -1)
    bits = ((codes[:, None] & bit_mask) != 0).astype(np.float32)
    codebook = bits * 2.0 - 1.0                                       # (CS, CD)
    codebook = codebook / np.linalg.norm(codebook, axis=-1, keepdims=True)
    cb_t = jnp.asarray(codebook.T, f32)                               # (CD, CS)
    bit_weights = jnp.asarray(bit_mask[None, :], jnp.int32)           # (1, CD) int32

    # Folded projection precomputed ONCE (hoisted out of the forward path):
    #   logits = (qn @ w_out + b_out) @ w_o + b_o = qn @ w_fold + b_fold
    w_fold = jnp.dot(w_out, w_o, precision=lax.Precision.HIGHEST)     # (CD, V)
    b_fold = jnp.dot(b_out, w_o, precision=lax.Precision.HIGHEST) + b_o

    return dict(embed=embed, w_in=w_in, b_in=b_in, bit_weights=bit_weights,
                cb_t=cb_t, w_out=w_out, b_out=b_out, w_o=w_o, b_o=b_o,
                w_fold=w_fold, b_fold=b_fold)


def reference_forward(tokens, params):
    """Pure-JAX f32 reference mirroring the PyTorch LFQ forward (training-mode values)."""
    hi = lax.Precision.HIGHEST
    emb = params["embed"][tokens]                                      # (B, N, H)
    z = jnp.dot(emb, params["w_in"], precision=hi) + params["b_in"][0]
    zn = z / jnp.maximum(jnp.linalg.norm(z, axis=-1, keepdims=True), EPS_NORM)
    quant = jnp.where(zn > 0, 1.0, -1.0)
    qn = quant / jnp.maximum(jnp.linalg.norm(quant, axis=-1, keepdims=True), EPS_NORM)
    bitw = params["bit_weights"][0]
    indices = jnp.sum((zn > 0).astype(jnp.int32) * bitw, axis=-1)
    prob = jax.nn.softmax(
        2.0 * INV_TEMPERATURE * jnp.dot(zn, params["cb_t"], precision=hi), axis=-1)
    ent = lambda p: -jnp.sum(p * jnp.log(jnp.maximum(p, EPS_LOG)), axis=-1)
    per_sample = jnp.mean(ent(prob))
    avg_prob = jnp.mean(prob.reshape(-1, prob.shape[-1]), axis=0)
    batch_ent = ent(avg_prob)
    commit = jnp.mean((zn - qn) ** 2)
    aux = commit - DIVERSITY_GAMMA * batch_ent * ENTROPY_LOSS_WEIGHT
    y = jnp.dot(qn, params["w_out"], precision=hi) + params["b_out"][0]
    logits = jnp.dot(y, params["w_o"], precision=hi) + params["b_o"][0]
    return logits, indices, aux, LossBreakdown(per_sample, batch_ent, commit)


if __name__ == "__main__":
    # Small shapes: batch=4, seq=64, hidden=128 (module default), extern_vocab=256,
    # codebook_size=16.  tm=128 gives two grid steps (exercises multi-tile partial
    # reduction) with lane-dense (128-wide) index and 256-wide logits tiles.
    B, N = 4, 64
    EXTERN_VOCAB, HIDDEN, IDEA_VOCAB = 256, 128, 16

    key = jax.random.PRNGKey(0)
    k_tok, k_par = jax.random.split(key)
    params = init_params(k_par, EXTERN_VOCAB, HIDDEN, IDEA_VOCAB)
    tokens = jax.random.randint(k_tok, (B, N), 0, EXTERN_VOCAB, dtype=jnp.int32)

    logits, indices, aux_loss, breakdown = simple_reconstructor_forward(
        tokens, params, tm=128)
    jax.block_until_ready((logits, indices, aux_loss, breakdown))

    # sanity-check against the pure-JAX f32 reference
    r_logits, r_idx, r_aux, r_bd = reference_forward(tokens, params)
    assert logits.shape == (B, N, EXTERN_VOCAB) and indices.shape == (B, N)
    np.testing.assert_allclose(np.asarray(logits), np.asarray(r_logits), rtol=2e-2, atol=2e-2)
    np.testing.assert_array_equal(np.asarray(indices), np.asarray(r_idx))
    np.testing.assert_allclose(float(aux_loss), float(r_aux), rtol=2e-2, atol=2e-2)
    np.testing.assert_allclose(float(breakdown.commitment), float(r_bd.commitment),
                               rtol=2e-2, atol=2e-2)
    np.testing.assert_allclose(float(breakdown.batch_entropy), float(r_bd.batch_entropy),
                               rtol=2e-2, atol=2e-2)
    np.testing.assert_allclose(float(breakdown.per_sample_entropy),
                               float(r_bd.per_sample_entropy), rtol=2e-2, atol=2e-2)

    print("KERNEL_OK")
</pallas_src>

<mosaic_0001>
module attributes {stable_mosaic.version = 11 : i64} {
  func.func @_fused_kernel(%arg0: i32, %arg1: memref<256xi32, #tpu.memory_space<smem>>, %arg2: memref<256x128xf32, #tpu.memory_space<any>>, %arg3: memref<128x4xf32, #tpu.memory_space<vmem>>, %arg4: memref<1x4xf32, #tpu.memory_space<vmem>>, %arg5: memref<1x4xi32, #tpu.memory_space<vmem>>, %arg6: memref<4x16xf32, #tpu.memory_space<vmem>>, %arg7: memref<4x256xf32, #tpu.memory_space<vmem>>, %arg8: memref<1x256xf32, #tpu.memory_space<vmem>>, %arg9: memref<128x256xf32, #tpu.memory_space<vmem>>, %arg10: memref<1x1x128xi32, #tpu.memory_space<vmem>>, %arg11: memref<1x1x16xf32, #tpu.memory_space<vmem>>, %arg12: memref<1x1x1xf32, #tpu.memory_space<vmem>>, %arg13: memref<1x1x1xf32, #tpu.memory_space<vmem>>, %arg14: memref<128x128xf32, #tpu.memory_space<vmem>>, %arg15: memref<1x!tpu.dma_semaphore, #tpu.memory_space<semaphore_mem>>) attributes {dimension_semantics = [#tpu.dimension_semantics<parallel>], iteration_bounds = array<i64: 2>, scalar_prefetch = 1 : i64, scratch_operands = 2 : i64, tpu.core_type = #tpu.core_type<tc>, window_params = [{}, {pipeline_mode = #tpu.pipeline_mode<synchronous>, transform_indices = @transform_1, window_bounds = array<i64: 128, 4>}, {pipeline_mode = #tpu.pipeline_mode<synchronous>, transform_indices = @transform_2, window_bounds = array<i64: 1, 4>}, {pipeline_mode = #tpu.pipeline_mode<synchronous>, transform_indices = @transform_3, window_bounds = array<i64: 1, 4>}, {pipeline_mode = #tpu.pipeline_mode<synchronous>, transform_indices = @transform_4, window_bounds = array<i64: 4, 16>}, {pipeline_mode = #tpu.pipeline_mode<synchronous>, transform_indices = @transform_5, window_bounds = array<i64: 4, 256>}, {pipeline_mode = #tpu.pipeline_mode<synchronous>, transform_indices = @transform_6, window_bounds = array<i64: 1, 256>}, {transform_indices = @transform_7, window_bounds = array<i64: 128, 256>}, {transform_indices = @transform_8, window_bounds = array<i64: 1, 1, 128>}, {transform_indices = @transform_9, window_bounds = array<i64: 1, 1, 16>}, {transform_indices = @transform_10, window_bounds = array<i64: 1, 1, 1>}, {transform_indices = @transform_11, window_bounds = array<i64: 1, 1, 1>}]} {
    %c128_i32 = arith.constant 128 : i32
    %0 = arith.muli %arg0, %c128_i32 : i32
    %c0_i32 = arith.constant 0 : i32
    %c128_i32_0 = arith.constant 128 : i32
    %1 = arith.addi %c0_i32, %c128_i32_0 : i32
    %c1_i32 = arith.constant 1 : i32
    scf.for %arg16 = %c0_i32 to %1 step %c1_i32  : i32 {
      %c1_i32_50 = arith.constant 1 : i32
      %74 = arith.muli %arg16, %c1_i32_50 : i32
      %c0_i32_51 = arith.constant 0 : i32
      %75 = arith.addi %c0_i32_51, %74 : i32
      %76 = arith.addi %0, %75 : i32
      %77 = arith.index_cast %76 : i32 to index
      %78 = memref.load %arg1[%77] : memref<256xi32, #tpu.memory_space<smem>>
      %c0_i32_52 = arith.constant 0 : i32
      %c0_i32_53 = arith.constant 0 : i32
      %79 = tpu.memref_slice %arg2[%78, %c0_i32_53] : memref<256x128xf32, #tpu.memory_space<any>> -> memref<1x128xf32, #tpu.memory_space<any>>
      %c0_i32_54 = arith.constant 0 : i32
      %80 = tpu.memref_slice %arg14[%75, %c0_i32_54] : memref<128x128xf32, #tpu.memory_space<vmem>> -> memref<1x128xf32, #tpu.memory_space<vmem>>
      %81 = tpu.memref_slice %arg15[%c0_i32_52] : memref<1x!tpu.dma_semaphore, #tpu.memory_space<semaphore_mem>> -> memref<1x!tpu.dma_semaphore, #tpu.memory_space<semaphore_mem>>
      %82 = tpu.memref_squeeze %81 : memref<1x!tpu.dma_semaphore, #tpu.memory_space<semaphore_mem>> -> memref<!tpu.dma_semaphore, #tpu.memory_space<semaphore_mem>>
      tpu.enqueue_dma source(%79 : memref<1x128xf32, #tpu.memory_space<any>>) target(%80 : memref<1x128xf32, #tpu.memory_space<vmem>>) target_semaphore(%82 : memref<!tpu.dma_semaphore, #tpu.memory_space<semaphore_mem>>)
    }
    %c128_i32_1 = arith.constant 128 : i32
    %c0_i32_2 = arith.constant 0 : i32
    %c128_i32_3 = arith.constant 128 : i32
    %2 = arith.addi %c0_i32_2, %c128_i32_3 : i32
    %c1_i32_4 = arith.constant 1 : i32
    scf.for %arg16 = %c0_i32_2 to %2 step %c1_i32_4  : i32 {
      %c1_i32_50 = arith.constant 1 : i32
      %74 = arith.muli %arg16, %c1_i32_50 : i32
      %c0_i32_51 = arith.constant 0 : i32
      %75 = arith.addi %c0_i32_51, %74 : i32
      %c0_i32_52 = arith.constant 0 : i32
      %c0_i32_53 = arith.constant 0 : i32
      %c0_i32_54 = arith.constant 0 : i32
      %76 = tpu.memref_slice %arg2[%c0_i32_53, %c0_i32_54] : memref<256x128xf32, #tpu.memory_space<any>> -> memref<1x128xf32, #tpu.memory_space<any>>
      %c0_i32_55 = arith.constant 0 : i32
      %77 = tpu.memref_slice %arg14[%75, %c0_i32_55] : memref<128x128xf32, #tpu.memory_space<vmem>> -> memref<1x128xf32, #tpu.memory_space<vmem>>
      %78 = tpu.memref_slice %arg15[%c0_i32_52] : memref<1x!tpu.dma_semaphore, #tpu.memory_space<semaphore_mem>> -> memref<1x!tpu.dma_semaphore, #tpu.memory_space<semaphore_mem>>
      %79 = tpu.memref_squeeze %78 : memref<1x!tpu.dma_semaphore, #tpu.memory_space<semaphore_mem>> -> memref<!tpu.dma_semaphore, #tpu.memory_space<semaphore_mem>>
      tpu.wait_dma2 semaphore(%79 : memref<!tpu.dma_semaphore, #tpu.memory_space<semaphore_mem>>) src(%76 : memref<1x128xf32, #tpu.memory_space<any>>) dst(%77 : memref<1x128xf32, #tpu.memory_space<vmem>>)
    }
    %c128_i32_5 = arith.constant 128 : i32
    %c0 = arith.constant 0 : index
    %c0_6 = arith.constant 0 : index
    %3 = vector.load %arg14[%c0, %c0_6] : memref<128x128xf32, #tpu.memory_space<vmem>>, vector<128x128xf32>
    %c0_7 = arith.constant 0 : index
    %c0_8 = arith.constant 0 : index
    %4 = vector.load %arg3[%c0_7, %c0_8] : memref<128x4xf32, #tpu.memory_space<vmem>>, vector<128x4xf32>
    %cst = arith.constant dense<0.000000e+00> : vector<128x4xf32>
    %5 = tpu.matmul %3, %4, %cst {dimension_numbers = #tpu.dot_dimension_numbers<[1], [0], [0], [1], [0, 0, 1, 1], [], []>, precision = #tpu.contract_precision<fp32>} : vector<128x128xf32>, vector<128x4xf32>, vector<128x4xf32> -> vector<128x4xf32>
    %c0_9 = arith.constant 0 : index
    %c0_10 = arith.constant 0 : index
    %6 = vector.load %arg4[%c0_9, %c0_10] : memref<1x4xf32, #tpu.memory_space<vmem>>, vector<1x4xf32>
    %7 = vector.broadcast %6 : vector<1x4xf32> to vector<128x4xf32>
    %8 = arith.addf %5, %7 : vector<128x4xf32>
    %9 = arith.mulf %8, %8 : vector<128x4xf32>
    %cst_11 = arith.constant dense<0.000000e+00> : vector<128xf32>
    %10 = vector.multi_reduction <add>, %9, %cst_11 [1] : vector<128x4xf32> to vector<128xf32>
    %11 = vector.shape_cast %10 : vector<128xf32> to vector<128x1xf32>
    %cst_12 = arith.constant 1.000000e-24 : f32
    %12 = vector.broadcast %cst_12 : f32 to vector<128x1xf32>
    %13 = arith.maximumf %11, %12 : vector<128x1xf32>
    %14 = math.rsqrt %13 : vector<128x1xf32>
    %15 = vector.broadcast %14 : vector<128x1xf32> to vector<128x4xf32>
    %16 = arith.mulf %8, %15 : vector<128x4xf32>
    %cst_13 = arith.constant 0.000000e+00 : f32
    %17 = vector.broadcast %cst_13 : f32 to vector<128x4xf32>
    %18 = arith.cmpf ogt, %16, %17 : vector<128x4xf32>
    %cst_14 = arith.constant 1.000000e+00 : f32
    %cst_15 = arith.constant -1.000000e+00 : f32
    %19 = vector.broadcast %cst_14 : f32 to vector<128x4xf32>
    %20 = vector.broadcast %cst_15 : f32 to vector<128x4xf32>
    %21 = arith.select %18, %19, %20 : vector<128x4xi1>, vector<128x4xf32>
    %cst_16 = arith.constant 5.000000e-01 : f32
    %22 = vector.broadcast %cst_16 : f32 to vector<128x4xf32>
    %23 = arith.mulf %21, %22 : vector<128x4xf32>
    %24 = arith.extui %18 : vector<128x4xi1> to vector<128x4xi32>
    %c0_17 = arith.constant 0 : index
    %c0_18 = arith.constant 0 : index
    %25 = vector.load %arg5[%c0_17, %c0_18] : memref<1x4xi32, #tpu.memory_space<vmem>>, vector<1x4xi32>
    %26 = vector.broadcast %25 : vector<1x4xi32> to vector<128x4xi32>
    %27 = arith.muli %24, %26 : vector<128x4xi32>
    %cst_19 = arith.constant dense<0> : vector<128xi32>
    %28 = vector.multi_reduction <add>, %27, %cst_19 [1] : vector<128x4xi32> to vector<128xi32>
    %29 = vector.shape_cast %28 : vector<128xi32> to vector<128x1xi32>
    %30 = tpu.transpose %29, [1, 0] : vector<128x1xi32> -> vector<1x128xi32>
    %31 = vector.shape_cast %30 : vector<1x128xi32> to vector<1x1x128xi32>
    %c0_20 = arith.constant 0 : index
    %c0_21 = arith.constant 0 : index
    %c0_22 = arith.constant 0 : index
    %32 = vector.load %arg10[%c0_20, %c0_21, %c0_22] : memref<1x1x128xi32, #tpu.memory_space<vmem>>, vector<1x1x128xi32>
    tpu.vector_store %arg10[%c0_20, %c0_21, %c0_22], %31 {strides = array<i32>} : memref<1x1x128xi32, #tpu.memory_space<vmem>>, vector<1x1x128xi32>,
    %c0_23 = arith.constant 0 : index
    %c0_24 = arith.constant 0 : index
    %33 = vector.load %arg6[%c0_23, %c0_24] : memref<4x16xf32, #tpu.memory_space<vmem>>, vector<4x16xf32>
    %cst_25 = arith.constant dense<0.000000e+00> : vector<128x16xf32>
    %34 = tpu.matmul %16, %33, %cst_25 {dimension_numbers = #tpu.dot_dimension_numbers<[1], [0], [0], [1], [0, 0, 1, 1], [], []>, precision = #tpu.contract_precision<fp32>} : vector<128x4xf32>, vector<4x16xf32>, vector<128x16xf32> -> vector<128x16xf32>
    %cst_26 = arith.constant 2.000000e+02 : f32
    %35 = vector.broadcast %cst_26 : f32 to vector<128x16xf32>
    %36 = arith.mulf %35, %34 : vector<128x16xf32>
    %cst_27 = arith.constant dense<0xFF800000> : vector<128xf32>
    %37 = vector.multi_reduction <maximumf>, %36, %cst_27 [1] : vector<128x16xf32> to vector<128xf32>
    %38 = vector.shape_cast %37 : vector<128xf32> to vector<128x1xf32>
    %39 = vector.broadcast %38 : vector<128x1xf32> to vector<128x16xf32>
    %40 = arith.subf %36, %39 : vector<128x16xf32>
    %41 = math.exp %40 : vector<128x16xf32>
    %cst_28 = arith.constant dense<0.000000e+00> : vector<128xf32>
    %42 = vector.multi_reduction <add>, %41, %cst_28 [1] : vector<128x16xf32> to vector<128xf32>
    %43 = vector.shape_cast %42 : vector<128xf32> to vector<128x1xf32>
    %44 = tpu.reciprocal %43 {approx = true} : vector<128x1xf32> -> vector<128x1xf32>
    %45 = vector.broadcast %44 : vector<128x1xf32> to vector<128x16xf32>
    %46 = arith.mulf %41, %45 : vector<128x16xf32>
    %47 = math.log %43 : vector<128x1xf32>
    %48 = arith.mulf %46, %40 : vector<128x16xf32>
    %cst_29 = arith.constant dense<0.000000e+00> : vector<128xf32>
    %49 = vector.multi_reduction <add>, %48, %cst_29 [1] : vector<128x16xf32> to vector<128xf32>
    %50 = vector.shape_cast %49 : vector<128xf32> to vector<128x1xf32>
    %51 = arith.subf %47, %50 : vector<128x1xf32>
    %52 = arith.subf %16, %23 : vector<128x4xf32>
    %cst_30 = arith.constant dense<0.000000e+00> : vector<16xf32>
    %53 = vector.multi_reduction <add>, %46, %cst_30 [0] : vector<128x16xf32> to vector<16xf32>
    %54 = vector.shape_cast %53 : vector<16xf32> to vector<1x16xf32>
    %55 = vector.shape_cast %54 : vector<1x16xf32> to vector<1x1x16xf32>
    %c0_31 = arith.constant 0 : index
    %c0_32 = arith.constant 0 : index
    %c0_33 = arith.constant 0 : index
    %56 = vector.load %arg11[%c0_31, %c0_32, %c0_33] : memref<1x1x16xf32, #tpu.memory_space<vmem>>, vector<1x1x16xf32>
    tpu.vector_store %arg11[%c0_31, %c0_32, %c0_33], %55 {strides = array<i32>} : memref<1x1x16xf32, #tpu.memory_space<vmem>>, vector<1x1x16xf32>,
    %cst_34 = arith.constant dense<0.000000e+00> : vector<1xf32>
    %57 = vector.multi_reduction <add>, %51, %cst_34 [0] : vector<128x1xf32> to vector<1xf32>
    %58 = vector.shape_cast %57 : vector<1xf32> to vector<1x1xf32>
    %59 = vector.shape_cast %58 : vector<1x1xf32> to vector<1x1x1xf32>
    %c0_35 = arith.constant 0 : index
    %c0_36 = arith.constant 0 : index
    %c0_37 = arith.constant 0 : index
    %60 = vector.load %arg12[%c0_35, %c0_36, %c0_37] : memref<1x1x1xf32, #tpu.memory_space<vmem>>, vector<1x1x1xf32>
    tpu.vector_store %arg12[%c0_35, %c0_36, %c0_37], %59 {strides = array<i32>} : memref<1x1x1xf32, #tpu.memory_space<vmem>>, vector<1x1x1xf32>,
    %61 = arith.mulf %52, %52 : vector<128x4xf32>
    %cst_38 = arith.constant dense<0.000000e+00> : vector<128xf32>
    %62 = vector.multi_reduction <add>, %61, %cst_38 [1] : vector<128x4xf32> to vector<128xf32>
    %63 = vector.shape_cast %62 : vector<128xf32> to vector<128x1xf32>
    %cst_39 = arith.constant dense<0.000000e+00> : vector<1xf32>
    %64 = vector.multi_reduction <add>, %63, %cst_39 [0] : vector<128x1xf32> to vector<1xf32>
    %65 = vector.shape_cast %64 : vector<1xf32> to vector<1x1xf32>
    %66 = vector.shape_cast %65 : vector<1x1xf32> to vector<1x1x1xf32>
    %c0_40 = arith.constant 0 : index
    %c0_41 = arith.constant 0 : index
    %c0_42 = arith.constant 0 : index
    %67 = vector.load %arg13[%c0_40, %c0_41, %c0_42] : memref<1x1x1xf32, #tpu.memory_space<vmem>>, vector<1x1x1xf32>
    tpu.vector_store %arg13[%c0_40, %c0_41, %c0_42], %66 {strides = array<i32>} : memref<1x1x1xf32, #tpu.memory_space<vmem>>, vector<1x1x1xf32>,
    %c0_43 = arith.constant 0 : index
    %c0_44 = arith.constant 0 : index
    %68 = vector.load %arg7[%c0_43, %c0_44] : memref<4x256xf32, #tpu.memory_space<vmem>>, vector<4x256xf32>
    %cst_45 = arith.constant dense<0.000000e+00> : vector<128x256xf32>
    %69 = tpu.matmul %23, %68, %cst_45 {dimension_numbers = #tpu.dot_dimension_numbers<[1], [0], [0], [1], [0, 0, 1, 1], [], []>, precision = #tpu.contract_precision<fp32>} : vector<128x4xf32>, vector<4x256xf32>, vector<128x256xf32> -> vector<128x256xf32>
    %c0_46 = arith.constant 0 : index
    %c0_47 = arith.constant 0 : index
    %70 = vector.load %arg8[%c0_46, %c0_47] : memref<1x256xf32, #tpu.memory_space<vmem>>, vector<1x256xf32>
    %71 = vector.broadcast %70 : vector<1x256xf32> to vector<128x256xf32>
    %72 = arith.addf %69, %71 : vector<128x256xf32>
    %c0_48 = arith.constant 0 : index
    %c0_49 = arith.constant 0 : index
    %73 = vector.load %arg9[%c0_48, %c0_49] : memref<128x256xf32, #tpu.memory_space<vmem>>, vector<128x256xf32>
    tpu.vector_store %arg9[%c0_48, %c0_49], %72 {strides = array<i32>} : memref<128x256xf32, #tpu.memory_space<vmem>>, vector<128x256xf32>,
    return
  }
  func.func @transform_1(%arg0: i32, %arg1: memref<256xi32, #tpu.memory_space<smem>>) -> (i32, i32) {
    %c0_i32 = arith.constant 0 : i32
    %c0_i32_0 = arith.constant 0 : i32
    %c0_i32_1 = arith.constant 0 : i32
    return %c0_i32, %c0_i32_0 : i32, i32
  }
  func.func @transform_2(%arg0: i32, %arg1: memref<256xi32, #tpu.memory_space<smem>>) -> (i32, i32) {
    %c0_i32 = arith.constant 0 : i32
    %c0_i32_0 = arith.constant 0 : i32
    %c0_i32_1 = arith.constant 0 : i32
    return %c0_i32, %c0_i32_0 : i32, i32
  }
  func.func @transform_3(%arg0: i32, %arg1: memref<256xi32, #tpu.memory_space<smem>>) -> (i32, i32) {
    %c0_i32 = arith.constant 0 : i32
    %c0_i32_0 = arith.constant 0 : i32
    %c0_i32_1 = arith.constant 0 : i32
    return %c0_i32, %c0_i32_0 : i32, i32
  }
  func.func @transform_4(%arg0: i32, %arg1: memref<256xi32, #tpu.memory_space<smem>>) -> (i32, i32) {
    %c0_i32 = arith.constant 0 : i32
    %c0_i32_0 = arith.constant 0 : i32
    %c0_i32_1 = arith.constant 0 : i32
    return %c0_i32, %c0_i32_0 : i32, i32
  }
  func.func @transform_5(%arg0: i32, %arg1: memref<256xi32, #tpu.memory_space<smem>>) -> (i32, i32) {
    %c0_i32 = arith.constant 0 : i32
    %c0_i32_0 = arith.constant 0 : i32
    %c0_i32_1 = arith.constant 0 : i32
    return %c0_i32, %c0_i32_0 : i32, i32
  }
  func.func @transform_6(%arg0: i32, %arg1: memref<256xi32, #tpu.memory_space<smem>>) -> (i32, i32) {
    %c0_i32 = arith.constant 0 : i32
    %c0_i32_0 = arith.constant 0 : i32
    %c0_i32_1 = arith.constant 0 : i32
    return %c0_i32, %c0_i32_0 : i32, i32
  }
  func.func @transform_7(%arg0: i32, %arg1: memref<256xi32, #tpu.memory_space<smem>>) -> (i32, i32) {
    %c0_i32 = arith.constant 0 : i32
    %c0_i32_0 = arith.constant 0 : i32
    return %arg0, %c0_i32 : i32, i32
  }
  func.func @transform_8(%arg0: i32, %arg1: memref<256xi32, #tpu.memory_space<smem>>) -> (i32, i32, i32) {
    %c0_i32 = arith.constant 0 : i32
    %c0_i32_0 = arith.constant 0 : i32
    %c0_i32_1 = arith.constant 0 : i32
    return %arg0, %c0_i32, %c0_i32_0 : i32, i32, i32
  }
  func.func @transform_9(%arg0: i32, %arg1: memref<256xi32, #tpu.memory_space<smem>>) -> (i32, i32, i32) {
    %c0_i32 = arith.constant 0 : i32
    %c0_i32_0 = arith.constant 0 : i32
    %c0_i32_1 = arith.constant 0 : i32
    return %arg0, %c0_i32, %c0_i32_0 : i32, i32, i32
  }
  func.func @transform_10(%arg0: i32, %arg1: memref<256xi32, #tpu.memory_space<smem>>) -> (i32, i32, i32) {
    %c0_i32 = arith.constant 0 : i32
    %c0_i32_0 = arith.constant 0 : i32
    %c0_i32_1 = arith.constant 0 : i32
    return %arg0, %c0_i32, %c0_i32_0 : i32, i32, i32
  }
  func.func @transform_11(%arg0: i32, %arg1: memref<256xi32, #tpu.memory_space<smem>>) -> (i32, i32, i32) {
    %c0_i32 = arith.constant 0 : i32
    %c0_i32_0 = arith.constant 0 : i32
    %c0_i32_1 = arith.constant 0 : i32
    return %arg0, %c0_i32, %c0_i32_0 : i32, i32, i32
  }
}

</mosaic_0001>

<bundles_post_ra>
// kernel: tpu_custom_call.1
= control target key start
LH: loop header
LB: loop body
LE: loop exit
PB: predicated region body
PF: predicated region fallthrough
CT: control target
= control target key end

     0   :  { %s9642_s0 = inlined_call_operand.vmem [shape: s32[256], index: 0, kind: input, shape index: {}]   ;;  %s9643_s1 = inlined_call_operand.hbm [shape: f32[256,128], index: 1, kind: input, shape index: {}]   ;;  %s9644_s2 = inlined_call_operand.vmem [shape: f32[128,4], index: 2, kind: input, shape index: {}]   ;;  %s9645_s3 = inlined_call_operand.vmem [shape: f32[1,4], index: 3, kind: input, shape index: {}]   ;;  %s9646_s4 = inlined_call_operand.vmem [shape: s32[1,4], index: 4, kind: input, shape index: {}]   ;;  %s9647_s5 = inlined_call_operand.vmem [shape: f32[4,16], index: 5, kind: input, shape index: {}]   ;;  %s9648_s6 = inlined_call_operand.vmem [shape: f32[4,256], index: 6, kind: input, shape index: {}]   ;;  %s9649_s7 = inlined_call_operand.vmem [shape: f32[1,256], index: 7, kind: input, shape index: {}]   ;;  %s9650_s8 = inlined_call_operand.hbm [shape: f32[256,256], index: 8, kind: output, shape index: {0}]   ;;  %s9651_s9 = inlined_call_operand.hbm [shape: s32[2,1,128], index: 9, kind: output, shape index: {1}]   ;;  %s9652_s10 = inlined_call_operand.hbm [shape: f32[2,1,16], index: 10, kind: output, shape index: {2}]   ;;  %s9653_s11 = inlined_call_operand.vmem [shape: f32[2,1,1], index: 11, kind: output, shape index: {3}]   ;;  %s9654_s12 = inlined_call_operand.vmem [shape: f32[2,1,1], index: 12, kind: output, shape index: {4}]  }
   0x1   :  { %9797 = sst [smem:[#allocation141_spill]] %s9653_s11  ;;  %s18_s23 = sshll.u32 %s9642_s0, 4  ;;  %s19_s23 = int_to_ptr.vmem [resolvable:$true] %s18_s23 }
   0x2   :  { %9798 = sst [smem:[#allocation142_spill]] %s9654_s12  ;;  %s6314_s24 = scalar_lea.vmem %s19_s23, 32 }
   0x3   :  { %p6315_p0 = scmp.ne.s32.totalorder %s19_s23, %s6314_s24  ;;  %p6319_p1 = scmp.lt.s32.totalorder %s19_s23, %s19_s23 }
   0x4   :  { %p6320_p2 = scmp.lt.s32.totalorder %s6314_s24, %s6314_s24 }
   0x6   :  { %p6321_p3 = por %p6320_p2, %p6319_p1 }
   0x8   :  { %p6322_p4 = pnand %p6321_p3, %p6315_p0 }
   0xa   :  { %6325 = shalt.err (!%p6322_p4)  }
   0xb   :  { %s6486_s25 = smov [#allocation5]  }
   0xc   :  { %21 = dma.vmem_to_smem %s19_s23, 32, %s6486_s25, [#allocation4] }
   0xd   :  { %6450 = dma.done.wait [#allocation4], 32 }
   0xe   :  { %6451 = vsyncadd [#allocation4], 4294967264 }
   0xf   :  { %23 = sfence }
  0x10   :  { %24 = vsyncpa [#allocation7], 0 }
  0x11   :  { %26 = vsyncpa [#allocation7 + $0x1], 0 }
  0x12   :  { %27 = vsyncpa [#allocation9], 0 }
  0x13   :  { %29 = vsyncpa [#allocation9 + $0x1], 0  ;;  %s6564_s26 = smov 0   ;;  %s6566_s0 = smov 0  }
  0x14   :  { %s6568_s27 = smov 0   ;;  %s6570_s28 = smov 0  }
  0x15 LB: > { %9799 = sst [smem:[#allocation19_spill]] %s6464_s26  ;;  %s6585_s29 = sadd.s32 4294967295, %s6476_s28   ;;  %s6476_s28 = sphi %s6570_s28, %s10216_s28   ;;  %s6472_s27 = sphi %s6568_s27, %s10219_s27   ;;  %s6468_s0 = sphi %s6566_s0, %s10218_s0   ;;  %s6464_s26 = sphi %s6564_s26, %s10217_s26  }
  0x16   : > { %9800 = sst [smem:[#allocation20_spill]] %s6468_s0  ;;  %s9655_s30 = sadd.s32 4294967294, %s6476_s28  }
  0x17   : > { %9801 = sst [smem:[#allocation21_spill]] %s6472_s27  ;;  %s6589_s13 = sadd.s32 1, %s6476_s28  }
  0x18   : > { %9802 = sst [smem:[#allocation22_spill]] %s6476_s28  ;;  %s168_s14 = sadd.s32 1, %s6472_s27 }
  0x19   : > { %9803 = sst [smem:[#allocation23_spill]] %s6589_s13  ;;  %s165_s15 = ssub.s32 %s6476_s28, %s6589_s13 }
  0x1a   : > { %p178_p5 = scmp.ne.s32.totalorder %s6472_s27, %s6468_s0  ;;  %p166_p6 = scmp.eq.s32.totalorder %s165_s15, 0 }
  0x1b   : > { %p179_p7 = scmp.eq.s32.totalorder %s6585_s29, 1  ;;  %p184_p8 = scmp.ne.s32.totalorder %s6468_s0, %s6464_s26 }
  0x1c   : > { %p185_p9 = scmp.eq.s32.totalorder %s9655_s30, 1  ;;  %p5310_p12 = scmp.ge.s32.totalorder %s6476_s28, 1 }
  0x1d   : > { %s6602_s16 = scalar_select %p166_p6, %s6472_s27, %s168_s14  }
  0x1e   : > { %p6604_p10 = por %p179_p7, %p178_p5  ;;  %p6608_p11 = por %p185_p9, %p184_p8 }
  0x1f   : > { %9804 = sst [smem:[#allocation24_spill]] %s6602_s16  ;;  %p325_p13 = scmp.lt.s32.totalorder %s6476_s28, 3 }
  0x20   : > { %s9806_s18 = scalar_select %p6608_p11, 1, 0 }
  0x21   : > { %p326_p0 = pnand %p5310_p12, %p325_p13 }
  0x22   : > { %9807 = sst [smem:[#allocation25_spill]] %s9806_s18 }
  0x23   : > { %329 = sbr.rel (%p326_p0) target bundleno = 1405 (0x57d), region = 44 }
  0x28   : > { %s6615_s19 = sand.u32 1, %s6468_s0   ;;  %p373_p1 = scmp.lt.s32.totalorder %s6585_s29, 1 }
  0x29   : > { %s5311_s20 = sshll.u32 %s6615_s19, 8  ;;  %s5312_s22 = sshll.u32 %s6585_s29, 7 }
  0x2a   : > { %s6620_s21 = scalar_select %p373_p1, %s6585_s29, 1 }
  0x2b   : > { %s6631_s16 = scalar_lea.vmem [#allocation6], %s5311_s20  ;;  %s6635_s13 = smov 0  }
  0x2c LB: >> { %s386_s23 = sadd.s32 %s6480_s13, %s5312_s22  ;;  %s390_s25 = scalar_lea.vmem [#allocation2], %s6480_s13  ;;  %s6480_s13 = sphi %s6635_s13, %s385_s13  }
  0x2d   : >> { %s387_s24 = sld [smem:[#allocation5 + %s386_s23]]  ;;  %s398_s14 = sshll.u32 %s390_s25, 4  ;;  %s399_s14 = int_to_ptr.vmem [resolvable:$true] %s398_s14 }
  0x2e   : >> { %s6328_s28 = scalar_lea.hbm %s9643_s1, 4096 }
  0x33   : >> { %s5313_s20 = sshll.u32 %s387_s24, 4 }
  0x34   : >> { %s389_s0 = scalar_lea.hbm %s9643_s1, %s5313_s20 }
  0x35   : >> { %s6326_s27 = scalar_lea.hbm %s389_s0, 16  ;;  %p6329_p3 = scmp.lt.s32.totalorder %s389_s0, %s9643_s1 }
  0x36   : >> { %p6327_p2 = scmp.ne.s32.totalorder %s389_s0, %s6326_s27  ;;  %p6330_p4 = scmp.lt.s32.totalorder %s6328_s28, %s6326_s27 }
  0x38   : >> { %p6331_p5 = por %p6330_p4, %p6329_p3 }
  0x3a   : >> { %p6332_p6 = pnand %p6331_p5, %p6327_p2 }
  0x3c   : >> { %6335 = shalt.err (!%p6332_p6)  }
  0x3d   : >> { %s6336_s25 = scalar_lea.vmem %s399_s14, 16  ;;  %s6487_s23 = smov [#allocation2]  }
  0x3e   : >> { %p6337_p7 = scmp.ne.s32.totalorder %s399_s14, %s6336_s25  ;;  %s6338_s24 = sshll.u32 %s6487_s23, 4  ;;  %s6339_s24 = int_to_ptr.vmem [resolvable:$false] %s6338_s24 }
  0x3f   : >> { %s6340_s30 = scalar_lea.vmem %s6339_s24, 2048  ;;  %p6341_p8 = scmp.lt.s32.totalorder %s399_s14, %s6339_s24 }
  0x40   : >> { %p6342_p9 = scmp.lt.s32.totalorder %s6340_s30, %s6336_s25 }
  0x42   : >> { %p6343_p12 = por %p6342_p9, %p6341_p8 }
  0x44   : >> { %p6344_p13 = pnand %p6343_p12, %p6337_p7 }
  0x46   : >> { %6347 = shalt.err (!%p6344_p13)  }
  0x47   : >> { %401 = dma.hbm_to_vmem [thread:$0]  %s389_s0, 16, %s399_s14, [#allocation3] }
  0x48   : >> { %s385_s13 = sadd.s32 1, %s6480_s13  }
  0x49   : >> { %p382_p0 = scmp.ge.s32.totalorder %s385_s13, 128  }
  0x4a   : > { %s6482_s11 = smov (%p382_p0), 0  }
  0x4b   : > { %384 = sbr.rel (!%p382_p0) target bundleno = 44 (0x2c), region = 152 }
  0x50 LB: >> { %6452 = dma.done.wait [#allocation3], 16  ;;  %s6484_s11 = sphi %s6482_s11, %s407_s11  }
  0x51   : >> { %6453 = vsyncadd [#allocation3], 4294967280  ;;  %s407_s11 = sadd.s32 1, %s6484_s11  }
  0x52   : >> { %p404_p1 = scmp.ge.s32.totalorder %s407_s11, 128  }
  0x53   : > { %v442_v0 = vld [vmem:[%s9644_s2 + $0x78] sm:$0xff] (%p404_p1)  ;;  %v441_v1 = vld [vmem:[%s9644_s2 + $0x70] sm:$0xff] (%p404_p1)  ;;  %v440_v2 = vld [vmem:[%s9644_s2 + $0x68] sm:$0xff] (%p404_p1)  ;;  %vm1752_vm0 = vcmask (%p404_p1), 31744   ;;  %vm2224_vm1 = vcmask (%p404_p1), 1043456   ;;  %s10204_s23 = scalar_lea.vmem (%p404_p1), [#allocation8], %s6615_s19 }
  0x54   : > { %406 = sbr.rel (!%p404_p1) target bundleno = 80 (0x50), region = 163  ;;  %v6665_v3 = vand.u32 (%p404_p1), 4294901760, %v442_v0  ;;  %v6667_v4 = vand.u32 (%p404_p1), 4294901760, %v441_v1  ;;  %v6669_v5 = vand.u32 (%p404_p1), 4294901760, %v440_v2  ;;  %v439_v6 = vld [vmem:[%s9644_s2 + $0x60] sm:$0xff] (%p404_p1)  ;;  %v438_v7 = vld [vmem:[%s9644_s2 + $0x58] sm:$0xff] (%p404_p1)  ;;  %s10206_s27 = smov (%p404_p1), %s10204_s23 }
  0x55   : > { %v437_v8 = vld [vmem:[%s9644_s2 + $0x50] sm:$0xff] (%p404_p1)  ;;  %v6680_v9 = vand.u32 (%p404_p1), 4294901760, %v439_v6  ;;  %v6682_v10 = vand.u32 (%p404_p1), 4294901760, %v438_v7  ;;  %v436_v12 = vld [vmem:[%s9644_s2 + $0x48] sm:$0xff] (%p404_p1)  ;;  %v435_v13 = vld [vmem:[%s9644_s2 + $0x40] sm:$0xff] (%p404_p1)  ;;  %s10205_s24 = scalar_lea.vmem (%p404_p1), [#allocation10], %s6615_s19 }
  0x56   : > { %v6684_v11 = vand.u32 (%p404_p1), 4294901760, %v437_v8  ;;  %5621 = vmatprep.subr.mxu0 (%p404_p1), %v6665_v3  ;;  %v6694_v14 = vsub.f32 (%p404_p1), %v442_v0, %v6665_v3  ;;  %v6697_v15 = vsub.f32 (%p404_p1), %v441_v1, %v6667_v4  ;;  %v6699_v16 = vand.u32 (%p404_p1), 4294901760, %v436_v12  ;;  %v434_v18 = vld [vmem:[%s9644_s2 + $0x38] sm:$0xff] (%p404_p1)  ;;  %v433_v25 = vld [vmem:[%s9644_s2 + $0x30] sm:$0xff] (%p404_p1)  ;;  %v432_v35 = vld [vmem:[%s9644_s2 + $0x28] sm:$0xff] (%p404_p1)  ;;  %s5092_s30 = sand.u32 (%p404_p1), 1, %s6585_s29  }
  0x57   : > { %v6702_v17 = vsub.f32 (%p404_p1), %v440_v2, %v6669_v5  ;;  %5622 = vmatpush3.msra.mxu0 (%p404_p1), %v6665_v3  ;;  %v6709_v19 = vsub.f32 (%p404_p1), %v439_v6, %v6680_v9  ;;  %v6712_v20 = vsub.f32 (%p404_p1), %v438_v7, %v6682_v10  ;;  %v6724_v24 = vand.u32 (%p404_p1), 4294901760, %v435_v13  ;;  %v431_v40 = vld [vmem:[%s9644_s2 + $0x20] sm:$0xff] (%p404_p1)  ;;  %v412_v49 = vld [vmem:[#allocation2 + $0x8] sm:$0xff] (%p404_p1)  ;;  %v430_v53 = vld [vmem:[%s9644_s2 + $0x18] sm:$0xff] (%p404_p1)  ;;  %s5320_s11 = sshll.u32 (%p404_p1), %s6585_s29, 4  ;;  %s5132_s28 = sshll.u32 (%p404_p1), %s10206_s27, 4  ;;  %s5133_s28 = int_to_ptr.vmem [resolvable:$true] %s5132_s28 }
  0x58   : > { %5623 = vmatprep.subr.mxu0 (%p404_p1), %v6667_v4  ;;  %v6716_v21 = vand.u32 (%p404_p1), 4294901760, %v6694_v14  ;;  %v6719_v22 = vand.u32 (%p404_p1), 4294901760, %v6697_v15  ;;  %v6733_v27 = vand.u32 (%p404_p1), 4294901760, %v434_v18  ;;  %v6739_v29 = vsub.f32 (%p404_p1), %v437_v8, %v6684_v11  ;;  %v411_v47 = vld [vmem:[#allocation2] sm:$0xff] (%p404_p1)  ;;  %v429_v59 = vld [vmem:[%s9644_s2 + $0x10] sm:$0xff] (%p404_p1)  ;;  %v428_v6 = vld [vmem:[%s9644_s2 + $0x8] sm:$0xff] (%p404_p1)  ;;  %s9517_s0 = scalar_lea.hbm (%p404_p1), %s9651_s9, %s5320_s11  ;;  %s9524_s22 = scalar_lea.hbm (%p404_p1), %s9652_s10, %s5320_s11 }
  0x59   : > { %v6722_v23 = vand.u32 4294901760, %v6702_v17  ;;  %5624 = vmatpush3.msra.mxu0 %v6667_v4  ;;  %v6731_v26 = vand.u32 4294901760, %v6709_v19  ;;  %v6736_v28 = vand.u32 4294901760, %v6712_v20  ;;  %v6749_v33 = vsub.f32 %v436_v12, %v6699_v16  ;;  %v413_v63 = vld [vmem:[#allocation2 + $0x10] sm:$0xff]  ;;  %s9526_s14 = scalar_lea.sflag [#allocation9], %s5092_s30  ;;  %s6348_s20 = scalar_lea.vmem %s5133_s28, 16 }
  0x5a   : > { %9810 = vst [vmem:[#allocation26_spill] sm:$0xff] %v6719_v22  ;;  %5625 = vmatprep.subr.mxu0 %v6669_v5  ;;  %v695_v30 = vsub.f32 %v6694_v14, %v6716_v21  ;;  %v702_v31 = vsub.f32 %v6697_v15, %v6719_v22  ;;  %v6752_v34 = vand.u32 4294901760, %v433_v25  ;;  %v6761_v39 = vand.u32 4294901760, %v6739_v29  ;;  %v420_v22 = vld [vmem:[#allocation2 + $0x48] sm:$0xff]  ;;  %p6349_p2 = scmp.ne.s32.totalorder %s5133_s28, %s6348_s20  ;;  %s6491_s15 = smov [#allocation8]  }
  0x5b   : > { %9811 = vst [vmem:[#allocation27_spill] sm:$0xff] %v6722_v23  ;;  %9812 = vst [vmem:[#allocation28_spill] sm:$0xff] %v6731_v26  ;;  %v709_v32 = vsub.f32 %v6702_v17, %v6722_v23  ;;  %5626 = vmatpush3.msra.mxu0 %v6669_v5  ;;  %v716_v38 = vsub.f32 %v6709_v19, %v6731_v26  ;;  %v6768_v41 = vand.u32 4294901760, %v6749_v33  ;;  %v6776_v45 = vand.u32 4294901760, %v432_v35  ;;  %s6352_s25 = sshll.u32 %s6491_s15, 4  ;;  %s6353_s25 = int_to_ptr.vmem [resolvable:$false] %s6352_s25 }
  0x5c   : > { %9813 = vst [vmem:[#allocation29_spill] sm:$0xff] %v6736_v28  ;;  %5627 = vmatprep.subr.mxu0 %v6680_v9  ;;  %v696_v36 = vand.u32 4294901760, %v695_v30  ;;  %v703_v37 = vand.u32 4294901760, %v702_v31  ;;  %9814 = vst [vmem:[#allocation30_spill] sm:$0xff] %v6761_v39  ;;  %v6771_v42 = vsub.f32 %v435_v13, %v6724_v24  ;;  %v723_v44 = vsub.f32 %v6712_v20, %v6736_v28  ;;  %v427_v31 = vld [vmem:[%s9644_s2] sm:$0xff]  ;;  %p6350_p3 = pnand %p6349_p2, %p6604_p10  ;;  %p6355_p5 = scmp.lt.s32.totalorder %s5133_s28, %s6353_s25 }
  0x5d   : > { %5628 = vmatpush3.msra.mxu0 %v6680_v9  ;;  %9815 = vst [vmem:[#allocation31_spill] sm:$0xff] %v6768_v41  ;;  %v710_v43 = vand.u32 4294901760, %v709_v32  ;;  %v6779_v46 = vsub.f32 %v434_v18, %v6733_v27  ;;  %v6782_v48 = vand.u32 4294901760, %v431_v40  ;;  %v717_v50 = vand.u32 4294901760, %v716_v38  ;;  %v414_v18 = vld [vmem:[#allocation2 + $0x18] sm:$0xff] }
  0x5e   : > { %5629 = vmatprep.subr.mxu0 %v6682_v10  ;;  %5677 = vmatprep.subr.mxu1 %v696_v36  ;;  %v730_v51 = vsub.f32 %v6739_v29, %v6761_v39  ;;  %v6788_v52 = vand.u32 4294901760, %v6771_v42  ;;  %v6794_v54 = vsub.f32 %v433_v25, %v6752_v34  ;;  %v737_v55 = vsub.f32 %v6749_v33, %v6768_v41  ;;  %v417_v41 = vld [vmem:[#allocation2 + $0x30] sm:$0xff]  ;;  %p6351_p4 = pneg %p6350_p3 }
  0x5f   : > { %5630 = vmatpush3.msra.mxu0 %v6682_v10  ;;  %5678 = vmatpush3.msra.mxu1 %v696_v36  ;;  %v6799_v56 = vand.u32 4294901760, %v411_v47  ;;  %v724_v57 = vand.u32 4294901760, %v723_v44  ;;  %v6803_v58 = vand.u32 4294901760, %v6779_v46  ;;  %v6809_v60 = vsub.f32 %v432_v35, %v6776_v45 }
  0x60   : > { %5631 = vmatprep.subr.mxu0 %v6684_v11  ;;  %5679 = vmatprep.subr.mxu1 %v703_v37  ;;  %9816 = vst [vmem:[#allocation32_spill] sm:$0xff] %v6788_v52  ;;  %v6811_v61 = vand.u32 4294901760, %v412_v49  ;;  %v6814_v62 = vand.u32 4294901760, %v430_v53  ;;  %v731_v0 = vand.u32 4294901760, %v730_v51  ;;  %v744_v1 = vsub.f32 %v6771_v42, %v6788_v52  ;;  %v418_v52 = vld [vmem:[#allocation2 + $0x38] sm:$0xff] }
  0x61   : > { %5632 = vmatpush3.msra.mxu0 %v6684_v11  ;;  %5680 = vmatpush3.msra.mxu1 %v703_v37  ;;  %9817 = vst [vmem:[#allocation33_spill] sm:$0xff] %v6803_v58  ;;  %v6820_v2 = vand.u32 4294901760, %v6794_v54  ;;  %v6826_v7 = vsub.f32 %v431_v40, %v6782_v48  ;;  %v738_v8 = vand.u32 4294901760, %v737_v55  ;;  %v6829_v12 = vand.u32 4294901760, %v429_v59 }
  0x62   : > { %5633 = vmatprep.subr.mxu0 %v6699_v16  ;;  %5681 = vmatprep.subr.mxu1 %v710_v43  ;;  %v6832_v13 = vsub.f32 %v411_v47, %v6799_v56  ;;  %v751_v25 = vsub.f32 %v6779_v46, %v6803_v58  ;;  %v6838_v30 = vand.u32 4294901760, %v6809_v60  ;;  %v6844_v32 = vsub.f32 %v412_v49, %v6811_v61  ;;  %v415_v47 = vld [vmem:[#allocation2 + $0x20] sm:$0xff] }
  0x63   : > { %5634 = vmatpush3.msra.mxu0 %v6699_v16  ;;  %5682 = vmatpush3.msra.mxu1 %v710_v43  ;;  %9818 = vst [vmem:[#allocation34_spill] sm:$0xff] %v6820_v2  ;;  %v6846_v35 = vand.u32 4294901760, %v413_v63  ;;  %v6849_v36 = vand.u32 4294901760, %v428_v6  ;;  %v6852_v37 = vsub.f32 %v430_v53, %v6814_v62  ;;  %v745_v38 = vand.u32 4294901760, %v744_v1 }
  0x64   : > { %5635 = vmatprep.subr.mxu0 %v6724_v24  ;;  %5683 = vmatprep.subr.mxu1 %v717_v50  ;;  %9819 = vst [vmem:[#allocation35_spill] sm:$0xff] %v6838_v30  ;;  %v758_v40 = vsub.f32 %v6794_v54, %v6820_v2  ;;  %v6858_v43 = vand.u32 4294901760, %v6826_v7  ;;  %v6860_v44 = vand.u32 4294901760, %v414_v18  ;;  %v6863_v49 = vand.u32 4294901760, %v427_v31 }
  0x65   : > { %5636 = vmatpush3.msra.mxu0 %v6724_v24  ;;  %5684 = vmatpush3.msra.mxu1 %v717_v50  ;;  %9820 = vst [vmem:[#allocation36_spill] sm:$0xff] %v6849_v36  ;;  %v6867_v51 = vsub.f32 %v429_v59, %v6829_v12  ;;  %v752_v53 = vand.u32 4294901760, %v751_v25  ;;  %v765_v55 = vsub.f32 %v6809_v60, %v6838_v30  ;;  %v6878_v50 = vand.u32 4294901760, %v6852_v37 }
  0x66   : > { %5637 = vmatprep.subr.mxu0 %v6733_v27  ;;  %5685 = vmatprep.subr.mxu1 %v724_v57  ;;  %9821 = vst [vmem:[#allocation37_spill] sm:$0xff] %v6858_v43  ;;  %9822 = vst [vmem:[#allocation38_spill] sm:$0xff] %v6863_v49  ;;  %v6874_v1 = vsub.f32 %v413_v63, %v6846_v35  ;;  %v6881_v59 = vsub.f32 %v428_v6, %v6849_v36  ;;  %v6883_v2 = vand.u32 4294901760, %v415_v47 }
  0x67   : > { %5638 = vmatpush3.msra.mxu0 %v6733_v27  ;;  %5686 = vmatpush3.msra.mxu1 %v724_v57  ;;  %9824 = vst [vmem:[#allocation40_spill] sm:$0xff] %v6878_v50  ;;  %v759_v25 = vand.u32 4294901760, %v758_v40  ;;  %v772_v63 = vsub.f32 %v6826_v7, %v6858_v43  ;;  %v6889_v57 = vsub.f32 %v414_v18, %v6860_v44  ;;  %v6896_v30 = vand.u32 4294901760, %v6867_v51 }
  0x68   : > { %5639 = vmatprep.subr.mxu0 %v6752_v34  ;;  %5687 = vmatprep.subr.mxu1 %v731_v0  ;;  %9823 = vst [vmem:[#allocation39_spill] sm:$0xff] %v6874_v1  ;;  %v766_v40 = vand.u32 4294901760, %v765_v55  ;;  %v9827_v43 = vand.u32 4294901760, %v6844_v32  ;;  %v6912_v39 = vand.u32 4294901760, %v6881_v59  ;;  %v6915_v55 = vsub.f32 %v415_v47, %v6883_v2 }
  0x69   : > { %5640 = vmatpush3.msra.mxu0 %v6752_v34  ;;  %5688 = vmatpush3.msra.mxu1 %v731_v0  ;;  %v416_v0 = vld [vmem:[#allocation2 + $0x28] sm:$0xff]  ;;  %9826 = vst [vmem:[#allocation41_spill] sm:$0xff] %v6896_v30  ;;  %v6925_v26 = vand.u32 4294901760, %v417_v41 }
  0x6a   : > { %5641 = vmatprep.subr.mxu0 %v6776_v45  ;;  %5689 = vmatprep.subr.mxu1 %v738_v8  ;;  %v6898_v58 = vand.u32 4294901760, %v416_v0  ;;  %v544_v18 = vsub.f32 %v6844_v32, %v9827_v43  ;;  %9828 = vst [vmem:[#allocation42_spill] sm:$0xff] %v6912_v39  ;;  %v773_v43 = vand.u32 4294901760, %v772_v63  ;;  %v9829_v63 = vand.u32 4294901760, %v6874_v1 }
  0x6b   : > { %5642 = vmatpush3.msra.mxu0 %v6776_v45  ;;  %5690 = vmatpush3.msra.mxu1 %v738_v8  ;;  %v9825_v8 = vand.u32 4294901760, %v6832_v13 }
  0x6c   : > { %5643 = vmatprep.subr.mxu0 %v6782_v48  ;;  %5691 = vmatprep.subr.mxu1 %v745_v38  ;;  %v6923_v28 = vsub.f32 %v416_v0, %v6898_v58  ;;  %v545_v47 = vand.u32 4294901760, %v544_v18  ;;  %v793_v0 = vsub.f32 %v6881_v59, %v6912_v39  ;;  %v9830_v18 = vand.u32 4294901760, %v6889_v57 }
  0x6d   : > { %5644 = vmatpush3.msra.mxu0 %v6782_v48  ;;  %5692 = vmatpush3.msra.mxu1 %v745_v38  ;;  %v534_v6 = vsub.f32 %v6832_v13, %v9825_v8  ;;  %v6906_v38 = vsub.f32 %v427_v31, %v6863_v49  ;;  %v779_v8 = vsub.f32 %v6852_v37, %v6878_v50 }
  0x6e   : > { %5645 = vmatprep.subr.mxu0 %v6814_v62  ;;  %5693 = vmatprep.subr.mxu1 %v752_v53  ;;  %v786_v50 = vsub.f32 %v6867_v51, %v6896_v30  ;;  %v554_v31 = vsub.f32 %v6874_v1, %v9829_v63  ;;  %v6938_v30 = vand.u32 4294901760, %v418_v52  ;;  %v564_v63 = vsub.f32 %v6889_v57, %v9830_v18  ;;  %v419_v1 = vld [vmem:[#allocation2 + $0x40] sm:$0xff] }
  0x6f   : > { %5646 = vmatpush3.msra.mxu0 %v6814_v62  ;;  %5694 = vmatpush3.msra.mxu1 %v752_v53  ;;  %v535_v53 = vand.u32 4294901760, %v534_v6  ;;  %v6932_v23 = vand.u32 4294901760, %v6906_v38  ;;  %v6947_v39 = vsub.f32 %v417_v41, %v6925_v26  ;;  %v794_v18 = vand.u32 4294901760, %v793_v0 }
  0x70   : > { %5647 = vmatprep.subr.mxu0 %v6829_v12  ;;  %5695 = vmatprep.subr.mxu1 %v759_v25  ;;  %v555_v6 = vand.u32 4294901760, %v554_v31  ;;  %v6958_v41 = vand.u32 4294901760, %v419_v1  ;;  %v6966_v0 = vand.u32 4294901760, %v420_v22 }
  0x71   : > { %5648 = vmatpush3.msra.mxu0 %v6829_v12  ;;  %5696 = vmatpush3.msra.mxu1 %v759_v25  ;;  %v780_v25 = vand.u32 4294901760, %v779_v8  ;;  %v9698_v8 = vand.u32 4294901760, %v6923_v28 }
  0x72   : > { %5649 = vmatprep.subr.mxu0 %v6849_v36  ;;  %5697 = vmatprep.subr.mxu1 %v766_v40 }
  0x73   : > { %5650 = vmatpush3.msra.mxu0 %v6849_v36  ;;  %5698 = vmatpush3.msra.mxu1 %v766_v40  ;;  %v787_v40 = vand.u32 4294901760, %v786_v50  ;;  %v800_v36 = vsub.f32 %v6906_v38, %v6932_v23  ;;  %v584_v31 = vsub.f32 %v6923_v28, %v9698_v8  ;;  %v422_v8 = vld [vmem:[#allocation2 + $0x58] sm:$0xff] }
  0x74   : > { %5651 = vmatprep.subr.mxu0 %v6863_v49  ;;  %5699 = vmatprep.subr.mxu1 %v773_v43 }
  0x75   : > { %5652 = vmatpush3.msra.mxu0 %v6863_v49  ;;  %5653 = vmatprep.mubr.f32.mxu0 %v535_v53  ;;  %v9831_v49 = vand.u32 4294901760, %v6915_v55  ;;  %v6956_v53 = vsub.f32 %v418_v52, %v6938_v30  ;;  %v801_v52 = vand.u32 4294901760, %v800_v36 }
  0x76   : > { %5700 = vmatpush3.msra.mxu1 %v773_v43  ;;  %5654 = vmatmul.mubr.f32.vlgmr.msra.gmra.mxu0 %v545_v47  ;;  %v565_v43 = vand.u32 4294901760, %v564_v63  ;;  %v9702_v47 = vand.u32 4294901760, %v6947_v39  ;;  %v6971_v63 = vsub.f32 %v419_v1, %v6958_v41 }
  0x77   : > { %5701 = vmatprep.subr.mxu1 %v780_v25  ;;  %5733 = vmatprep.subr.mxu0 %v6694_v14  ;;  %v574_v50 = vsub.f32 %v6915_v55, %v9831_v49  ;;  %v421_v49 = vld [vmem:[#allocation2 + $0x50] sm:$0xff] }
  0x78   : > { %5702 = vmatpush3.msra.mxu1 %v780_v25  ;;  %5734 = vmatpush3.msra.mxu0 %v6694_v14  ;;  %v9700_v25 = vand.u32 4294901760, %v6956_v53  ;;  %v594_v36 = vsub.f32 %v6947_v39, %v9702_v47 }
  0x79   : > { %5703 = vmatprep.subr.mxu1 %v787_v40  ;;  %5735 = vmatprep.subr.mxu0 %v6697_v15  ;;  %v575_v14 = vand.u32 4294901760, %v574_v50 }
  0x7a   : > { %5656 = vmatprep.mubr.f32.mxu0 %v555_v6  ;;  %5704 = vmatpush3.msra.mxu1 %v787_v40  ;;  %v585_v6 = vand.u32 4294901760, %v584_v31  ;;  %v6981_v40 = vand.u32 4294901760, %v421_v49  ;;  %v604_v1 = vsub.f32 %v6956_v53, %v9700_v25  ;;  %v595_v50 = vand.u32 4294901760, %v594_v36 }
  0x7b   : > { %5736 = vmatpush3.msra.mxu0 %v6697_v15  ;;  %5705 = vmatprep.subr.mxu1 %v794_v18  ;;  %v6979_v15 = vsub.f32 %v420_v22, %v6966_v0  ;;  %v423_v22 = vld [vmem:[#allocation2 + $0x60] sm:$0xff] }
  0x7c   : > { %5657 = vmatmul.mubr.f32.gmra.mxu0 %v565_v43  ;;  %5737 = vmatprep.subr.mxu0 %v6702_v17  ;;  %v6995_v31 = vsub.f32 %v421_v49, %v6981_v40  ;;  %v7007_v36 = vand.u32 4294901760, %v423_v22 }
  0x7d   : > { %5706 = vmatpush3.msra.mxu1 %v794_v18  ;;  %5738 = vmatpush3.msra.mxu0 %v6702_v17  ;;  %v9699_v17 = vand.u32 4294901760, %v6971_v63  ;;  %v6988_v18 = vand.u32 4294901760, %v422_v8  ;;  %v9701_v43 = vand.u32 4294901760, %v6979_v15 }
  0x7e   : > { %5707 = vmatprep.subr.mxu1 %v801_v52  ;;  %5739 = vmatprep.subr.mxu0 %v6709_v19  ;;  %v9703_v49 = vand.u32 4294901760, %v6995_v31  ;;  %v7023_v25 = vsub.f32 %v423_v22, %v7007_v36 }
  0x7f   : > { %5659 = vmatprep.mubr.f32.mxu0 %v575_v14  ;;  %5708 = vmatpush3.msra.mxu1 %v801_v52  ;;  %v424_v52 = vld [vmem:[#allocation2 + $0x68] sm:$0xff]  ;;  %v614_v14 = vsub.f32 %v6971_v63, %v9699_v17 }
  0x80   : > { %5709 = vmatprep.mubr.f32.mxu1 %v6799_v56  ;;  %5740 = vmatpush3.msra.mxu0 %v6709_v19  ;;  %v605_v19 = vand.u32 4294901760, %v604_v1  ;;  %v7016_v1 = vand.u32 4294901760, %v424_v52  ;;  %v653_v22 = vand.u32 4294901760, %v7023_v25 }
  0x81   : > { %5660 = vmatmul.mubr.f32.gmra.mxu0 %v585_v6  ;;  %5710 = vmatmul.mubr.f32.vlgmr.msra.gmra.mxu1 %v6811_v61  ;;  %v7005_v6 = vsub.f32 %v422_v8, %v6988_v18  ;;  %v425_v8 = vld [vmem:[#allocation2 + $0x70] sm:$0xff]  ;;  %v615_v17 = vand.u32 4294901760, %v614_v14 }
  0x82   : > { %5741 = vmatprep.subr.mxu0 %v6712_v20  ;;  %5789 = vmatprep.subr.mxu1 %v6665_v3  ;;  %v7033_v14 = vsub.f32 %v424_v52, %v7016_v1  ;;  %v7035_v47 = vand.u32 4294901760, %v425_v8 }
  0x83   : > { %5742 = vmatpush3.msra.mxu0 %v6712_v20  ;;  %5790 = vmatpush3.msra.mxu1 %v6665_v3  ;;  %v624_v20 = vsub.f32 %v6979_v15, %v9701_v43  ;;  %v426_v43 = vld [vmem:[#allocation2 + $0x78] sm:$0xff] }
  0x84   : > { %5743 = vmatprep.subr.mxu0 %v6739_v29  ;;  %5791 = vmatprep.subr.mxu1 %v6667_v4 }
  0x85   : > { %5662 = vmatprep.mubr.f32.mxu0 %v595_v50  ;;  %5712 = vmatprep.mubr.f32.mxu1 %v6846_v35  ;;  %v643_v50 = vand.u32 4294901760, %v7005_v6 }
  0x86   : > { %5744 = vmatpush3.msra.mxu0 %v6739_v29  ;;  %5792 = vmatpush3.msra.mxu1 %v6667_v4  ;;  %v625_v29 = vand.u32 4294901760, %v624_v20  ;;  %v7044_v20 = vand.u32 4294901760, %v426_v43 }
  0x87   : > { %5663 = vmatmul.mubr.f32.gmra.mxu0 %v605_v19  ;;  %5713 = vmatmul.mubr.f32.gmra.mxu1 %v6860_v44  ;;  %v634_v19 = vsub.f32 %v6995_v31, %v9703_v49  ;;  %v7051_v49 = vsub.f32 %v425_v8, %v7035_v47 }
  0x88   : > { %5745 = vmatprep.subr.mxu0 %v6749_v33  ;;  %5793 = vmatprep.subr.mxu1 %v6669_v5 }
  0x89   : > { %5746 = vmatpush3.msra.mxu0 %v6749_v33  ;;  %5794 = vmatpush3.msra.mxu1 %v6669_v5  ;;  %v644_v33 = vsub.f32 %v7005_v6, %v643_v50  ;;  %v635_v52 = vand.u32 4294901760, %v634_v19  ;;  %v7061_v19 = vsub.f32 %v426_v43, %v7044_v20  ;;  %v673_v8 = vand.u32 4294901760, %v7051_v49 }
  0x8a   : > { %5747 = vmatprep.subr.mxu0 %v6771_v42  ;;  %5795 = vmatprep.subr.mxu1 %v6680_v9 }
  0x8b   : > { %5665 = vmatprep.mubr.f32.mxu0 %v615_v17  ;;  %5715 = vmatprep.mubr.f32.mxu1 %v6883_v2  ;;  %v663_v17 = vand.u32 4294901760, %v7033_v14 }
  0x8c   : > { %5748 = vmatpush3.msra.mxu0 %v6771_v42  ;;  %5796 = vmatpush3.msra.mxu1 %v6680_v9  ;;  %v645_v42 = vand.u32 4294901760, %v644_v33  ;;  %v683_v33 = vand.u32 4294901760, %v7061_v19 }
  0x8d   : > { %5666 = vmatmul.mubr.f32.gmra.mxu0 %v625_v29  ;;  %5716 = vmatmul.mubr.f32.gmra.mxu1 %v6898_v58  ;;  %v654_v29 = vsub.f32 %v7023_v25, %v653_v22 }
  0x8e   : > { %5749 = vmatprep.subr.mxu0 %v6779_v46  ;;  %5797 = vmatprep.subr.mxu1 %v6682_v10 }
  0x8f   : > { %5750 = vmatpush3.msra.mxu0 %v6779_v46  ;;  %5798 = vmatpush3.msra.mxu1 %v6682_v10  ;;  %v664_v46 = vsub.f32 %v7033_v14, %v663_v17  ;;  %v655_v43 = vand.u32 4294901760, %v654_v29 }
  0x90   : > { %5751 = vmatprep.subr.mxu0 %v6794_v54  ;;  %5799 = vmatprep.subr.mxu1 %v6684_v11 }
  0x91   : > { %5668 = vmatprep.mubr.f32.mxu0 %v635_v52  ;;  %5718 = vmatprep.mubr.f32.mxu1 %v6925_v26  ;;  %v665_v52 = vand.u32 4294901760, %v664_v46  ;;  %v9838_v46 = vand.u32 4294901760, %v6832_v13 }
  0x92   : > { %5752 = vmatpush3.msra.mxu0 %v6794_v54  ;;  %5800 = vmatpush3.msra.mxu1 %v6684_v11  ;;  %v674_v54 = vsub.f32 %v7051_v49, %v673_v8 }
  0x93   : > { %5669 = vmatmul.mubr.f32.gmra.mxu0 %v645_v42  ;;  %5719 = vmatmul.mubr.f32.gmra.mxu1 %v6938_v30  ;;  %v684_v42 = vsub.f32 %v7061_v19, %v683_v33 }
  0x94   : > { %5753 = vmatprep.subr.mxu0 %v6809_v60  ;;  %5801 = vmatprep.subr.mxu1 %v6699_v16 }
  0x95   : > { %5754 = vmatpush3.msra.mxu0 %v6809_v60  ;;  %5802 = vmatpush3.msra.mxu1 %v6699_v16  ;;  %v675_v60 = vand.u32 4294901760, %v674_v54  ;;  %v685_v29 = vand.u32 4294901760, %v684_v42  ;;  %v9841_v54 = vld [vmem:[#allocation30_spill] sm:$0xff]  ;;  %v9844_v42 = vld [vmem:[#allocation31_spill] sm:$0xff] }
  0x96   : > { %5755 = vmatprep.subr.mxu0 %v6826_v7  ;;  %5803 = vmatprep.subr.mxu1 %v6724_v24 }
  0x97   : > { %5671 = vmatprep.mubr.f32.mxu0 %v655_v43  ;;  %5721 = vmatprep.mubr.f32.mxu1 %v6958_v41  ;;  %v9839_v43 = vand.u32 4294901760, %v6844_v32 }
  0x98   : > { %5756 = vmatpush3.msra.mxu0 %v6826_v7  ;;  %5804 = vmatpush3.msra.mxu1 %v6724_v24  ;;  %v9832_v7 = vld [vmem:[#allocation26_spill] sm:$0xff] }
  0x99   : > { %5672 = vmatmul.mubr.f32.gmra.mxu0 %v665_v52  ;;  %5722 = vmatmul.mubr.f32.gmra.mxu1 %v6966_v0  ;;  %v9840_v52 = vld [vmem:[#allocation29_spill] sm:$0xff] }
  0x9a   : > { %5757 = vmatprep.subr.mxu0 %v6852_v37  ;;  %5805 = vmatprep.subr.mxu1 %v6733_v27 }
  0x9b   : > { %5758 = vmatpush3.msra.mxu0 %v6852_v37  ;;  %5806 = vmatpush3.msra.mxu1 %v6733_v27  ;;  %v9833_v37 = vld [vmem:[#allocation39_spill] sm:$0xff] }
  0x9c   : > { %5759 = vmatprep.subr.mxu0 %v6867_v51  ;;  %5807 = vmatprep.subr.mxu1 %v6752_v34 }
  0x9d   : > { %5674 = vmatprep.mubr.f32.mxu0 %v675_v60  ;;  %5724 = vmatprep.mubr.f32.mxu1 %v6981_v40  ;;  %v9848_v60 = vld [vmem:[#allocation33_spill] sm:$0xff] }
  0x9e   : > { %5760 = vmatpush3.msra.mxu0 %v6867_v51  ;;  %5808 = vmatpush3.msra.mxu1 %v6752_v34  ;;  %v9834_v51 = vld [vmem:[#allocation36_spill] sm:$0xff] }
  0x9f   : > { %5675 = vmatmul.mubr.f32.gmra.mxu0 %v685_v29  ;;  %5725 = vmatmul.mubr.f32.gmra.mxu1 %v6988_v18 }
  0xa0   : > { %5761 = vmatprep.subr.mxu0 %v6881_v59  ;;  %5809 = vmatprep.subr.mxu1 %v6776_v45 }
  0xa1   : > { %5762 = vmatpush3.msra.mxu0 %v6881_v59  ;;  %5810 = vmatpush3.msra.mxu1 %v6776_v45  ;;  %v9835_v59 = vld [vmem:[#allocation27_spill] sm:$0xff] }
  0xa2   : > { %5763 = vmatprep.subr.mxu0 %v6906_v38  ;;  %5811 = vmatprep.subr.mxu1 %v6782_v48 }
  0xa3   : > { %5727 = vmatprep.mubr.f32.mxu1 %v7007_v36  ;;  %5764 = vmatpush3.msra.mxu0 %v6906_v38  ;;  %v9837_v38 = vld [vmem:[#allocation28_spill] sm:$0xff] }
  0xa4   : > { %5765 = vmatprep.mubr.f32.mxu0 %v6832_v13  ;;  %5812 = vmatpush3.msra.mxu1 %v6782_v48  ;;  %v9842_v13 = vand.u32 4294901760, %v9833_v37 }
  0xa5   : > { %5728 = vmatmul.mubr.f32.gmra.mxu1 %v7016_v1  ;;  %5766 = vmatmul.mubr.f32.vlgmr.msra.gmra.mxu0 %v6844_v32  ;;  %v9843_v32 = vand.u32 4294901760, %v6889_v57 }
  0xa6   : > { %5813 = vmatprep.subr.mxu1 %v6814_v62  ;;  %5845 = vmatprep.subr.mxu0 %v6716_v21 }
  0xa7   : > { %5814 = vmatpush3.msra.mxu1 %v6814_v62  ;;  %5846 = vmatpush3.msra.mxu0 %v6716_v21  ;;  %v9836_v21 = vld [vmem:[#allocation38_spill] sm:$0xff] }
  0xa8   : > { %5815 = vmatprep.subr.mxu1 %v6829_v12  ;;  %5847 = vmatprep.subr.mxu0 %v9832_v7 }
  0xa9   : > { %5730 = vmatprep.mubr.f32.mxu1 %v7035_v47  ;;  %5768 = vmatprep.mubr.f32.mxu0 %v9833_v37 }
  0xaa   : > { %5816 = vmatpush3.msra.mxu1 %v6829_v12  ;;  %5848 = vmatpush3.msra.mxu0 %v9832_v7 }
  0xab   : > { %5731 = vmatmul.mubr.f32.gmra.mxu1 %v7044_v20  ;;  %5769 = vmatmul.mubr.f32.gmra.mxu0 %v6889_v57  ;;  %v9847_v57 = vand.u32 4294901760, %v6923_v28 }
  0xac   : > { %5817 = vmatprep.subr.mxu1 %v9834_v51  ;;  %5849 = vmatprep.subr.mxu0 %v9835_v59 }
  0xad   : > { %5818 = vmatpush3.msra.mxu1 %v9834_v51  ;;  %5850 = vmatpush3.msra.mxu0 %v9835_v59 }
  0xae   : > { %5819 = vmatprep.subr.mxu1 %v9836_v21  ;;  %5851 = vmatprep.subr.mxu0 %v9837_v38 }
  0xaf   : > { %5771 = vmatprep.mubr.f32.mxu0 %v6915_v55  ;;  %5820 = vmatpush3.msra.mxu1 %v9836_v21 }
  0xb0   : > { %5821 = vmatprep.mubr.f32.mxu1 %v9838_v46  ;;  %5852 = vmatpush3.msra.mxu0 %v9837_v38 }
  0xb1   : > { %5772 = vmatmul.mubr.f32.gmra.mxu0 %v6923_v28  ;;  %5822 = vmatmul.mubr.f32.vlgmr.msra.gmra.mxu1 %v9839_v43  ;;  %v9851_v28 = vand.u32 4294901760, %v6956_v53 }
  0xb2   : > { %5853 = vmatprep.subr.mxu0 %v9840_v52  ;;  %5901 = vmatprep.subr.mxu1 %v6665_v3 }
  0xb3   : > { %5854 = vmatpush3.msra.mxu0 %v9840_v52  ;;  %5902 = vmatpush3.msra.mxu1 %v6665_v3  ;;  %v9845_v3 = vld [vmem:[#allocation32_spill] sm:$0xff] }
  0xb4   : > { %5855 = vmatprep.subr.mxu0 %v9841_v54  ;;  %5903 = vmatprep.subr.mxu1 %v6667_v4 }
  0xb5   : > { %5774 = vmatprep.mubr.f32.mxu0 %v6947_v39  ;;  %5824 = vmatprep.mubr.f32.mxu1 %v9842_v13 }
  0xb6   : > { %5856 = vmatpush3.msra.mxu0 %v9841_v54  ;;  %5904 = vmatpush3.msra.mxu1 %v6667_v4  ;;  %v9846_v4 = vand.u32 4294901760, %v6915_v55  ;;  %v9852_v55 = vld [vmem:[#allocation35_spill] sm:$0xff] }
  0xb7   : > { %5775 = vmatmul.mubr.f32.gmra.mxu0 %v6956_v53  ;;  %5825 = vmatmul.mubr.f32.gmra.mxu1 %v9843_v32  ;;  %v9856_v53 = vld [vmem:[#allocation40_spill] sm:$0xff] }
  0xb8   : > { %5857 = vmatprep.subr.mxu0 %v9844_v42  ;;  %5905 = vmatprep.subr.mxu1 %v6669_v5 }
  0xb9   : > { %5858 = vmatpush3.msra.mxu0 %v9844_v42  ;;  %5906 = vmatpush3.msra.mxu1 %v6669_v5  ;;  %v9849_v5 = vld [vmem:[#allocation34_spill] sm:$0xff] }
  0xba   : > { %5859 = vmatprep.subr.mxu0 %v9845_v3  ;;  %5907 = vmatprep.subr.mxu1 %v6680_v9 }
  0xbb   : > { %5777 = vmatprep.mubr.f32.mxu0 %v6971_v63  ;;  %5827 = vmatprep.mubr.f32.mxu1 %v9846_v4 }
  0xbc   : > { %5860 = vmatpush3.msra.mxu0 %v9845_v3  ;;  %5908 = vmatpush3.msra.mxu1 %v6680_v9  ;;  %v9850_v9 = vand.u32 4294901760, %v6947_v39  ;;  %v9855_v39 = vand.u32 4294901760, %v6979_v15 }
  0xbd   : > { %5778 = vmatmul.mubr.f32.gmra.mxu0 %v6979_v15  ;;  %5828 = vmatmul.mubr.f32.gmra.mxu1 %v9847_v57 }
  0xbe   : > { %5861 = vmatprep.subr.mxu0 %v9848_v60  ;;  %5909 = vmatprep.subr.mxu1 %v6682_v10 }
  0xbf   : > { %5862 = vmatpush3.msra.mxu0 %v9848_v60  ;;  %5910 = vmatpush3.msra.mxu1 %v6682_v10  ;;  %v9853_v10 = vld [vmem:[#allocation37_spill] sm:$0xff] }
  0xc0   : > { %5863 = vmatprep.subr.mxu0 %v9849_v5  ;;  %5911 = vmatprep.subr.mxu1 %v6684_v11 }
  0xc1   : > { %5780 = vmatprep.mubr.f32.mxu0 %v6995_v31  ;;  %5830 = vmatprep.mubr.f32.mxu1 %v9850_v9 }
  0xc2   : > { %5864 = vmatpush3.msra.mxu0 %v9849_v5  ;;  %5912 = vmatpush3.msra.mxu1 %v6684_v11  ;;  %v9854_v11 = vand.u32 4294901760, %v6971_v63  ;;  %v9859_v63 = vld [vmem:[#allocation42_spill] sm:$0xff] }
  0xc3   : > { %5781 = vmatmul.mubr.f32.gmra.mxu0 %v7005_v6  ;;  %5831 = vmatmul.mubr.f32.gmra.mxu1 %v9851_v28 }
  0xc4   : > { %5865 = vmatprep.subr.mxu0 %v9852_v55  ;;  %5913 = vmatprep.subr.mxu1 %v6699_v16 }
  0xc5   : > { %5866 = vmatpush3.msra.mxu0 %v9852_v55  ;;  %5914 = vmatpush3.msra.mxu1 %v6699_v16  ;;  %v9857_v16 = vld [vmem:[#allocation41_spill] sm:$0xff] }
  0xc6   : > { %5867 = vmatprep.subr.mxu0 %v9853_v10  ;;  %5915 = vmatprep.subr.mxu1 %v6724_v24 }
  0xc7   : > { %5783 = vmatprep.mubr.f32.mxu0 %v7023_v25  ;;  %5833 = vmatprep.mubr.f32.mxu1 %v9854_v11 }
  0xc8   : > { %5868 = vmatpush3.msra.mxu0 %v9853_v10  ;;  %5916 = vmatpush3.msra.mxu1 %v6724_v24  ;;  %v9858_v24 = vand.u32 4294901760, %v6995_v31 }
  0xc9   : > { %5784 = vmatmul.mubr.f32.gmra.mxu0 %v7033_v14  ;;  %5834 = vmatmul.mubr.f32.gmra.mxu1 %v9855_v39 }
  0xca   : > { %5869 = vmatprep.subr.mxu0 %v9856_v53  ;;  %5917 = vmatprep.subr.mxu1 %v6733_v27 }
  0xcb   : > { %5870 = vmatpush3.msra.mxu0 %v9856_v53  ;;  %5918 = vmatpush3.msra.mxu1 %v6733_v27  ;;  %v7367_v53 = vld [vmem:[%s9645_s3] ss:$0 sm:$0xff] }
  0xcc   : > { %5871 = vmatprep.subr.mxu0 %v9857_v16  ;;  %5919 = vmatprep.subr.mxu1 %v6752_v34 }
  0xcd   : > { %5786 = vmatprep.mubr.f32.mxu0 %v7051_v49  ;;  %5836 = vmatprep.mubr.f32.mxu1 %v9858_v24 }
  0xce   : > { %5872 = vmatpush3.msra.mxu0 %v9857_v16  ;;  %5920 = vmatpush3.msra.mxu1 %v6752_v34 }
  0xcf   : > { %5787 = vmatmul.mubr.f32.gmra.mxu0 %v7061_v19  ;;  %5837 = vmatmul.mubr.f32.gmra.mxu1 %v643_v50 }
  0xd0   : > { %5873 = vmatprep.subr.mxu0 %v9859_v63  ;;  %5921 = vmatprep.subr.mxu1 %v6776_v45 }
  0xd1   : > { %5874 = vmatpush3.msra.mxu0 %v9859_v63  ;;  %5922 = vmatpush3.msra.mxu1 %v6776_v45 }
  0xd2   : > { %5875 = vmatprep.subr.mxu0 %v6932_v23  ;;  %5923 = vmatprep.subr.mxu1 %v6782_v48 }
  0xd3   : > { %5839 = vmatprep.mubr.f32.mxu1 %v653_v22  ;;  %5876 = vmatpush3.msra.mxu0 %v6932_v23 }
  0xd4   : > { %5877 = vmatprep.mubr.f32.mxu0 %v6799_v56  ;;  %5924 = vmatpush3.msra.mxu1 %v6782_v48 }
  0xd5   : > { %5840 = vmatmul.mubr.f32.gmra.mxu1 %v663_v17  ;;  %5878 = vmatmul.mubr.f32.vlgmr.msra.gmra.mxu0 %v6811_v61 }
  0xd6   : > { %5925 = vmatprep.subr.mxu1 %v6814_v62  ;;  %5842 = vmatprep.mubr.f32.mxu1 %v673_v8 }
  0xd7   : > { %5926 = vmatpush3.msra.mxu1 %v6814_v62  ;;  %5880 = vmatprep.mubr.f32.mxu0 %v6846_v35 }
  0xd8   : > { %5927 = vmatprep.subr.mxu1 %v6829_v12 }
  0xd9   : > { %5928 = vmatpush3.msra.mxu1 %v6829_v12  ;;  %5881 = vmatmul.mubr.f32.gmra.mxu0 %v6860_v44 }
  0xda   : > { %5843 = vmatmul.mubr.f32.gmra.mxu1 %v683_v33  ;;  %5929 = vmatprep.subr.mxu1 %v9834_v51 }
  0xdb   : > { %5930 = vmatpush3.msra.mxu1 %v9834_v51  ;;  %5883 = vmatprep.mubr.f32.mxu0 %v6883_v2 }
  0xdc   : > { %5931 = vmatprep.subr.mxu1 %v9836_v21  ;;  %5933 = vmatprep.mubr.f32.mxu1 %v6799_v56 }
  0xdd   : > { %5932 = vmatpush3.msra.mxu1 %v9836_v21  ;;  %5884 = vmatmul.mubr.f32.gmra.mxu0 %v6898_v58 }
  0xde   : > { %5934 = vmatmul.mubr.f32.vlgmr.msra.gmra.mxu1 %v6811_v61  ;;  %5886 = vmatprep.mubr.f32.mxu0 %v6925_v26 }
  0xdf   : > { %5936 = vmatprep.mubr.f32.mxu1 %v6846_v35 }
  0xe1   : > { %5887 = vmatmul.mubr.f32.gmra.mxu0 %v6938_v30 }
  0xe2   : > { %5937 = vmatmul.mubr.f32.gmra.mxu1 %v6860_v44  ;;  %5889 = vmatprep.mubr.f32.mxu0 %v6958_v41 }
  0xe3   : > { %5939 = vmatprep.mubr.f32.mxu1 %v6883_v2 }
  0xe5   : > { %5890 = vmatmul.mubr.f32.gmra.mxu0 %v6966_v0 }
  0xe6   : > { %5940 = vmatmul.mubr.f32.gmra.mxu1 %v6898_v58  ;;  %5892 = vmatprep.mubr.f32.mxu0 %v6981_v40 }
  0xe7   : > { %5942 = vmatprep.mubr.f32.mxu1 %v6925_v26 }
  0xe9   : > { %5893 = vmatmul.mubr.f32.gmra.mxu0 %v6988_v18 }
  0xea   : > { %5943 = vmatmul.mubr.f32.gmra.mxu1 %v6938_v30  ;;  %5895 = vmatprep.mubr.f32.mxu0 %v7007_v36 }
  0xeb   : > { %5945 = vmatprep.mubr.f32.mxu1 %v6958_v41 }
  0xed   : > { %5896 = vmatmul.mubr.f32.gmra.mxu0 %v7016_v1 }
  0xee   : > { %5946 = vmatmul.mubr.f32.gmra.mxu1 %v6966_v0  ;;  %5898 = vmatprep.mubr.f32.mxu0 %v7035_v47 }
  0xef   : > { %5948 = vmatprep.mubr.f32.mxu1 %v6981_v40 }
  0xf1   : > { %5899 = vmatmul.mubr.f32.gmra.mxu0 %v7044_v20 }
  0xf2   : > { %5949 = vmatmul.mubr.f32.gmra.mxu1 %v6988_v18 }
  0xf3   : > { %5951 = vmatprep.mubr.f32.mxu1 %v7007_v36 }
  0xf6   : > { %5952 = vmatmul.mubr.f32.gmra.mxu1 %v7016_v1 }
  0xf7   : > { %5954 = vmatprep.mubr.f32.mxu1 %v7035_v47 }
  0xfa   : > { %5955 = vmatmul.mubr.f32.gmra.mxu1 %v7044_v20 }
 0x136   : > { %v5655_v23 = vpop.f32.mrf.mxu0 }
 0x137   : > { %v548_v16 = vadd.f32 %v5655_v23, %v7367_v53 }
 0x138   : > { %v7264_v26 = vpop.f32.mrf.mxu0 }
 0x13c   : > { %v7266_v27 = vpop.f32.mrf.mxu0 }
 0x13e   : > { %v7268_v34 = vpop.f32.mrf.mxu0 }
 0x13f   : > { %v558_v23 = vadd.f32 %v7367_v53, %v7268_v34 }
 0x141   : > { %v7270_v45 = vpop.f32.mrf.mxu0  ;;  %v7272_v48 = vpop.f32.mrf.mxu1 }
 0x143   : > { %v7274_v56 = vpop.f32.mrf.mxu0  ;;  %v838_v58 = vpop.f32.mrf.mxu1 }
 0x147   : > { %v7276_v61 = vpop.f32.mrf.mxu0  ;;  %v7278_v62 = vpop.f32.mrf.mxu1 }
 0x148   : > { %v608_v34 = vadd.f32 %v7276_v61, %v7367_v53 }
 0x149   : > { %v7280_v2 = vpop.f32.mrf.mxu0  ;;  %v7282_v12 = vpop.f32.mrf.mxu1 }
 0x14d   : > { %v7284_v30 = vpop.f32.mrf.mxu0  ;;  %v7286_v35 = vpop.f32.mrf.mxu1 }
 0x14f   : > { %v7288_v44 = vpop.f32.mrf.mxu0  ;;  %v7290_v41 = vpop.f32.mrf.mxu1 }
 0x153   : > { %v7292_v47 = vpop.f32.mrf.mxu0  ;;  %v7294_v0 = vpop.f32.mrf.mxu1 }
 0x155   : > { %v7296_v25 = vpop.f32.mrf.mxu0  ;;  %v7298_v15 = vpop.f32.mrf.mxu1 }
 0x159   : > { %v7300_v40 = vpop.f32.mrf.mxu0  ;;  %v7302_v18 = vpop.f32.mrf.mxu1 }
 0x15b   : > { %v7304_v31 = vpop.f32.mrf.mxu0  ;;  %v7306_v6 = vpop.f32.mrf.mxu1 }
 0x15f   : > { %v7308_v36 = vpop.f32.mrf.mxu0  ;;  %v7310_v49 = vpop.f32.mrf.mxu1 }
 0x161   : > { %v7312_v1 = vpop.f32.mrf.mxu0  ;;  %v7314_v50 = vpop.f32.mrf.mxu1 }
 0x165   : > { %v7316_v14 = vpop.f32.mrf.mxu1  ;;  %v5767_v22 = vpop.f32.mrf.mxu0 }
 0x167   : > { %v7318_v20 = vpop.f32.mrf.mxu1  ;;  %v1032_v17 = vpop.f32.mrf.mxu0 }
 0x168   : > { %9860 = vst [vmem:[#allocation26_spill] sm:$0xff] %v7318_v20 }
 0x16b   : > { %v7320_v19 = vpop.f32.mrf.mxu1  ;;  %v5770_v8 = vpop.f32.mrf.mxu0 }
 0x16c   : > { %9861 = vst [vmem:[#allocation39_spill] sm:$0xff] %v7320_v19 }
 0x16d   : > { %v7322_v33 = vpop.f32.mrf.mxu1  ;;  %v1046_v29 = vpop.f32.mrf.mxu0 }
 0x16e   : > { %9862 = vst [vmem:[#allocation36_spill] sm:$0xff] %v7322_v33  ;;  %v538_v33 = vadd.f32 %v7367_v53, %v7264_v26  ;;  %v588_v26 = vadd.f32 %v7270_v45, %v7367_v53 }
 0x171   : > { %v7324_v7 = vpop.f32.mrf.mxu0  ;;  %v5823_v37 = vpop.f32.mrf.mxu1 }
 0x173   : > { %v7326_v51 = vpop.f32.mrf.mxu0  ;;  %v1226_v59 = vpop.f32.mrf.mxu1 }
 0x177   : > { %v7328_v21 = vpop.f32.mrf.mxu0  ;;  %v5826_v38 = vpop.f32.mrf.mxu1 }
 0x179   : > { %v7330_v46 = vpop.f32.mrf.mxu0  ;;  %v1242_v43 = vpop.f32.mrf.mxu1 }
 0x17d   : > { %v7332_v52 = vpop.f32.mrf.mxu0  ;;  %v7334_v54 = vpop.f32.mrf.mxu1 }
 0x17f   : > { %v7336_v13 = vpop.f32.mrf.mxu0  ;;  %v7338_v32 = vpop.f32.mrf.mxu1 }
 0x183   : > { %v7340_v42 = vpop.f32.mrf.mxu0  ;;  %v7342_v3 = vpop.f32.mrf.mxu1 }
 0x184   : > { %9863 = vst [vmem:[#allocation27_spill] sm:$0xff] %v7340_v42 }
 0x185   : > { %v7344_v4 = vpop.f32.mrf.mxu0  ;;  %v7346_v57 = vpop.f32.mrf.mxu1 }
 0x186   : > { %9864 = vst [vmem:[#allocation38_spill] sm:$0xff] %v7344_v4 }
 0x189   : > { %v7348_v60 = vpop.f32.mrf.mxu0  ;;  %v7350_v5 = vpop.f32.mrf.mxu1 }
 0x18a   : > { %9865 = vst [vmem:[#allocation28_spill] sm:$0xff] %v7348_v60  ;;  %v845_v60 = vadd.f32 %v7272_v48, %v548_v16  ;;  %v578_v16 = vadd.f32 %v7367_v53, %v7274_v56  ;;  %v618_v56 = vadd.f32 %v7367_v53, %v7288_v44 }
 0x18b   : > { %v7352_v9 = vpop.f32.mrf.mxu0  ;;  %v7354_v28 = vpop.f32.mrf.mxu1 }
 0x18c   : > { %9866 = vst [vmem:[#allocation29_spill] sm:$0xff] %v7352_v9  ;;  %v863_v61 = vadd.f32 %v7290_v41, %v578_v16  ;;  %v638_v41 = vadd.f32 %v7367_v53, %v7296_v25 }
 0x18f   : > { %v7356_v55 = vpop.f32.mrf.mxu0  ;;  %v7358_v10 = vpop.f32.mrf.mxu1 }
 0x190   : > { %9867 = vst [vmem:[#allocation30_spill] sm:$0xff] %v7356_v55  ;;  %9868 = vst [vmem:[#allocation31_spill] sm:$0xff] %v7358_v10 }
 0x191   : > { %v7360_v11 = vpop.f32.mrf.mxu0  ;;  %v7362_v39 = vpop.f32.mrf.mxu1 }
 0x192   : > { %9869 = vst [vmem:[#allocation32_spill] sm:$0xff] %v7360_v11  ;;  %9870 = vst [vmem:[#allocation33_spill] sm:$0xff] %v7362_v39  ;;  %v568_v11 = vadd.f32 %v7266_v27, %v7367_v53  ;;  %v839_v39 = vadd.f32 %v838_v58, %v538_v33  ;;  %v851_v27 = vadd.f32 %v7282_v12, %v558_v23 }
 0x193   : > { %v628_v12 = vadd.f32 %v7284_v30, %v7367_v53  ;;  %v881_v30 = vadd.f32 %v7294_v0, %v608_v34  ;;  %v887_v34 = vadd.f32 %v7306_v6, %v618_v56 }
 0x194   : > { %v1033_v20 = vadd.f32 %v1032_v17, %v839_v39  ;;  %v857_v42 = vadd.f32 %v7278_v62, %v568_v11 }
 0x195   : > { %v7370_v24 = vpop.f32.mrf.mxu1  ;;  %v5879_v63 = vpop.f32.mrf.mxu0 }
 0x196   : > { %9871 = vst [vmem:[#allocation34_spill] sm:$0xff] %v7370_v24  ;;  %v1040_v24 = vadd.f32 %v5767_v22, %v845_v60  ;;  %v1227_v58 = vadd.f32 %v1226_v59, %v1033_v20  ;;  %v598_v22 = vadd.f32 %v7367_v53, %v7280_v2  ;;  %v1054_v45 = vadd.f32 %v5770_v8, %v857_v42 }
 0x197   : > { %v7374_v55 = vpop.f32.mrf.mxu1  ;;  %v1465_v9 = vpop.f32.mrf.mxu0  ;;  %v1047_v60 = vadd.f32 %v1046_v29, %v851_v27  ;;  %v869_v20 = vadd.f32 %v7286_v35, %v588_v26  ;;  %v648_v42 = vadd.f32 %v7292_v47, %v7367_v53  ;;  %v668_v47 = vadd.f32 %v7300_v40, %v7367_v53 }
 0x198   : > { %9872 = vst [vmem:[#allocation35_spill] sm:$0xff] %v7374_v55  ;;  %v1235_v48 = vadd.f32 %v5823_v37, %v1040_v24  ;;  %v1466_v62 = vadd.f32 %v1465_v9, %v1227_v58  ;;  %v1251_v59 = vadd.f32 %v5826_v38, %v1054_v45  ;;  %v1061_v9 = vadd.f32 %v7326_v51, %v863_v61 }
 0x199   : > { %v5882_v10 = vpop.f32.mrf.mxu0  ;;  %v1243_v2 = vadd.f32 %v1242_v43, %v1047_v60  ;;  %v1068_v35 = vadd.f32 %v7324_v7, %v869_v20  ;;  %v875_v26 = vadd.f32 %v7298_v15, %v598_v22  ;;  %v893_v15 = vadd.f32 %v7302_v18, %v628_v12 }
 0x19a   : > { %v7379_v19 = vpop.f32.mrf.mxu1  ;;  %v1472_v39 = vadd.f32 %v5879_v63, %v1235_v48  ;;  %v1484_v38 = vadd.f32 %v5882_v10, %v1251_v59  ;;  %v1259_v7 = vadd.f32 %v7338_v32, %v1061_v9  ;;  %v1082_v58 = vadd.f32 %v7328_v21, %v881_v30 }
 0x19b   : > { %v1477_v4 = vpop.f32.mrf.mxu0  ;;  %v1267_v0 = vadd.f32 %v7334_v54, %v1068_v35  ;;  %v1075_v40 = vadd.f32 %v7330_v46, %v875_v26  ;;  %v658_v32 = vadd.f32 %v7367_v53, %v7304_v31  ;;  %v688_v18 = vadd.f32 %v7308_v36, %v7367_v53 }
 0x19c   : > { %v7385_v55 = vpop.f32.mrf.mxu1  ;;  %v1478_v43 = vadd.f32 %v1477_v4, %v1243_v2  ;;  %v1283_v21 = vadd.f32 %v7342_v3, %v1082_v58  ;;  %v905_v12 = vadd.f32 %v7310_v49, %v648_v42  ;;  %v1096_v36 = vadd.f32 %v7332_v52, %v893_v15 }
 0x19d   : > { %v5885_v33 = vpop.f32.mrf.mxu0  ;;  %v1275_v46 = vadd.f32 %v7346_v57, %v1075_v40  ;;  %v1089_v3 = vadd.f32 %v7336_v13, %v887_v34  ;;  %v678_v20 = vadd.f32 %v7367_v53, %v7312_v1  ;;  %v899_v2 = vadd.f32 %v7314_v50, %v638_v41  ;;  %v9873_v50 = vld [vmem:[#allocation27_spill] sm:$0xff] }
 0x19e   : > { %v5935_v17 = vpop.f32.mrf.mxu1  ;;  %v1496_v54 = vadd.f32 %v5885_v33, %v1267_v0  ;;  %v1299_v49 = vadd.f32 %v7350_v5, %v1096_v36  ;;  %v917_v9 = vadd.f32 %v7316_v14, %v668_v47  ;;  %v9874_v5 = vld [vmem:[#allocation38_spill] sm:$0xff]  ;;  %v9876_v0 = vld [vmem:[#allocation39_spill] sm:$0xff] }
 0x19f   : > { %v1489_v11 = vpop.f32.mrf.mxu0  ;;  %v7401_v24 = vadd.f32 %v5935_v17, %v1472_v39  ;;  %v1291_v52 = vadd.f32 %v7354_v28, %v1089_v3  ;;  %v1103_v41 = vadd.f32 %v9874_v5, %v899_v2  ;;  %v9883_v3 = vld [vmem:[#allocation35_spill] sm:$0xff] }
 0x1a0   : > { %v1642_v37 = vpop.f32.mrf.mxu1  ;;  %v1490_v22 = vadd.f32 %v1489_v11, %v1259_v7  ;;  %v929_v7 = vadd.f32 %v9876_v0, %v688_v18 }
 0x1a1   : > { %v7403_v8 = vadd.f32 %v1642_v37, %v1466_v62  ;;  %v5888_v29 = vpop.f32.mrf.mxu0  ;;  %v1737_v10 = vmul.f32 %v7401_v24, %v7401_v24 }
 0x1a2   : > { %v5938_v44 = vpop.f32.mrf.mxu1  ;;  %v1508_v56 = vadd.f32 %v5888_v29, %v1283_v21  ;;  %v2175_v21 = vld [vmem:[%s9647_s5] sm:$0xf] }
 0x1a3   : > { %v1501_v63 = vpop.f32.mrf.mxu0  ;;  %v1736_v23 = vmul.f32 %v7403_v8, %v7403_v8  ;;  %v7419_v27 = vadd.f32 %v5938_v44, %v1484_v38  ;;  %v1756_v62 = vsel %vm1752_vm0, %v1737_v10, 0.0  ;;  %v1110_v44 = vadd.f32 %v9873_v50, %v905_v12  ;;  %v9875_v38 = vld [vmem:[#allocation26_spill] sm:$0xff]  ;;  %v9878_v10 = vld [vmem:[#allocation33_spill] sm:$0xff] }
 0x1a4   : > { %v1654_v51 = vpop.f32.mrf.mxu1  ;;  %v1502_v61 = vadd.f32 %v1501_v63, %v1275_v46  ;;  %v1307_v14 = vadd.f32 %v9878_v10, %v1103_v41  ;;  %v9881_v46 = vld [vmem:[#allocation36_spill] sm:$0xff]  ;;  %v9882_v12 = vld [vmem:[#allocation34_spill] sm:$0xff] }
 0x1a5   : > { %v7421_v48 = vadd.f32 %v1654_v51, %v1478_v43  ;;  %v5891_v25 = vpop.f32.mrf.mxu0  ;;  %v1753_v4 = vsel %vm1752_vm0, %v1736_v23, 0.0  ;;  %v1739_v11 = vmul.f32 %v7419_v27, %v7419_v27  ;;  %v911_v43 = vadd.f32 %v9875_v38, %v658_v32  ;;  %v9877_v51 = vld [vmem:[#allocation31_spill] sm:$0xff]  ;;  %v9879_v32 = vld [vmem:[#allocation28_spill] sm:$0xff] }
 0x1a6   : > { %v5941_v16 = vpop.f32.mrf.mxu1  ;;  %1754 = vadd.xlane.f32.xlu0 %v1753_v4  ;;  %v1520_v63 = vadd.f32 %v5891_v25, %v1299_v49  ;;  %v1315_v4 = vadd.f32 %v9877_v51, %v1110_v44  ;;  %v1124_v34 = vadd.f32 %v9879_v32, %v917_v9 }
 0x1a7   : > { %v1513_v17 = vpop.f32.mrf.mxu0  ;;  %v1738_v45 = vmul.f32 %v7421_v48, %v7421_v48  ;;  %v7438_v33 = vadd.f32 %v5941_v16, %v1496_v54  ;;  %v1762_v53 = vsel %vm1752_vm0, %v1739_v11, 0.0  ;;  %v2226_v11 = vsel %vm2224_vm1, %v2175_v21, 0 }
 0x1a8   : > { %v1666_v60 = vpop.f32.mrf.mxu1  ;;  %v1514_v23 = vadd.f32 %v1513_v17, %v1291_v52  ;;  %v1331_v36 = vadd.f32 %v9882_v12, %v1124_v34  ;;  %v9884_v52 = vld [vmem:[#allocation30_spill] sm:$0xff] }
 0x1a9   : > { %v7440_v39 = vadd.f32 %v1666_v60, %v1490_v22  ;;  %v5894_v31 = vpop.f32.mrf.mxu0  ;;  %v1759_v6 = vsel %vm1752_vm0, %v1738_v45, 0.0  ;;  %v1741_v13 = vmul.f32 %v7438_v33, %v7438_v33  ;;  %v9880_v22 = vld [vmem:[#allocation29_spill] sm:$0xff]  ;;  %v923_v60 = vadd.f32 %v9881_v46, %v678_v20 }
 0x1aa   : > { %v5944_v57 = vpop.f32.mrf.mxu1  ;;  %1760 = vadd.xlane.f32.xlu1 %v1759_v6  ;;  %1757 = vadd.xlane.f32.xlu0 %v1756_v62  ;;  %v1117_v17 = vadd.f32 %v9880_v22, %v911_v43  ;;  %v1532_v45 = vadd.f32 %v5894_v31, %v1315_v4 }
 0x1ab   : > { %v1525_v37 = vpop.f32.mrf.mxu0  ;;  %v1740_v59 = vmul.f32 %v7440_v39, %v7440_v39  ;;  %v7458_v30 = vadd.f32 %v5944_v57, %v1508_v56  ;;  %v1768_v58 = vsel %vm1752_vm0, %v1741_v13, 0.0  ;;  %v9885_v13 = vld [vmem:[#allocation32_spill] sm:$0xff] }
 0x1ac   : > { %v1678_v42 = vpop.f32.mrf.mxu1  ;;  %v1526_v6 = vadd.f32 %v1525_v37, %v1307_v14  ;;  %v1323_v31 = vadd.f32 %v9883_v3, %v1117_v17 }
 0x1ad   : > { %v7460_v35 = vadd.f32 %v1678_v42, %v1502_v61  ;;  %v5897_v1 = vpop.f32.mrf.mxu0  ;;  %v1765_v29 = vsel %vm1752_vm0, %v1740_v59, 0.0  ;;  %v1743_v16 = vmul.f32 %v7458_v30, %v7458_v30  ;;  %v7494_v59 = vand.u32 4294901760, %v2226_v11 }
 0x1ae   : > { %v5947_v28 = vpop.f32.mrf.mxu1  ;;  %1763 = vadd.xlane.f32.xlu1 %v1762_v53  ;;  %1766 = vadd.xlane.f32.xlu0 %v1765_v29  ;;  %v1138_v42 = vadd.f32 %v9884_v52, %v929_v7  ;;  %v1131_v53 = vadd.f32 %v9885_v13, %v923_v60  ;;  %v1544_v50 = vadd.f32 %v5897_v1, %v1331_v36 }
 0x1af   : > { %v1742_v26 = vmul.f32 %v7460_v35, %v7460_v35  ;;  %v1537_v47 = vpop.f32.mrf.mxu0  ;;  %v7474_v40 = vadd.f32 %v5947_v28, %v1520_v63  ;;  %v1774_v20 = vsel %vm1752_vm0, %v1743_v16, 0.0  ;;  %v7505_v9 = vsub.f32 %v2226_v11, %v7494_v59  ;;  %5957 = vmatprep.subr.mxu0 %v7494_v59 }
 0x1b0   : > { %v1690_v15 = vpop.f32.mrf.mxu1  ;;  %v1538_v44 = vadd.f32 %v1537_v47, %v1323_v31  ;;  %v1347_v41 = vadd.f32 %v7379_v19, %v1138_v42  ;;  %v1339_v28 = vadd.f32 %v7385_v55, %v1131_v53  ;;  %5958 = vmatpush3.msra.mxu0 %v7494_v59 }
 0x1b1   : > { %v7476_v54 = vadd.f32 %v1690_v15, %v1514_v23  ;;  %v1771_v25 = vsel %vm1752_vm0, %v1742_v26, 0.0  ;;  %v5900_v57 = vpop.f32.mrf.mxu0  ;;  %v1745_v49 = vmul.f32 %v7474_v40, %v7474_v40  ;;  %v7516_v23 = vand.u32 4294901760, %v7505_v9  ;;  %6009 = vmatprep.subr.mxu0 %v7505_v9 }
 0x1b2   : > { %v5950_v18 = vpop.f32.mrf.mxu1  ;;  %1769 = vadd.xlane.f32.xlu1 %v1768_v58  ;;  %1772 = vadd.xlane.f32.xlu0 %v1771_v25  ;;  %v1556_v51 = vadd.f32 %v5900_v57, %v1347_v41 }
 0x1b3   : > { %v1744_v62 = vmul.f32 %v7476_v54, %v7476_v54  ;;  %v7492_v56 = vadd.f32 %v5950_v18, %v1532_v45  ;;  %v1549_v38 = vpop.f32.mrf.mxu0  ;;  %v1780_v0 = vsel %vm1752_vm0, %v1745_v49, 0.0  ;;  %v2488_v7 = vsub.f32 %v7505_v9, %v7516_v23 }
 0x1b4   : > { %v1702_v61 = vpop.f32.mrf.mxu1  ;;  %v1550_v4 = vadd.f32 %v1549_v38, %v1339_v28 }
 0x1b5   : > { %v7496_v2 = vadd.f32 %v1702_v61, %v1526_v6  ;;  %v1777_v37 = vsel %vm1752_vm0, %v1744_v62, 0.0  ;;  %v1747_v63 = vmul.f32 %v7492_v56, %v7492_v56  ;;  %v2489_v15 = vand.u32 4294901760, %v2488_v7 }
 0x1b6   : > { %v5953_v29 = vpop.f32.mrf.mxu1  ;;  %1775 = vadd.xlane.f32.xlu1 %v1774_v20  ;;  %1778 = vadd.xlane.f32.xlu0 %v1777_v37 }
 0x1b7   : > { %v1746_v5 = vmul.f32 %v7496_v2, %v7496_v2  ;;  %v7518_v1 = vadd.f32 %v5953_v29, %v1544_v50  ;;  %v1786_v47 = vsel %vm1752_vm0, %v1747_v63, 0.0  ;;  %5983 = vmatprep.subr.mxu1 %v2489_v15 }
 0x1b8   : > { %v1714_v43 = vpop.f32.mrf.mxu1  ;;  %5984 = vmatpush3.msra.mxu1 %v2489_v15 }
 0x1b9   : > { %v7520_v26 = vadd.f32 %v1714_v43, %v1538_v44  ;;  %v1783_v19 = vsel %vm1752_vm0, %v1746_v5, 0.0  ;;  %v1749_v32 = vmul.f32 %v7518_v1, %v7518_v1  ;;  %6035 = vmatprep.subr.mxu1 %v7494_v59 }
 0x1ba   : > { %v5956_v55 = vpop.f32.mrf.mxu1  ;;  %1781 = vadd.xlane.f32.xlu1 %v1780_v0  ;;  %1784 = vadd.xlane.f32.xlu0 %v1783_v19 }
 0x1bb   : > { %v1748_v10 = vmul.f32 %v7520_v26, %v7520_v26  ;;  %v7530_v58 = vadd.f32 %v5956_v55, %v1556_v51  ;;  %v1792_v22 = vsel %vm1752_vm0, %v1749_v32, 0.0 }
 0x1bc   : > { %v1726_v14 = vpop.f32.mrf.mxu1 }
 0x1bd   : > { %v7532_v25 = vadd.f32 %v1726_v14, %v1550_v4  ;;  %v1789_v16 = vsel %vm1752_vm0, %v1748_v10, 0.0  ;;  %v1751_v45 = vmul.f32 %v7530_v58, %v7530_v58 }
 0x1be   : > { %1787 = vadd.xlane.f32.xlu1 %v1786_v47  ;;  %1790 = vadd.xlane.f32.xlu0 %v1789_v16 }
 0x1bf   : > { %v1750_v34 = vmul.f32 %v7532_v25, %v7532_v25  ;;  %v1798_v18 = vsel %vm1752_vm0, %v1751_v45, 0.0 }
 0x1c1   : > { %v1795_v17 = vsel %vm1752_vm0, %v1750_v34, 0.0 }
 0x1c2   : > { %1793 = vadd.xlane.f32.xlu1 %v1792_v22  ;;  %1796 = vadd.xlane.f32.xlu0 %v1795_v17  ;;  %v7588_v17 = vld [vmem:[%s9648_s6] sm:$0xff] }
 0x1c6   : > { %1799 = vadd.xlane.f32.xlu1 %v1798_v18  ;;  %v9714_v18 = vmov 0  }
 0x22f   : > { %v1755_v21 = vpop.xlane.xlu0 %1754 }
 0x230   : > { %v1801_v46 = vmax.f32 %v1755_v21, 1e-24 }
 0x232   : > { %6185 = vrsqrt.f32 %v1801_v46 }
 0x233   : > { %v1761_v60 = vpop.xlane.xlu1 %1760  ;;  %v1758_v6 = vpop.xlane.xlu0 %1757 }
 0x234   : > { %v1803_v62 = vmax.f32 %v1761_v60, 1e-24  ;;  %v1802_v11 = vmax.f32 %v1758_v6, 1e-24 }
 0x236   : > { %6187 = vrsqrt.f32 %v1803_v62 }
 0x237   : > { %6189 = vrsqrt.f32 %v1802_v11  ;;  %v1764_v12 = vpop.xlane.xlu1 %1763  ;;  %v1767_v36 = vpop.xlane.xlu0 %1766  ;;  %v7607_v11 = vld [vmem:[%s9646_s4] ss:$0 sm:$0xff] }
 0x238   : > { %v1804_v3 = vmax.f32 %v1764_v12, 1e-24  ;;  %v1805_v31 = vmax.f32 %v1767_v36, 1e-24 }
 0x23a   : > { %6191 = vrsqrt.f32 %v1804_v3 }
 0x23b   : > { %6193 = vrsqrt.f32 %v1805_v31  ;;  %v1770_v57 = vpop.xlane.xlu1 %1769  ;;  %v1773_v61 = vpop.xlane.xlu0 %1772 }
 0x23c   : > { %v1806_v20 = vmax.f32 %v1770_v57, 1e-24  ;;  %v1807_v37 = vmax.f32 %v1773_v61, 1e-24  ;;  %v3802_v61 = vcombine.high %v7588_v17, %v7588_v17 }
 0x23e   : > { %6195 = vrsqrt.f32 %v1806_v20 }
 0x23f   : > { %v6186_v49 = vpop.eup %6185  ;;  %6197 = vrsqrt.f32 %v1807_v37  ;;  %v1776_v52 = vpop.xlane.xlu1 %1775 }
 0x240   : > { %v1779_v42 = vpop.xlane.xlu0 %1778  ;;  %v1808_v13 = vmax.f32 %v1776_v52, 1e-24  ;;  %v7546_v29 = vmul.f32 %v6186_v49, %v7403_v8 }
 0x241   : > { %v1809_v53 = vmax.f32 %v1779_v42, 1e-24 }
 0x242   : > { %9886 = vst [vmem:[#allocation37_spill] sm:$0xff] %v7546_v29  ;;  %v2177_v50 = vsel %vm1752_vm0, %v7546_v29, 0  ;;  %6199 = vrsqrt.f32 %v1808_v13  ;;  %vm1849_vm2 = vcmp.gt.f32.partialorder %v7546_v29, 0.0 }
 0x243   : > { %v6188_v44 = vpop.eup %6187  ;;  %v1782_v5 = vpop.xlane.xlu1 %1781  ;;  %v7550_v28 = vand.u32 4294901760, %v2177_v50  ;;  %6201 = vrsqrt.f32 %v1809_v53  ;;  %v1897_v12 = vsel %vm1849_vm2, 1, %v9714_v18 }
 0x244   : > { %v1785_v41 = vpop.xlane.xlu0 %1784  ;;  %v6190_v38 = vpop.eup %6189  ;;  %v1810_v43 = vmax.f32 %v1782_v5, 1e-24  ;;  %v7553_v0 = vmul.f32 %v6188_v44, %v7421_v48  ;;  %v1918_v53 = vmul.u32 %v7607_v11, %v1897_v12 }
 0x245   : > { %v1811_v63 = vmax.f32 %v1785_v41, 1e-24  ;;  %v7556_v19 = vmul.f32 %v6190_v38, %v7401_v24  ;;  %5985 = vmatprep.mubr.f32.mxu1 %v7550_v28  ;;  %v7560_v8 = vsub.f32 %v2177_v50, %v7550_v28 }
 0x246   : > { %9887 = vst [vmem:[#allocation40_spill] sm:$0xff] %v7553_v0  ;;  %v2183_v55 = vsel %vm1752_vm0, %v7553_v0, 0  ;;  %6203 = vrsqrt.f32 %v1810_v43  ;;  %vm1851_vm5 = vcmp.gt.f32.partialorder %v7553_v0, 0.0 }
 0x247   : > { %9888 = vst [vmem:[#allocation41_spill] sm:$0xff] %v7556_v19  ;;  %v6192_v7 = vpop.eup %6191  ;;  %v1788_v51 = vpop.xlane.xlu1 %1787  ;;  %v2180_v48 = vsel %vm1752_vm0, %v7556_v19, 0  ;;  %v7567_v10 = vand.u32 4294901760, %v2183_v55  ;;  %v9713_v24 = vand.u32 4294901760, %v7560_v8  ;;  %6205 = vrsqrt.f32 %v1811_v63 }
 0x248   : > { %v1791_v4 = vpop.xlane.xlu0 %1790  ;;  %v6194_v14 = vpop.eup %6193  ;;  %v1812_v47 = vmax.f32 %v1788_v51, 1e-24  ;;  %v7570_v15 = vand.u32 4294901760, %v2180_v48  ;;  %v7573_v16 = vmul.f32 %v6192_v7, %v7419_v27  ;;  %vm1850_vm3 = vcmp.gt.f32.partialorder %v7556_v19, 0.0 }
 0x249   : > { %v2297_v32 = vsub.f32 %v7560_v8, %v9713_v24  ;;  %v7579_v34 = vmul.f32 %v6194_v14, %v7440_v39  ;;  %v7583_v22 = vsub.f32 %v2183_v55, %v7567_v10  ;;  %v1813_v45 = vmax.f32 %v1791_v4, 1e-24 }
 0x24a   : > { %9889 = vst [vmem:[#allocation42_spill] sm:$0xff] %v7573_v16  ;;  %v7591_v27 = vsub.f32 %v2180_v48, %v7570_v15  ;;  %5986 = vmatmul.mubr.f32.vlgmr.msra.gmra.mxu1 %v7570_v15  ;;  %v2186_v39 = vsel %vm1752_vm0, %v7573_v16, 0  ;;  %v1898_v21 = vsel %vm1850_vm3, 1, %v9714_v18  ;;  %6207 = vrsqrt.f32 %v1812_v47 }
 0x24b   : > { %9890 = vst [vmem:[#allocation27_spill] sm:$0xff] %v7579_v34  ;;  %v6196_v46 = vpop.eup %6195  ;;  %5988 = vmatprep.mubr.f32.mxu1 %v7567_v10  ;;  %v2298_v60 = vand.u32 4294901760, %v2297_v32  ;;  %v7600_v6 = vand.u32 4294901760, %v2186_v39  ;;  %v2189_v62 = vsel %vm1752_vm0, %v7579_v34, 0  ;;  %6036 = vmatpush3.msra.mxu1 %v7494_v59  ;;  %v1794_v3 = vpop.xlane.xlu1 %1793  ;;  %v1919_v57 = vmul.u32 %v7607_v11, %v1898_v21 }
 0x24c   : > { %v6198_v36 = vpop.eup %6197  ;;  %v7613_v31 = vand.u32 4294901760, %v2189_v62  ;;  %6087 = vmatprep.subr.mxu1 %v7494_v59  ;;  %v1797_v20 = vpop.xlane.xlu0 %1796  ;;  %v9712_v37 = vand.u32 4294901760, %v7591_v27  ;;  %v7621_v49 = vmul.f32 %v6196_v46, %v7438_v33  ;;  %v9709_v52 = vand.u32 4294901760, %v7583_v22 }
 0x24d   : > { %5959 = vmatprep.mubr.f32.mxu0 %v2298_v60  ;;  %6209 = vrsqrt.f32 %v1813_v45  ;;  %v1947_v42 = vsel %vm1752_vm0, %v1919_v57, 0  ;;  %v7627_v13 = vmul.f32 %v6198_v36, %v7460_v35  ;;  %v1814_v50 = vmax.f32 %v1794_v3, 1e-24 }
 0x24e   : > { %9891 = vst [vmem:[#allocation38_spill] sm:$0xff] %v7621_v49  ;;  %5989 = vmatmul.mubr.f32.gmra.mxu1 %v7600_v6  ;;  %v1949_v44 = vshrl.u32 %v1947_v42, 16  ;;  %v1948_v5 = vand.u32 65535, %v1947_v42  ;;  %v2307_v33 = vsub.f32 %v7591_v27, %v9712_v37  ;;  %v1815_v38 = vmax.f32 %v1797_v20, 1e-24 }
 0x24f   : > { %9892 = vst [vmem:[#allocation26_spill] sm:$0xff] %v7627_v13  ;;  %5991 = vmatprep.mubr.f32.mxu1 %v7613_v31  ;;  %v6200_v41 = vpop.eup %6199  ;;  %v2192_v43 = vsel %vm1752_vm0, %v7621_v49, 0  ;;  %v2317_v35 = vsub.f32 %v7583_v22, %v9709_v52  ;;  %v2195_v63 = vsel %vm1752_vm0, %v7627_v13, 0  ;;  %v1934_v32 = vsel %vm1752_vm0, %v1918_v53, 0  ;;  %v1800_v21 = vpop.xlane.xlu1 %1799 }
 0x250   : > { %v6202_v55 = vpop.eup %6201  ;;  %v1951_v7 = vcvt.s32.f32 %v1949_v44  ;;  %v1950_v51 = vcvt.s32.f32 %v1948_v5  ;;  %v2308_v4 = vand.u32 4294901760, %v2307_v33  ;;  %v7641_v48 = vand.u32 4294901760, %v2192_v43 }
 0x251   : > { %v2318_v14 = vand.u32 4294901760, %v2317_v35  ;;  %v7643_v47 = vand.u32 4294901760, %v2195_v63  ;;  %v7647_v45 = vsel %vm2224_vm1, %v3802_v61, 0  ;;  %6211 = vrsqrt.f32 %v1814_v50 }
 0x252   : > { %1954 = vadd.xlane.f32.xlu1 %v1951_v7  ;;  %1952 = vadd.xlane.f32.xlu0 %v1950_v51  ;;  %v1936_v46 = vshrl.u32 %v1934_v32, 16  ;;  %v1935_v60 = vand.u32 65535, %v1934_v32  ;;  %v7650_v12 = vsub.f32 %v2186_v39, %v7600_v6  ;;  %6213 = vrsqrt.f32 %v1815_v38 }
 0x253   : > { %v6204_v36 = vpop.eup %6203  ;;  %5960 = vmatmul.mubr.f32.vlgmr.msra.gmra.mxu0 %v2308_v4  ;;  %5992 = vmatmul.mubr.f32.gmra.mxu1 %v7641_v48  ;;  %v7654_v3 = vmul.f32 %v6200_v41, %v7458_v30  ;;  %v7657_v57 = vsub.f32 %v2189_v62, %v7613_v31  ;;  %v7660_v61 = vmul.f32 %v6202_v55, %v7476_v54  ;;  %vm1852_vm4 = vcmp.gt.f32.partialorder %v7573_v16, 0.0 }
 0x254   : > { %v6206_v20 = vpop.eup %6205  ;;  %5962 = vmatprep.mubr.f32.mxu0 %v2318_v14  ;;  %5994 = vmatprep.mubr.f32.mxu1 %v7643_v47  ;;  %v1938_v39 = vcvt.s32.f32 %v1936_v46  ;;  %v1937_v42 = vcvt.s32.f32 %v1935_v60  ;;  %v9707_v53 = vand.u32 4294901760, %v7650_v12  ;;  %v1816_v50 = vmax.f32 %v1800_v21, 1e-24 }
 0x255   : > { %9893 = vst [vmem:[#allocation39_spill] sm:$0xff] %v7654_v3  ;;  %9894 = vst [vmem:[#allocation31_spill] sm:$0xff] %v7660_v61  ;;  %6010 = vmatpush3.msra.mxu0 %v7505_v9  ;;  %v2198_v30 = vsel %vm1752_vm0, %v7654_v3, 0  ;;  %v9706_v62 = vand.u32 4294901760, %v7657_v57  ;;  %v2201_v54 = vsel %vm1752_vm0, %v7660_v61, 0  ;;  %v1900_v41 = vsel %vm1852_vm4, 1, %v9714_v18 }
 0x256   : > { %1941 = vadd.xlane.f32.xlu1 %v1938_v39  ;;  %1939 = vadd.xlane.f32.xlu0 %v1937_v42  ;;  %v2327_v44 = vsub.f32 %v7650_v12, %v9707_v53  ;;  %v7674_v5 = vand.u32 4294901760, %v2198_v30  ;;  %v7676_v33 = vand.u32 4294901760, %v2201_v54  ;;  %v7686_v38 = vsub.f32 %v2192_v43, %v7641_v48 }
 0x257   : > { %v2337_v9 = vsub.f32 %v7657_v57, %v9706_v62  ;;  %v7689_v35 = vmul.f32 %v6204_v36, %v7474_v40  ;;  %6061 = vmatprep.subr.mxu0 %v7516_v23  ;;  %v1921_v7 = vmul.u32 %v7607_v11, %v1900_v41  ;;  %v7695_v51 = vsub.f32 %v2195_v63, %v7643_v47  ;;  %v6208_v14 = vpop.eup %6207 }
 0x258   : > { %v2328_v55 = vand.u32 4294901760, %v2327_v44  ;;  %5995 = vmatmul.mubr.f32.gmra.mxu1 %v7674_v5  ;;  %v7698_v4 = vmul.f32 %v6206_v20, %v7496_v2  ;;  %6215 = vrsqrt.f32 %v1816_v50  ;;  %v9704_v40 = vand.u32 4294901760, %v7686_v38 }
 0x259   : > { %9895 = vst [vmem:[#allocation33_spill] sm:$0xff] %v7689_v35  ;;  %v2338_v43 = vand.u32 4294901760, %v2337_v9  ;;  %5997 = vmatprep.mubr.f32.mxu1 %v7676_v33  ;;  %v2204_v32 = vsel %vm1752_vm0, %v7689_v35, 0  ;;  %v1973_v46 = vsel %vm1752_vm0, %v1921_v7, 0  ;;  %v9705_v63 = vand.u32 4294901760, %v7695_v51 }
 0x25a   : > { %9896 = vst [vmem:[#allocation28_spill] sm:$0xff] %v7698_v4  ;;  %v6210_v21 = vpop.eup %6209  ;;  %5963 = vmatmul.mubr.f32.gmra.mxu0 %v2328_v55  ;;  %v7705_v60 = vand.u32 4294901760, %v2204_v32  ;;  %v2207_v2 = vsel %vm1752_vm0, %v7698_v4, 0  ;;  %v1975_v36 = vshrl.u32 %v1973_v46, 16  ;;  %v1974_v20 = vand.u32 65535, %v1973_v46 }
 0x25b   : > { %5965 = vmatprep.mubr.f32.mxu0 %v2338_v43  ;;  %v2347_v39 = vsub.f32 %v7686_v38, %v9704_v40  ;;  %v7713_v42 = vand.u32 4294901760, %v2207_v2  ;;  %v2357_v50 = vsub.f32 %v7695_v51, %v9705_v63  ;;  %v1899_v44 = vsel %vm1851_vm5, 1, %v9714_v18 }
 0x25c   : > { %5998 = vmatmul.mubr.f32.gmra.mxu1 %v7705_v60  ;;  %v7723_v9 = vsub.f32 %v2198_v30, %v7674_v5  ;;  %v7726_v41 = vand.u32 4294901760, %v7647_v45  ;;  %v1977_v55 = vcvt.s32.f32 %v1975_v36  ;;  %v1976_v7 = vcvt.s32.f32 %v1974_v20 }
 0x25d   : > { %v2348_v43 = vand.u32 4294901760, %v2347_v39  ;;  %6000 = vmatprep.mubr.f32.mxu1 %v7713_v42  ;;  %v1920_v46 = vmul.u32 %v7607_v11, %v1899_v44  ;;  %v2358_v40 = vand.u32 4294901760, %v2357_v50  ;;  %v7732_v62 = vmul.f32 %v6208_v14, %v7492_v56 }
 0x25e   : > { %v9708_v63 = vand.u32 4294901760, %v7723_v9  ;;  %v7735_v53 = vsub.f32 %v2201_v54, %v7676_v33  ;;  %v6212_v30 = vpop.eup %6211  ;;  %1980 = vadd.xlane.f32.xlu1 %v1977_v55  ;;  %1978 = vadd.xlane.f32.xlu0 %v1976_v7  ;;  %v7739_v20 = vmul.f32 %v6210_v21, %v7520_v26  ;;  %vm1854_vm6 = vcmp.gt.f32.partialorder %v7621_v49, 0.0 }
 0x25f   : > { %9897 = vst [vmem:[#allocation29_spill] sm:$0xff] %v7732_v62  ;;  %v1960_v36 = vsel %vm1752_vm0, %v1920_v46, 0  ;;  %v7743_v39 = vsub.f32 %v2204_v32, %v7705_v60  ;;  %v6214_v50 = vpop.eup %6213  ;;  %5966 = vmatmul.mubr.f32.gmra.mxu0 %v2348_v43  ;;  %v2210_v44 = vsel %vm1752_vm0, %v7732_v62, 0  ;;  %v7767_v52 = vsub.f32 %v7647_v45, %v7726_v41 }
 0x260   : > { %9898 = vst [vmem:[#allocation36_spill] sm:$0xff] %v7739_v20  ;;  %v1962_v56 = vshrl.u32 %v1960_v36, 16  ;;  %v1961_v14 = vand.u32 65535, %v1960_v36  ;;  %v2367_v54 = vsub.f32 %v7723_v9, %v9708_v63  ;;  %5968 = vmatprep.mubr.f32.mxu0 %v2358_v40  ;;  %v7750_v55 = vand.u32 4294901760, %v2210_v44 }
 0x261   : > { %v9710_v26 = vand.u32 4294901760, %v7735_v53  ;;  %v2213_v32 = vsel %vm1752_vm0, %v7739_v20, 0  ;;  %v1902_v40 = vsel %vm1854_vm6, 1, %v9714_v18  ;;  %v9711_v63 = vand.u32 4294901760, %v7743_v39 }
 0x262   : > { %v1964_v21 = vcvt.s32.f32 %v1962_v56  ;;  %v1963_v7 = vcvt.s32.f32 %v1961_v14  ;;  %v2368_v43 = vand.u32 4294901760, %v2367_v54  ;;  %v7755_v46 = vand.u32 4294901760, %v2213_v32  ;;  %6001 = vmatmul.mubr.f32.gmra.mxu1 %v7750_v55 }
 0x263   : > { %v2377_v36 = vsub.f32 %v7735_v53, %v9710_v26  ;;  %v1923_v56 = vmul.u32 %v7607_v11, %v1902_v40  ;;  %v7771_v14 = vmul.f32 %v6212_v30, %v7518_v1  ;;  %v7774_v54 = vsub.f32 %v2207_v2, %v7713_v42 }
 0x264   : > { %1967 = vadd.xlane.f32.xlu1 %v1964_v21  ;;  %1965 = vadd.xlane.f32.xlu0 %v1963_v7  ;;  %vm1853_vm7 = vcmp.gt.f32.partialorder %v7579_v34, 0.0  ;;  %v2387_v45 = vsub.f32 %v7743_v39, %v9711_v63  ;;  %v7782_v21 = vmul.f32 %v6214_v50, %v7532_v25  ;;  %v7804_v20 = vsub.f32 %v2210_v44, %v7750_v55 }
 0x265   : > { %9899 = vst [vmem:[#allocation34_spill] sm:$0xff] %v7771_v14  ;;  %5969 = vmatmul.mubr.f32.gmra.mxu0 %v2368_v43  ;;  %v2378_v26 = vand.u32 4294901760, %v2377_v36  ;;  %6003 = vmatprep.mubr.f32.mxu1 %v7755_v46  ;;  %v1901_v1 = vsel %vm1853_vm7, 1, %v9714_v18  ;;  %v6216_v30 = vpop.eup %6215  ;;  %v1999_v2 = vsel %vm1752_vm0, %v1923_v56, 0  ;;  %v2216_v7 = vsel %vm1752_vm0, %v7771_v14, 0 }
 0x266   : > { %9900 = vst [vmem:[#allocation35_spill] sm:$0xff] %v7782_v21  ;;  %v9720_v43 = vand.u32 4294901760, %v7774_v54  ;;  %v1922_v36 = vmul.u32 %v7607_v11, %v1901_v1  ;;  %v2001_v40 = vshrl.u32 %v1999_v2, 16  ;;  %v2000_v63 = vand.u32 65535, %v1999_v2 }
 0x267   : > { %5971 = vmatprep.mubr.f32.mxu0 %v2378_v26  ;;  %v2388_v37 = vand.u32 4294901760, %v2387_v45  ;;  %v7792_v25 = vand.u32 4294901760, %v2216_v7  ;;  %v2219_v56 = vsel %vm1752_vm0, %v7782_v21, 0  ;;  %vm1856_vm8 = vcmp.gt.f32.partialorder %v7654_v3, 0.0 }
 0x268   : > { %v2397_v50 = vsub.f32 %v7774_v54, %v9720_v43  ;;  %v1986_v24 = vsel %vm1752_vm0, %v1922_v36, 0  ;;  %v2003_v18 = vcvt.s32.f32 %v2001_v40  ;;  %v2002_v14 = vcvt.s32.f32 %v2000_v63 }
 0x269   : > { %5972 = vmatmul.mubr.f32.gmra.mxu0 %v2388_v37  ;;  %6004 = vmatmul.mubr.f32.gmra.mxu1 %v7792_v25  ;;  %v7801_v26 = vand.u32 4294901760, %v2219_v56  ;;  %v1988_v1 = vshrl.u32 %v1986_v24, 16  ;;  %v1987_v2 = vand.u32 65535, %v1986_v24  ;;  %v7807_v43 = vmul.f32 %v6216_v30, %v7530_v58 }
 0x26a   : > { %v2398_v45 = vand.u32 4294901760, %v2397_v50  ;;  %2006 = vadd.xlane.f32.xlu1 %v2003_v18  ;;  %2004 = vadd.xlane.f32.xlu0 %v2002_v14  ;;  %v7810_v36 = vsub.f32 %v2213_v32, %v7755_v46  ;;  %v9727_v37 = vand.u32 4294901760, %v7767_v52  ;;  %v9721_v24 = vand.u32 4294901760, %v7804_v20 }
 0x26b   : > { %9901 = vst [vmem:[#allocation30_spill] sm:$0xff] %v7807_v43  ;;  %6006 = vmatprep.mubr.f32.mxu1 %v7801_v26  ;;  %v1990_v63 = vcvt.s32.f32 %v1988_v1  ;;  %v9902_v44 = vmov 0   ;;  %v1989_v14 = vcvt.s32.f32 %v1987_v2  ;;  %v2222_v58 = vsel %vm1752_vm0, %v7807_v43, 0 }
 0x26c   : > { %5974 = vmatprep.mubr.f32.mxu0 %v2398_v45  ;;  %v1904_v18 = vsel %vm1856_vm8, 1, %v9902_v44  ;;  %v9726_v32 = vand.u32 4294901760, %v7810_v36  ;;  %v2407_v40 = vsub.f32 %v7804_v20, %v9721_v24  ;;  %v7826_v50 = vand.u32 4294901760, %v2222_v58 }
 0x26d   : > { %v1925_v30 = vmul.u32 %v7607_v11, %v1904_v18  ;;  %v7829_v1 = vsub.f32 %v2216_v7, %v7792_v25  ;;  %v7832_v45 = vsub.f32 %v2219_v56, %v7801_v26  ;;  %vm1855_vm9 = vcmp.gt.f32.partialorder %v7627_v13, 0.0 }
 0x26e   : > { %1993 = vadd.xlane.f32.xlu1 %v1990_v63  ;;  %1991 = vadd.xlane.f32.xlu0 %v1989_v14  ;;  %v2417_v2 = vsub.f32 %v7810_v36, %v9726_v32  ;;  %v4131_v24 = vsub.f32 %v7767_v52, %v9727_v37  ;;  %v2408_v21 = vand.u32 4294901760, %v2407_v40  ;;  %v9903_v62 = vand.u32 4294901760, %v7560_v8 }
 0x26f   : > { %v2025_v18 = vsel %vm1752_vm0, %v1925_v30, 0  ;;  %6007 = vmatmul.mubr.f32.gmra.mxu1 %v7826_v50  ;;  %v9732_v63 = vand.u32 4294901760, %v7829_v1  ;;  %v9735_v32 = vand.u32 4294901760, %v7832_v45  ;;  %v1903_v30 = vsel %vm1855_vm9, 1, %v9902_v44 }
 0x270   : > { %v2027_v7 = vshrl.u32 %v2025_v18, 16  ;;  %v2026_v56 = vand.u32 65535, %v2025_v18  ;;  %v2418_v14 = vand.u32 4294901760, %v2417_v2  ;;  %6037 = vmatprep.mubr.f32.mxu1 %v9903_v62  ;;  %vm1858_vm10 = vcmp.gt.f32.partialorder %v7689_v35, 0.0  ;;  %5975 = vmatmul.mubr.f32.gmra.mxu0 %v2408_v21 }
 0x271   : > { %v2427_v18 = vsub.f32 %v7829_v1, %v9732_v63  ;;  %v1924_v2 = vmul.u32 %v7607_v11, %v1903_v30  ;;  %v2437_v62 = vsub.f32 %v7832_v45, %v9735_v32  ;;  %v7859_v3 = vsub.f32 %v2222_v58, %v7826_v50 }
 0x272   : > { %v2029_v40 = vcvt.s32.f32 %v2027_v7  ;;  %v2028_v37 = vcvt.s32.f32 %v2026_v56  ;;  %5977 = vmatprep.mubr.f32.mxu0 %v2418_v14  ;;  %v1906_v7 = vsel %vm1858_vm10, 1, %v9902_v44  ;;  %v4132_v56 = vand.u32 4294901760, %v4131_v24 }
 0x273   : > { %v2428_v13 = vand.u32 4294901760, %v2427_v18  ;;  %v2012_v21 = vsel %vm1752_vm0, %v1924_v2, 0  ;;  %v9904_v30 = vand.u32 4294901760, %v7591_v27  ;;  %v2438_v14 = vand.u32 4294901760, %v2437_v62 }
 0x274   : > { %2032 = vadd.xlane.f32.xlu1 %v2029_v40  ;;  %2030 = vadd.xlane.f32.xlu0 %v2028_v37  ;;  %v2014_v63 = vshrl.u32 %v2012_v21, 16  ;;  %v2013_v49 = vand.u32 65535, %v2012_v21  ;;  %v9736_v32 = vand.u32 4294901760, %v7859_v3  ;;  %v9905_v58 = vand.u32 4294901760, %v7583_v22 }
 0x275   : > { %6038 = vmatmul.mubr.f32.vlgmr.msra.gmra.mxu1 %v9904_v30  ;;  %5978 = vmatmul.mubr.f32.gmra.mxu0 %v2428_v13  ;;  %v1927_v37 = vmul.u32 %v7607_v11, %v1906_v7  ;;  %vm1857_vm11 = vcmp.gt.f32.partialorder %v7660_v61, 0.0  ;;  %vm1859_vm12 = vcmp.gt.f32.partialorder %v7698_v4, 0.0  ;;  %v9906_v30 = vand.u32 4294901760, %v7650_v12 }
 0x276   : > { %6040 = vmatprep.mubr.f32.mxu1 %v9905_v58  ;;  %5980 = vmatprep.mubr.f32.mxu0 %v2438_v14  ;;  %v2016_v24 = vcvt.s32.f32 %v2014_v63  ;;  %v2015_v40 = vcvt.s32.f32 %v2013_v49  ;;  %v2447_v18 = vsub.f32 %v7859_v3, %v9736_v32  ;;  %v1905_v13 = vsel %vm1857_vm11, 1, %v9902_v44 }
 0x277   : > { %6088 = vmatpush3.msra.mxu1 %v7494_v59  ;;  %v2051_v2 = vsel %vm1752_vm0, %v1927_v37, 0  ;;  %v1926_v62 = vmul.u32 %v7607_v11, %v1905_v13  ;;  %v1907_v21 = vsel %vm1859_vm12, 1, %v9902_v44  ;;  %v9907_v58 = vand.u32 4294901760, %v7657_v57 }
 0x278   : > { %4133 = vmatprep.subr.mxu1 %v4132_v56  ;;  %2019 = vadd.xlane.f32.xlu1 %v2016_v24  ;;  %v2448_v49 = vand.u32 4294901760, %v2447_v18  ;;  %v2053_v63 = vshrl.u32 %v2051_v2, 16  ;;  %v2052_v7 = vand.u32 65535, %v2051_v2  ;;  %v1928_v59 = vmul.u32 %v7607_v11, %v1907_v21 }
 0x279   : > { %2017 = vadd.xlane.f32.xlu0 %v2015_v40  ;;  %6041 = vmatmul.mubr.f32.gmra.mxu1 %v9906_v30  ;;  %v2038_v14 = vsel %vm1752_vm0, %v1926_v62, 0  ;;  %v9909_v40 = vand.u32 4294901760, %v7686_v38  ;;  %v9910_v11 = vand.u32 4294901760, %v7695_v51  ;;  %v9911_v21 = vand.u32 4294901760, %v7723_v9 }
 0x27a   : > { %5981 = vmatmul.mubr.f32.gmra.mxu0 %v2448_v49  ;;  %6043 = vmatprep.mubr.f32.mxu1 %v9907_v58  ;;  %v2055_v37 = vcvt.s32.f32 %v2053_v63  ;;  %v2054_v13 = vcvt.s32.f32 %v2052_v7  ;;  %v2040_v32 = vshrl.u32 %v2038_v14, 16  ;;  %v2039_v56 = vand.u32 65535, %v2038_v14 }
 0x27b   : > { %6011 = vmatprep.mubr.f32.mxu0 %v7560_v8  ;;  %v7893_v24 = vsel %vm1752_vm0, %v1928_v59, 0  ;;  %v3851_v8 = vsel %vm2224_vm1, %v7588_v17, 0  ;;  %v9914_v17 = vand.u32 4294901760, %v7774_v54  ;;  %v9915_v49 = vand.u32 4294901760, %v7804_v20 }
 0x27c   : > { %9908 = vst [vmem:[#allocation32_spill] sm:$0xff] %v7893_v24  ;;  %2058 = vadd.xlane.f32.xlu1 %v2055_v37  ;;  %v2042_v18 = vcvt.s32.f32 %v2040_v32  ;;  %v2041_v2 = vcvt.s32.f32 %v2039_v56  ;;  %v2065_v62 = vand.u32 65535, %v7893_v24  ;;  %v9917_v63 = vand.u32 4294901760, %v7829_v1 }
 0x27d   : > { %2056 = vadd.xlane.f32.xlu0 %v2054_v13  ;;  %6044 = vmatmul.mubr.f32.gmra.mxu1 %v9909_v40  ;;  %v9919_v7 = vand.u32 4294901760, %v7859_v3  ;;  %vm1864_vm13 = vcmp.gt.f32.partialorder %v7807_v43, 0.0  ;;  %v9747_v59 = vmov 0.0  }
 0x27e   : > { %6012 = vmatmul.mubr.f32.vlgmr.msra.gmra.mxu0 %v7591_v27  ;;  %6046 = vmatprep.mubr.f32.mxu1 %v9910_v11  ;;  %v9912_v27 = vand.u32 4294901760, %v7735_v53  ;;  %v2067_v32 = vcvt.s32.f32 %v2065_v62 }
 0x27f   : > { %6014 = vmatprep.mubr.f32.mxu0 %v7583_v22  ;;  %6062 = vmatpush3.msra.mxu0 %v7516_v23  ;;  %v7912_v22 = vand.u32 4294901760, %v3851_v8  ;;  %v9913_v23 = vand.u32 4294901760, %v7743_v39 }
 0x280   : > { %2045 = vadd.xlane.f32.xlu1 %v2042_v18  ;;  %3886 = vmatprep.subr.mxu0 %v7726_v41 }
 0x281   : > { %2043 = vadd.xlane.f32.xlu0 %v2041_v2  ;;  %6047 = vmatmul.mubr.f32.gmra.mxu1 %v9911_v21 }
 0x282   : > { %6015 = vmatmul.mubr.f32.gmra.mxu0 %v7650_v12  ;;  %6049 = vmatprep.mubr.f32.mxu1 %v9912_v27  ;;  %v7921_v12 = vsub.f32 %v3851_v8, %v7912_v22 }
 0x283   : > { %6017 = vmatprep.mubr.f32.mxu0 %v7657_v57  ;;  %v9916_v57 = vand.u32 4294901760, %v7810_v36 }
 0x285   : > { %2069 = vadd.xlane.f32.xlu0 %v2067_v32  ;;  %6050 = vmatmul.mubr.f32.gmra.mxu1 %v9913_v23 }
 0x286   : > { %6018 = vmatmul.mubr.f32.gmra.mxu0 %v7686_v38  ;;  %6052 = vmatprep.mubr.f32.mxu1 %v9914_v17  ;;  %v9740_v38 = vand.u32 4294901760, %v7921_v12 }
 0x287   : > { %6020 = vmatprep.mubr.f32.mxu0 %v7695_v51  ;;  %v9918_v51 = vand.u32 4294901760, %v7832_v45 }
 0x289   : > { %6053 = vmatmul.mubr.f32.gmra.mxu1 %v9915_v49 }
 0x28a   : > { %6021 = vmatmul.mubr.f32.gmra.mxu0 %v7723_v9  ;;  %6055 = vmatprep.mubr.f32.mxu1 %v9916_v57  ;;  %v4137_v9 = vsub.f32 %v7921_v12, %v9740_v38 }
 0x28b   : > { %6023 = vmatprep.mubr.f32.mxu0 %v7735_v53 }
 0x28c   : > { %v4138_v53 = vand.u32 4294901760, %v4137_v9 }
 0x28d   : > { %6056 = vmatmul.mubr.f32.gmra.mxu1 %v9917_v63 }
 0x28e   : > { %6024 = vmatmul.mubr.f32.gmra.mxu0 %v7743_v39  ;;  %6058 = vmatprep.mubr.f32.mxu1 %v9918_v51 }
 0x28f   : > { %6026 = vmatprep.mubr.f32.mxu0 %v7774_v54 }
 0x291   : > { %6059 = vmatmul.mubr.f32.gmra.mxu1 %v9919_v7 }
 0x292   : > { %6027 = vmatmul.mubr.f32.gmra.mxu0 %v7804_v20  ;;  %6089 = vmatprep.mubr.f32.mxu1 %v7550_v28  ;;  %v9745_v20 = vmov -1.0  }
 0x293   : > { %6029 = vmatprep.mubr.f32.mxu0 %v7810_v36  ;;  %v1866_v39 = vsel %vm1850_vm3, 1.0, %v9745_v20  ;;  %v1867_v36 = vsel %vm1851_vm5, 1.0, %v9745_v20  ;;  %v1869_v14 = vsel %vm1853_vm7, 1.0, %v9745_v20  ;;  %v1870_v37 = vsel %vm1854_vm6, 1.0, %v9745_v20 }
 0x294   : > { %v8029_v13 = vmul.f32 0.5, %v1869_v14  ;;  %v1871_v18 = vsel %vm1855_vm9, 1.0, %v9745_v20  ;;  %v1872_v57 = vsel %vm1856_vm8, 1.0, %v9745_v20  ;;  %v1873_v63 = vsel %vm1857_vm11, 1.0, %v9745_v20 }
 0x295   : > { %6090 = vmatmul.mubr.f32.vlgmr.msra.gmra.mxu1 %v7570_v15  ;;  %vm3335_vm3 = vcmask 130048  }
 0x296   : > { %6030 = vmatmul.mubr.f32.gmra.mxu0 %v7829_v1  ;;  %6092 = vmatprep.mubr.f32.mxu1 %v7567_v10  ;;  %9926 = vst [vmem:[#allocation48_spill] sm:$0xff] %v8029_v13  ;;  %v3816_v21 = vsel %vm1752_vm0, %v8029_v13, 0 }
 0x297   : > { %6032 = vmatprep.mubr.f32.mxu0 %v7832_v45  ;;  %4139 = vmatpush1.msra.mxu1 %v4138_v53  ;;  %v1868_v45 = vsel %vm1852_vm4, 1.0, %v9745_v20  ;;  %v8066_v32 = vand.u32 4294901760, %v3816_v21  ;;  %vm3677_vm4 = vcmask 122880  }
 0x298   : > { %4513 = vmatprep.subr.mxu1 %v7726_v41  ;;  %v8014_v30 = vmul.f32 0.5, %v1868_v45 }
 0x299   : > { %6093 = vmatmul.mubr.f32.gmra.mxu1 %v7600_v6 }
 0x29a   : > { %6033 = vmatmul.mubr.f32.gmra.mxu0 %v7859_v3  ;;  %6095 = vmatprep.mubr.f32.mxu1 %v7613_v31  ;;  %v1865_v3 = vsel %vm1849_vm2, 1.0, %v9745_v20  ;;  %9924 = vst [vmem:[#allocation47_spill] sm:$0xff] %v8014_v30 }
 0x29b   : > { %6063 = vmatprep.mubr.f32.mxu0 %v7550_v28  ;;  %v1880_v28 = vsel %vm1864_vm13, 1.0, %v9745_v20 }
 0x29d   : > { %6096 = vmatmul.mubr.f32.gmra.mxu1 %v7641_v48 }
 0x29e   : > { %6064 = vmatmul.mubr.f32.vlgmr.msra.gmra.mxu0 %v7570_v15  ;;  %6098 = vmatprep.mubr.f32.mxu1 %v7643_v47  ;;  %v7973_v15 = vmul.f32 0.5, %v1880_v28  ;;  %v8096_v28 = vsub.f32 %v3816_v21, %v8066_v32 }
 0x29f   : > { %6066 = vmatprep.mubr.f32.mxu0 %v7567_v10  ;;  %3888 = vmatpush1.msra.mxu0 %v7912_v22  ;;  %v7970_v10 = vmul.f32 0.5, %v1865_v3 }
 0x2a0   : > { %4317 = vmatprep.subr.mxu0 %v7767_v52  ;;  %v7988_v54 = vsub.f32 %v7807_v43, %v7973_v15 }
 0x2a1   : > { %6099 = vmatmul.mubr.f32.gmra.mxu1 %v7674_v5  ;;  %9920 = vst [vmem:[#allocation43_spill] sm:$0xff] %v7970_v10 }
 0x2a2   : > { %6067 = vmatmul.mubr.f32.gmra.mxu0 %v7600_v6  ;;  %6101 = vmatprep.mubr.f32.mxu1 %v7676_v33  ;;  %v3804_v6 = vsel %vm1752_vm0, %v7970_v10, 0  ;;  %9922 = vst [vmem:[#allocation45_spill] sm:$0xff] %v7988_v54  ;;  %v9941_v54 = vmov 0.0  }
 0x2a3   : > { %6069 = vmatprep.mubr.f32.mxu0 %v7613_v31  ;;  %v7983_v31 = vmul.f32 0.5, %v1866_v39  ;;  %v9931_v39 = vand.u32 4294901760, %v7767_v52 }
 0x2a5   : > { %6102 = vmatmul.mubr.f32.gmra.mxu1 %v7705_v60  ;;  %9921 = vst [vmem:[#allocation44_spill] sm:$0xff] %v7983_v31  ;;  %v3807_v1 = vsel %vm1752_vm0, %v7983_v31, 0 }
 0x2a6   : > { %6070 = vmatmul.mubr.f32.gmra.mxu0 %v7641_v48  ;;  %6104 = vmatprep.mubr.f32.mxu1 %v7713_v42  ;;  %v7995_v48 = vand.u32 4294901760, %v3804_v6 }
 0x2a7   : > { %6072 = vmatprep.mubr.f32.mxu0 %v7643_v47  ;;  %v7998_v47 = vmul.f32 0.5, %v1867_v36  ;;  %v1874_v36 = vsel %vm1858_vm10, 1.0, %v9745_v20 }
 0x2a9   : > { %6105 = vmatmul.mubr.f32.gmra.mxu1 %v7750_v55  ;;  %9923 = vst [vmem:[#allocation46_spill] sm:$0xff] %v7998_v47 }
 0x2aa   : > { %6073 = vmatmul.mubr.f32.gmra.mxu0 %v7674_v5  ;;  %6107 = vmatprep.mubr.f32.mxu1 %v7755_v46  ;;  %v8009_v5 = vsub.f32 %v3804_v6, %v7995_v48  ;;  %v8100_v6 = vmul.f32 0.5, %v1872_v57 }
 0x2ab   : > { %6075 = vmatprep.mubr.f32.mxu0 %v7676_v33  ;;  %v8012_v33 = vand.u32 4294901760, %v3807_v1 }
 0x2ac   : > { %9932 = vst [vmem:[#allocation51_spill] sm:$0xff] %v8100_v6 }
 0x2ad   : > { %6108 = vmatmul.mubr.f32.gmra.mxu1 %v7792_v25  ;;  %v8034_v40 = vsub.f32 %v3807_v1, %v8012_v33  ;;  %v8107_v1 = vmul.f32 0.5, %v1873_v63 }
 0x2ae   : > { %6076 = vmatmul.mubr.f32.gmra.mxu0 %v7705_v60  ;;  %6110 = vmatprep.mubr.f32.mxu1 %v7801_v26  ;;  %v3810_v60 = vsel %vm1752_vm0, %v7998_v47, 0 }
 0x2af   : > { %6078 = vmatprep.mubr.f32.mxu0 %v7713_v42  ;;  %v9744_v42 = vand.u32 4294901760, %v8009_v5  ;;  %v8031_v56 = vand.u32 4294901760, %v3810_v60  ;;  %v9743_v62 = vand.u32 4294901760, %v8034_v40  ;;  %9933 = vst [vmem:[#allocation52_spill] sm:$0xff] %v8107_v1 }
 0x2b1   : > { %6111 = vmatmul.mubr.f32.gmra.mxu1 %v7826_v50  ;;  %v3925_v2 = vsub.f32 %v8009_v5, %v9744_v42  ;;  %v3936_v23 = vsub.f32 %v8034_v40, %v9743_v62 }
 0x2b2   : > { %6079 = vmatmul.mubr.f32.gmra.mxu0 %v7750_v55  ;;  %4172 = vmatprep.mubr.f32.mxu1 %v9747_v59  ;;  %v3813_v55 = vsel %vm1752_vm0, %v8014_v30, 0 }
 0x2b3   : > { %6081 = vmatprep.mubr.f32.mxu0 %v7755_v46  ;;  %v8041_v46 = vmul.f32 0.5, %v1870_v37  ;;  %v8052_v8 = vand.u32 4294901760, %v3813_v55  ;;  %v3926_v27 = vand.u32 4294901760, %v3925_v2  ;;  %v3937_v7 = vand.u32 4294901760, %v3936_v23 }
 0x2b4   : > { %v1875_v2 = vsel %vm1859_vm12, 1.0, %v9745_v20 }
 0x2b5   : > { %4174 = vmatmul.mubr.f32.vlgmr.msra.gmra.mxu1 %v7995_v48  ;;  %9927 = vst [vmem:[#allocation49_spill] sm:$0xff] %v8041_v46 }
 0x2b6   : > { %6082 = vmatmul.mubr.f32.gmra.mxu0 %v7792_v25  ;;  %4179 = vmatprep.mubr.f32.mxu1 %v9747_v59  ;;  %v8055_v25 = vsub.f32 %v3810_v60, %v8031_v56  ;;  %v9738_v60 = vand.u32 4294901760, %v8096_v28 }
 0x2b7   : > { %6084 = vmatprep.mubr.f32.mxu0 %v7801_v26  ;;  %4515 = vmatpush1.msra.mxu1 %v7912_v22  ;;  %v8063_v26 = vmul.f32 0.5, %v1871_v18  ;;  %v8123_v18 = vmul.f32 0.5, %v1874_v36 }
 0x2b8   : > { %4907 = vmatprep.subr.mxu1 %v7726_v41  ;;  %v9741_v17 = vand.u32 4294901760, %v8055_v25  ;;  %v8073_v41 = vsub.f32 %v3813_v55, %v8052_v8  ;;  %v3825_v55 = vsel %vm1752_vm0, %v8100_v6, 0 }
 0x2b9   : > { %4181 = vmatmul.mubr.f32.gmra.mxu1 %v8012_v33  ;;  %9929 = vst [vmem:[#allocation50_spill] sm:$0xff] %v8063_v26  ;;  %v3822_v9 = vsel %vm1752_vm0, %v8063_v26, 0  ;;  %9934 = vst [vmem:[#allocation53_spill] sm:$0xff] %v8123_v18  ;;  %v8138_v63 = vand.u32 4294901760, %v3825_v55 }
 0x2ba   : > { %6085 = vmatmul.mubr.f32.gmra.mxu0 %v7826_v50  ;;  %4186 = vmatprep.mubr.f32.mxu1 %v9747_v59  ;;  %v3819_v50 = vsel %vm1752_vm0, %v8041_v46, 0  ;;  %v3947_v53 = vsub.f32 %v8055_v25, %v9741_v17  ;;  %v9739_v3 = vand.u32 4294901760, %v8073_v41  ;;  %v8110_v45 = vand.u32 4294901760, %v3822_v9 }
 0x2bb   : > { %3921 = vmatprep.mubr.f32.mxu0 %v9747_v59  ;;  %v8086_v51 = vand.u32 4294901760, %v3819_v50 }
 0x2bc   : > { %v3948_v14 = vand.u32 4294901760, %v3947_v53  ;;  %v3958_v52 = vsub.f32 %v8073_v41, %v9739_v3  ;;  %v8130_v21 = vsub.f32 %v3822_v9, %v8110_v45 }
 0x2bd   : > { %4188 = vmatmul.mubr.f32.gmra.mxu1 %v8031_v56  ;;  %v8117_v37 = vsub.f32 %v3819_v50, %v8086_v51  ;;  %v3969_v50 = vsub.f32 %v8096_v28, %v9738_v60 }
 0x2be   : > { %3927 = vmatmul.mubr.f32.vlgmr.msra.gmra.mxu0 %v3926_v27  ;;  %4193 = vmatprep.mubr.f32.mxu1 %v9747_v59  ;;  %v3828_v27 = vsel %vm1752_vm0, %v8107_v1, 0  ;;  %v3959_v23 = vand.u32 4294901760, %v3958_v52  ;;  %v9742_v9 = vand.u32 4294901760, %v8130_v21  ;;  %v8153_v52 = vsub.f32 %v3825_v55, %v8138_v63  ;;  %v9937_v55 = vld [vmem:[#allocation36_spill] sm:$0xff] }
 0x2bf   : > { %3932 = vmatprep.mubr.f32.mxu0 %v9747_v59  ;;  %4320 = vmatpush1.msra.mxu0 %v7921_v12  ;;  %v9737_v57 = vand.u32 4294901760, %v8117_v37  ;;  %v8146_v53 = vand.u32 4294901760, %v3828_v27  ;;  %v3970_v36 = vand.u32 4294901760, %v3969_v50  ;;  %vm1861_vm15 = vcmp.gt.f32.partialorder %v9937_v55, 0.0 }
 0x2c0   : > { %4726 = vmatprep.subr.mxu0 %v9931_v39  ;;  %v9936_v39 = vld [vmem:[#allocation29_spill] sm:$0xff]  ;;  %v9750_v3 = vand.u32 4294901760, %v8153_v52 }
 0x2c1   : > { %4195 = vmatmul.mubr.f32.gmra.mxu1 %v8052_v8  ;;  %vm1860_vm14 = vcmp.gt.f32.partialorder %v9936_v39, 0.0  ;;  %v8164_v50 = vsub.f32 %v3828_v27, %v8146_v53  ;;  %v1877_v27 = vsel %vm1861_vm15, 1.0, %v9745_v20 }
 0x2c2   : > { %3938 = vmatmul.mubr.f32.gmra.mxu0 %v3937_v7  ;;  %4200 = vmatprep.mubr.f32.mxu1 %v9747_v59  ;;  %v8142_v7 = vmul.f32 0.5, %v1875_v2  ;;  %v3831_v2 = vsel %vm1752_vm0, %v8123_v18, 0  ;;  %v4002_v42 = vsub.f32 %v8153_v52, %v9750_v3  ;;  %v9943_v3 = vld [vmem:[#allocation35_spill] sm:$0xff] }
 0x2c3   : > { %3943 = vmatprep.mubr.f32.mxu0 %v9747_v59  ;;  %vm1863_vm2 = vcmp.gt.f32.partialorder %v9943_v3, 0.0 }
 0x2c4   : > { %9935 = vst [vmem:[#allocation54_spill] sm:$0xff] %v8142_v7  ;;  %v3834_v38 = vsel %vm1752_vm0, %v8142_v7, 0  ;;  %v9944_v7 = vand.u32 4294901760, %v8164_v50 }
 0x2c5   : > { %4202 = vmatmul.mubr.f32.gmra.mxu1 %v8066_v32 }
 0x2c6   : > { %3949 = vmatmul.mubr.f32.gmra.mxu0 %v3948_v14  ;;  %4207 = vmatprep.mubr.f32.mxu1 %v9747_v59  ;;  %v3980_v14 = vsub.f32 %v8117_v37, %v9737_v57  ;;  %v8166_v57 = vand.u32 4294901760, %v3831_v2 }
 0x2c7   : > { %3954 = vmatprep.mubr.f32.mxu0 %v9747_v59 }
 0x2c8   : > { %v3981_v60 = vand.u32 4294901760, %v3980_v14  ;;  %v8183_v14 = vand.u32 4294901760, %v3834_v38 }
 0x2c9   : > { %4209 = vmatmul.mubr.f32.gmra.mxu1 %v8086_v51 }
 0x2ca   : > { %3960 = vmatmul.mubr.f32.gmra.mxu0 %v3959_v23  ;;  %4214 = vmatprep.mubr.f32.mxu1 %v9747_v59  ;;  %v1876_v23 = vsel %vm1860_vm14, 1.0, %v9745_v20 }
 0x2cb   : > { %3965 = vmatprep.mubr.f32.mxu0 %v9747_v59  ;;  %v8176_v17 = vmul.f32 0.5, %v1876_v23  ;;  %v8190_v23 = vsub.f32 %v3831_v2, %v8166_v57  ;;  %v8204_v2 = vsub.f32 %v3834_v38, %v8183_v14 }
 0x2cd   : > { %4216 = vmatmul.mubr.f32.gmra.mxu1 %v8110_v45  ;;  %9938 = vst [vmem:[#allocation55_spill] sm:$0xff] %v8176_v17  ;;  %v3837_v20 = vsel %vm1752_vm0, %v8176_v17, 0 }
 0x2ce   : > { %3971 = vmatmul.mubr.f32.gmra.mxu0 %v3970_v36  ;;  %4221 = vmatprep.mubr.f32.mxu1 %v9747_v59  ;;  %v3991_v36 = vsub.f32 %v8130_v21, %v9742_v9  ;;  %v9939_v9 = vld [vmem:[#allocation34_spill] sm:$0xff]  ;;  %v8211_v17 = vand.u32 4294901760, %v3837_v20 }
 0x2cf   : > { %3976 = vmatprep.mubr.f32.mxu0 %v9747_v59  ;;  %vm1862_vm1 = vcmp.gt.f32.partialorder %v9939_v9, 0.0 }
 0x2d0   : > { %v3992_v62 = vand.u32 4294901760, %v3991_v36  ;;  %v9942_v36 = vmov -1.0  }
 0x2d1   : > { %4223 = vmatmul.mubr.f32.gmra.mxu1 %v8138_v63  ;;  %v1878_v4 = vsel %vm1862_vm1, 1.0, %v9942_v36  ;;  %v1879_v38 = vsel %vm1863_vm2, 1.0, %v9942_v36 }
 0x2d2   : > { %3982 = vmatmul.mubr.f32.gmra.mxu0 %v3981_v60  ;;  %4228 = vmatprep.mubr.f32.mxu1 %v9747_v59  ;;  %v4003_v60 = vand.u32 4294901760, %v4002_v42  ;;  %v8216_v18 = vmul.f32 0.5, %v1878_v4  ;;  %v9759_v42 = vand.u32 4294901760, %v8204_v2  ;;  %v8235_v36 = vmul.f32 0.5, %v1879_v38 }
 0x2d3   : > { %3987 = vmatprep.mubr.f32.mxu0 %v9747_v59  ;;  %v8196_v59 = vmul.f32 0.5, %v1877_v27  ;;  %v4013_v27 = vsub.f32 %v8164_v50, %v9944_v7 }
 0x2d4   : > { %9945 = vst [vmem:[#allocation57_spill] sm:$0xff] %v8216_v18  ;;  %9946 = vst [vmem:[#allocation58_spill] sm:$0xff] %v8235_v36  ;;  %v3846_v38 = vsel %vm1752_vm0, %v8235_v36, 0 }
 0x2d5   : > { %4230 = vmatmul.mubr.f32.gmra.mxu1 %v8146_v53  ;;  %9940 = vst [vmem:[#allocation56_spill] sm:$0xff] %v8196_v59  ;;  %v3840_v35 = vsel %vm1752_vm0, %v8196_v59, 0  ;;  %v4014_v7 = vand.u32 4294901760, %v4013_v27  ;;  %v8228_v59 = vsub.f32 %v3837_v20, %v8211_v17  ;;  %v4035_v27 = vsub.f32 %v8204_v2, %v9759_v42 }
 0x2d6   : > { %3993 = vmatmul.mubr.f32.gmra.mxu0 %v3992_v62  ;;  %4235 = vmatprep.mubr.f32.mxu1 %v9941_v54  ;;  %v9757_v62 = vand.u32 4294901760, %v8190_v23  ;;  %v8230_v4 = vand.u32 4294901760, %v3840_v35  ;;  %v8262_v6 = vand.u32 4294901760, %v3846_v38 }
 0x2d7   : > { %3998 = vmatprep.mubr.f32.mxu0 %v9941_v54  ;;  %v9762_v1 = vand.u32 4294901760, %v8228_v59 }
 0x2d8   : > { %v4024_v61 = vsub.f32 %v8190_v23, %v9757_v62  ;;  %v8243_v62 = vsub.f32 %v3840_v35, %v8230_v4 }
 0x2d9   : > { %4237 = vmatmul.mubr.f32.gmra.mxu1 %v8166_v57  ;;  %v4046_v35 = vsub.f32 %v8228_v59, %v9762_v1 }
 0x2da   : > { %4004 = vmatmul.mubr.f32.gmra.mxu0 %v4003_v60  ;;  %4242 = vmatprep.mubr.f32.mxu1 %v9941_v54  ;;  %v3843_v60 = vsel %vm1752_vm0, %v8216_v18, 0  ;;  %v4025_v20 = vand.u32 4294901760, %v4024_v61  ;;  %v3849_v61 = vsel %vm1752_vm0, %v7973_v15, 0  ;;  %v9764_v18 = vand.u32 4294901760, %v8243_v62 }
 0x2db   : > { %4009 = vmatprep.mubr.f32.mxu0 %v9941_v54  ;;  %v8246_v49 = vand.u32 4294901760, %v3843_v60  ;;  %v4047_v15 = vand.u32 4294901760, %v4046_v35  ;;  %v9961_v26 = vand.u32 4294901760, %v8243_v62 }
 0x2dd   : > { %4244 = vmatmul.mubr.f32.gmra.mxu1 %v8183_v14  ;;  %v8259_v42 = vsub.f32 %v3843_v60, %v8246_v49  ;;  %v8273_v60 = vsub.f32 %v3846_v38, %v8262_v6 }
 0x2de   : > { %4015 = vmatmul.mubr.f32.gmra.mxu0 %v4014_v7  ;;  %4249 = vmatprep.mubr.f32.mxu1 %v9941_v54  ;;  %v4036_v7 = vand.u32 4294901760, %v4035_v27  ;;  %v8267_v27 = vand.u32 4294901760, %v3849_v61 }
 0x2df   : > { %4020 = vmatprep.mubr.f32.mxu0 %v9941_v54  ;;  %v9767_v1 = vand.u32 4294901760, %v8259_v42  ;;  %v9765_v38 = vand.u32 4294901760, %v8273_v60  ;;  %v9962_v58 = vand.u32 4294901760, %v8259_v42 }
 0x2e0   : > { %9947 = vst [vmem:[#allocation59_spill] sm:$0xff] %v8267_v27  ;;  %v8283_v36 = vsub.f32 %v3849_v61, %v8267_v27 }
 0x2e1   : > { %4251 = vmatmul.mubr.f32.gmra.mxu1 %v8211_v17  ;;  %v4068_v35 = vsub.f32 %v8259_v42, %v9767_v1 }
 0x2e2   : > { %4026 = vmatmul.mubr.f32.gmra.mxu0 %v4025_v20  ;;  %4256 = vmatprep.mubr.f32.mxu1 %v9941_v54  ;;  %v4057_v20 = vsub.f32 %v8243_v62, %v9764_v18  ;;  %v9766_v18 = vand.u32 4294901760, %v8283_v36  ;;  %v9966_v13 = vand.u32 4294901760, %v8283_v36 }
 0x2e3   : > { %4031 = vmatprep.mubr.f32.mxu0 %v9941_v54 }
 0x2e5   : > { %4258 = vmatmul.mubr.f32.gmra.mxu1 %v8230_v4 }
 0x2e6   : > { %4037 = vmatmul.mubr.f32.gmra.mxu0 %v4036_v7  ;;  %4263 = vmatprep.mubr.f32.mxu1 %v9941_v54  ;;  %v4058_v7 = vand.u32 4294901760, %v4057_v20  ;;  %v4079_v20 = vsub.f32 %v8273_v60, %v9765_v38  ;;  %v9949_v38 = vand.u32 4294901760, %v8034_v40 }
 0x2e7   : > { %4042 = vmatprep.mubr.f32.mxu0 %v9941_v54 }
 0x2e8   : > { %v4080_v61 = vand.u32 4294901760, %v4079_v20  ;;  %v9950_v20 = vand.u32 4294901760, %v8055_v25 }
 0x2e9   : > { %4265 = vmatmul.mubr.f32.gmra.mxu1 %v8246_v49 }
 0x2ea   : > { %4048 = vmatmul.mubr.f32.gmra.mxu0 %v4047_v15  ;;  %4270 = vmatprep.mubr.f32.mxu1 %v9941_v54  ;;  %v4069_v15 = vand.u32 4294901760, %v4068_v35  ;;  %v9948_v35 = vand.u32 4294901760, %v8009_v5 }
 0x2eb   : > { %4053 = vmatprep.mubr.f32.mxu0 %v9941_v54 }
 0x2ed   : > { %4272 = vmatmul.mubr.f32.gmra.mxu1 %v8262_v6 }
 0x2ee   : > { %4059 = vmatmul.mubr.f32.gmra.mxu0 %v4058_v7  ;;  %4277 = vmatprep.mubr.f32.mxu1 %v9941_v54  ;;  %v4090_v7 = vsub.f32 %v8283_v36, %v9766_v18  ;;  %v9960_v18 = vand.u32 4294901760, %v8228_v59 }
 0x2ef   : > { %4064 = vmatprep.mubr.f32.mxu0 %v9941_v54 }
 0x2f1   : > { %4279 = vmatmul.mubr.f32.gmra.mxu1 %v8267_v27 }
 0x2f2   : > { %4070 = vmatmul.mubr.f32.gmra.mxu0 %v4069_v15  ;;  %4548 = vmatprep.mubr.f32.mxu1 %v9941_v54  ;;  %v4091_v15 = vand.u32 4294901760, %v4090_v7 }
 0x2f3   : > { %4075 = vmatprep.mubr.f32.mxu0 %v9941_v54 }
 0x2f5   : > { %4552 = vmatmul.mubr.f32.vlgmr.msra.gmra.mxu1 %v9948_v35 }
 0x2f6   : > { %4081 = vmatmul.mubr.f32.gmra.mxu0 %v4080_v61  ;;  %4557 = vmatprep.mubr.f32.mxu1 %v9941_v54  ;;  %v9952_v61 = vand.u32 4294901760, %v8073_v41 }
 0x2f7   : > { %4086 = vmatprep.mubr.f32.mxu0 %v9941_v54  ;;  %4909 = vmatpush1.msra.mxu1 %v7912_v22  ;;  %v9951_v22 = vand.u32 4294901760, %v7921_v12 }
 0x2f9   : > { %4561 = vmatmul.mubr.f32.gmra.mxu1 %v9949_v38  ;;  %v9953_v38 = vand.u32 4294901760, %v8096_v28 }
 0x2fa   : > { %4092 = vmatmul.mubr.f32.gmra.mxu0 %v4091_v15  ;;  %4566 = vmatprep.mubr.f32.mxu1 %v9941_v54 }
 0x2fb   : > { %4353 = vmatprep.mubr.f32.mxu0 %v9941_v54 }
 0x2fd   : > { %4570 = vmatmul.mubr.f32.gmra.mxu1 %v9950_v20 }
 0x2fe   : > { %4356 = vmatmul.mubr.f32.vlgmr.msra.gmra.mxu0 %v8009_v5  ;;  %4575 = vmatprep.mubr.f32.mxu1 %v9941_v54  ;;  %v9954_v5 = vand.u32 4294901760, %v8117_v37 }
 0x2ff   : > { %4361 = vmatprep.mubr.f32.mxu0 %v9941_v54  ;;  %4730 = vmatpush1.msra.mxu0 %v9951_v22  ;;  %v9957_v22 = vand.u32 4294901760, %v8164_v50 }
 0x301   : > { %4579 = vmatmul.mubr.f32.gmra.mxu1 %v9952_v61 }
 0x302   : > { %4364 = vmatmul.mubr.f32.gmra.mxu0 %v8034_v40  ;;  %4584 = vmatprep.mubr.f32.mxu1 %v9941_v54 }
 0x303   : > { %4369 = vmatprep.mubr.f32.mxu0 %v9941_v54 }
 0x305   : > { %4588 = vmatmul.mubr.f32.gmra.mxu1 %v9953_v38  ;;  %v9958_v38 = vand.u32 4294901760, %v8190_v23 }
 0x306   : > { %4372 = vmatmul.mubr.f32.gmra.mxu0 %v8055_v25  ;;  %4593 = vmatprep.mubr.f32.mxu1 %v9941_v54  ;;  %v9955_v25 = vand.u32 4294901760, %v8130_v21 }
 0x307   : > { %4377 = vmatprep.mubr.f32.mxu0 %v9941_v54 }
 0x309   : > { %4597 = vmatmul.mubr.f32.gmra.mxu1 %v9954_v5 }
 0x30a   : > { %v8325_v12 = vpop.f32.mrf.mxu1  ;;  %4380 = vmatmul.mubr.f32.gmra.mxu0 %v8073_v41  ;;  %4602 = vmatprep.mubr.f32.mxu1 %v9941_v54  ;;  %v9956_v41 = vand.u32 4294901760, %v8153_v52 }
 0x30b   : > { %4385 = vmatprep.mubr.f32.mxu0 %v9941_v54 }
 0x30c   : > { %v8331_v40 = vpop.f32.mrf.mxu1 }
 0x30d   : > { %4606 = vmatmul.mubr.f32.gmra.mxu1 %v9955_v25 }
 0x30e   : > { %v8334_v7 = vpop.f32.mrf.mxu1  ;;  %4388 = vmatmul.mubr.f32.gmra.mxu0 %v8096_v28  ;;  %4611 = vmatprep.mubr.f32.mxu1 %v9941_v54 }
 0x30f   : > { %4393 = vmatprep.mubr.f32.mxu0 %v9941_v54 }
 0x310   : > { %v8340_v35 = vpop.f32.mrf.mxu1 }
 0x311   : > { %4615 = vmatmul.mubr.f32.gmra.mxu1 %v9956_v41 }
 0x312   : > { %4396 = vmatmul.mubr.f32.gmra.mxu0 %v8117_v37  ;;  %4620 = vmatprep.mubr.f32.mxu1 %v9941_v54 }
 0x313   : > { %v8347_v15 = vpop.f32.mrf.mxu0  ;;  %v8349_v20 = vpop.f32.mrf.mxu1  ;;  %4401 = vmatprep.mubr.f32.mxu0 %v9941_v54 }
 0x315   : > { %v8352_v28 = vpop.f32.mrf.mxu1  ;;  %4624 = vmatmul.mubr.f32.gmra.mxu1 %v9957_v22  ;;  %v8356_v61 = vpop.f32.mrf.mxu0  ;;  %v9959_v22 = vand.u32 4294901760, %v8204_v2 }
 0x316   : > { %4404 = vmatmul.mubr.f32.gmra.mxu0 %v8130_v21  ;;  %4629 = vmatprep.mubr.f32.mxu1 %v9941_v54 }
 0x317   : > { %4409 = vmatprep.mubr.f32.mxu0 %v9941_v54 }
 0x318   : > { %v8361_v37 = vpop.f32.mrf.mxu1 }
 0x319   : > { %4633 = vmatmul.mubr.f32.gmra.mxu1 %v9958_v38 }
 0x31a   : > { %v8365_v5 = vpop.f32.mrf.mxu0  ;;  %v8367_v25 = vpop.f32.mrf.mxu1  ;;  %4412 = vmatmul.mubr.f32.gmra.mxu0 %v8153_v52  ;;  %4638 = vmatprep.mubr.f32.mxu1 %v9941_v54 }
 0x31b   : > { %4417 = vmatprep.mubr.f32.mxu0 %v9941_v54 }
 0x31c   : > { %v8372_v21 = vpop.f32.mrf.mxu0  ;;  %v8374_v41 = vpop.f32.mrf.mxu1 }
 0x31d   : > { %4642 = vmatmul.mubr.f32.gmra.mxu1 %v9959_v22 }
 0x31e   : > { %4420 = vmatmul.mubr.f32.gmra.mxu0 %v8164_v50  ;;  %4647 = vmatprep.mubr.f32.mxu1 %v9941_v54  ;;  %v8380_v38 = vpop.f32.mrf.mxu1 }
 0x31f   : > { %4425 = vmatprep.mubr.f32.mxu0 %v9941_v54  ;;  %v8383_v52 = vpop.f32.mrf.mxu0 }
 0x321   : > { %4651 = vmatmul.mubr.f32.gmra.mxu1 %v9960_v18  ;;  %v8387_v1 = vpop.f32.mrf.mxu0 }
 0x322   : > { %4428 = vmatmul.mubr.f32.gmra.mxu0 %v8190_v23  ;;  %4656 = vmatprep.mubr.f32.mxu1 %v9941_v54  ;;  %v8391_v22 = vpop.f32.mrf.mxu1 }
 0x323   : > { %4433 = vmatprep.mubr.f32.mxu0 %v9941_v54 }
 0x324   : > { %v8396_v11 = vpop.f32.mrf.mxu1 }
 0x325   : > { %v8394_v50 = vpop.f32.mrf.mxu0  ;;  %4660 = vmatmul.mubr.f32.gmra.mxu1 %v9961_v26 }
 0x326   : > { %4436 = vmatmul.mubr.f32.gmra.mxu0 %v8204_v2  ;;  %4665 = vmatprep.mubr.f32.mxu1 %v9941_v54  ;;  %v9964_v2 = vand.u32 4294901760, %v8273_v60 }
 0x327   : > { %v8402_v18 = vpop.f32.mrf.mxu0  ;;  %4441 = vmatprep.mubr.f32.mxu0 %v9941_v54 }
 0x329   : > { %v8405_v23 = vpop.f32.mrf.mxu1  ;;  %4669 = vmatmul.mubr.f32.gmra.mxu1 %v9962_v58  ;;  %v8409_v46 = vpop.f32.mrf.mxu0 }
 0x32a   : > { %4444 = vmatmul.mubr.f32.gmra.mxu0 %v8228_v59  ;;  %4674 = vmatprep.mubr.f32.mxu1 %v9941_v54 }
 0x32b   : > { %4449 = vmatprep.mubr.f32.mxu0 %v9941_v54  ;;  %v8414_v26 = vpop.f32.mrf.mxu1  ;;  %v8418_v34 = vpop.f32.mrf.mxu0 }
 0x32c   : > { %9963 = vst [vmem:[#allocation60_spill] sm:$0xff] %v8414_v26 }
 0x32d   : > { %4678 = vmatmul.mubr.f32.gmra.mxu1 %v9964_v2 }
 0x32e   : > { %4452 = vmatmul.mubr.f32.gmra.mxu0 %v8243_v62  ;;  %4683 = vmatprep.mubr.f32.mxu1 %v9941_v54 }
 0x32f   : > { %4457 = vmatprep.mubr.f32.mxu0 %v9941_v54  ;;  %v8423_v58 = vpop.f32.mrf.mxu1 }
 0x330   : > { %9965 = vst [vmem:[#allocation61_spill] sm:$0xff] %v8423_v58  ;;  %v8425_v59 = vpop.f32.mrf.mxu0 }
 0x331   : > { %4687 = vmatmul.mubr.f32.gmra.mxu1 %v9966_v13  ;;  %v2610_v16 = vpop.f32.mrf.mxu1 }
 0x332   : > { %4460 = vmatmul.mubr.f32.gmra.mxu0 %v8259_v42  ;;  %4942 = vmatprep.mubr.f32.mxu1 %v9941_v54  ;;  %v8431_v2 = vpop.f32.mrf.mxu0 }
 0x333   : > { %4465 = vmatprep.mubr.f32.mxu0 %v9941_v54 }
 0x335   : > { %v8434_v62 = vpop.f32.mrf.mxu1  ;;  %v8436_v30 = vpop.f32.mrf.mxu0  ;;  %4944 = vmatmul.mubr.f32.vlgmr.msra.gmra.mxu1 %v7995_v48 }
 0x336   : > { %4468 = vmatmul.mubr.f32.gmra.mxu0 %v8273_v60  ;;  %4949 = vmatprep.mubr.f32.mxu1 %v9941_v54 }
 0x337   : > { %v8440_v0 = vpop.f32.mrf.mxu1  ;;  %v8443_v13 = vpop.f32.mrf.mxu0  ;;  %4473 = vmatprep.mubr.f32.mxu0 %v9941_v54 }
 0x338   : > { %9967 = vst [vmem:[#allocation62_spill] sm:$0xff] %v8443_v13  ;;  %v2527_v13 = vadd.f32 %v8331_v40, %v8356_v61 }
 0x339   : > { %v8446_v42 = vpop.f32.mrf.mxu1  ;;  %4951 = vmatmul.mubr.f32.gmra.mxu1 %v8012_v33 }
 0x33a   : > { %v8449_v47 = vpop.f32.mrf.mxu0  ;;  %4476 = vmatmul.mubr.f32.gmra.mxu0 %v8283_v36  ;;  %4956 = vmatprep.mubr.f32.mxu1 %v9941_v54 }
 0x33b   : > { %9968 = vst [vmem:[#allocation63_spill] sm:$0xff] %v8449_v47  ;;  %v8453_v19 = vpop.f32.mrf.mxu1  ;;  %4763 = vmatprep.mubr.f32.mxu0 %v9941_v54 }
 0x33c   : > { %v2440_v60 = vpop.f32.mrf.mxu0 }
 0x33d   : > { %v8456_v31 = vadd.f32 %v2610_v16, %v2440_v60  ;;  %v8458_v29 = vpop.f32.mrf.mxu1  ;;  %4958 = vmatmul.mubr.f32.gmra.mxu1 %v8031_v56 }
 0x33e   : > { %v6013_v10 = vpop.f32.mrf.mxu0  ;;  %4765 = vmatmul.mubr.f32.vlgmr.msra.gmra.mxu0 %v7995_v48  ;;  %4963 = vmatprep.mubr.f32.mxu1 %v9941_v54 }
 0x33f   : > { %9969 = vst [vmem:[#allocation64_spill] sm:$0xff] %v8456_v31  ;;  %v8463_v43 = vpop.f32.mrf.mxu1  ;;  %4770 = vmatprep.mubr.f32.mxu0 %v9941_v54 }
 0x340   : > { %v2690_v36 = vpop.f32.mrf.mxu0 }
 0x341   : > { %v8466_v3 = vpop.f32.mrf.mxu1  ;;  %4965 = vmatmul.mubr.f32.gmra.mxu1 %v8052_v8 }
 0x342   : > { %v6016_v16 = vpop.f32.mrf.mxu0  ;;  %4772 = vmatmul.mubr.f32.gmra.mxu0 %v8012_v33  ;;  %4970 = vmatprep.mubr.f32.mxu1 %v9941_v54 }
 0x343   : > { %v8471_v60 = vpop.f32.mrf.mxu1  ;;  %4777 = vmatprep.mubr.f32.mxu0 %v9941_v54 }
 0x344   : > { %v8474_v48 = vpop.f32.mrf.mxu0 }
 0x345   : > { %v8476_v31 = vpop.f32.mrf.mxu1  ;;  %4972 = vmatmul.mubr.f32.gmra.mxu1 %v8066_v32 }
 0x346   : > { %v8479_v24 = vpop.f32.mrf.mxu0  ;;  %4779 = vmatmul.mubr.f32.gmra.mxu0 %v8031_v56  ;;  %4977 = vmatprep.mubr.f32.mxu1 %v9941_v54 }
 0x347   : > { %v8483_v9 = vpop.f32.mrf.mxu1  ;;  %4784 = vmatprep.mubr.f32.mxu0 %v9941_v54 }
 0x348   : > { %9970 = vst [vmem:[#allocation65_spill] sm:$0xff] %v8483_v9  ;;  %v8486_v33 = vpop.f32.mrf.mxu0 }
 0x349   : > { %v8488_v55 = vpop.f32.mrf.mxu1  ;;  %4979 = vmatmul.mubr.f32.gmra.mxu1 %v8086_v51 }
 0x34a   : > { %9971 = vst [vmem:[#allocation66_spill] sm:$0xff] %v8488_v55  ;;  %v8491_v58 = vpop.f32.mrf.mxu0  ;;  %4786 = vmatmul.mubr.f32.gmra.mxu0 %v8052_v8  ;;  %4984 = vmatprep.mubr.f32.mxu1 %v9941_v54 }
 0x34b   : > { %v8495_v47 = vpop.f32.mrf.mxu1  ;;  %4791 = vmatprep.mubr.f32.mxu0 %v9941_v54 }
 0x34c   : > { %9972 = vst [vmem:[#allocation67_spill] sm:$0xff] %v8495_v47  ;;  %v8498_v56 = vpop.f32.mrf.mxu0 }
 0x34d   : > { %v8500_v27 = vpop.f32.mrf.mxu1  ;;  %4986 = vmatmul.mubr.f32.gmra.mxu1 %v8110_v45 }
 0x34e   : > { %9973 = vst [vmem:[#allocation68_spill] sm:$0xff] %v8500_v27  ;;  %v8503_v39 = vpop.f32.mrf.mxu0  ;;  %4793 = vmatmul.mubr.f32.gmra.mxu0 %v8066_v32  ;;  %4991 = vmatprep.mubr.f32.mxu1 %v9941_v54 }
 0x34f   : > { %v8507_v44 = vpop.f32.mrf.mxu1  ;;  %4798 = vmatprep.mubr.f32.mxu0 %v9941_v54 }
 0x350   : > { %9974 = vst [vmem:[#allocation69_spill] sm:$0xff] %v8507_v44  ;;  %v8510_v8 = vpop.f32.mrf.mxu0 }
 0x351   : > { %v8512_v47 = vpop.f32.mrf.mxu1  ;;  %4993 = vmatmul.mubr.f32.gmra.mxu1 %v8138_v63 }
 0x352   : > { %9975 = vst [vmem:[#allocation70_spill] sm:$0xff] %v8512_v47  ;;  %v8515_v55 = vpop.f32.mrf.mxu0  ;;  %4800 = vmatmul.mubr.f32.gmra.mxu0 %v8086_v51  ;;  %4998 = vmatprep.mubr.f32.mxu1 %v9941_v54  ;;  %v2533_v51 = vadd.f32 %v8325_v12, %v8347_v15  ;;  %v2691_v12 = vadd.f32 %v2690_v36, %v2527_v13 }
 0x353   : > { %v8519_v27 = vpop.f32.mrf.mxu1  ;;  %4805 = vmatprep.mubr.f32.mxu0 %v9941_v54 }
 0x354   : > { %9976 = vst [vmem:[#allocation71_spill] sm:$0xff] %v8519_v27  ;;  %v8522_v32 = vpop.f32.mrf.mxu0  ;;  %v2698_v9 = vadd.f32 %v6013_v10, %v2533_v51  ;;  %v2539_v10 = vadd.f32 %v8340_v35, %v8372_v21  ;;  %v2870_v13 = vadd.f32 %v8440_v0, %v2691_v12  ;;  %v2569_v0 = vadd.f32 %v8361_v37, %v8394_v50 }
 0x355   : > { %9977 = vst [vmem:[#allocation72_spill] sm:$0xff] %v8522_v32  ;;  %v6091_v44 = vpop.f32.mrf.mxu1  ;;  %5000 = vmatmul.mubr.f32.gmra.mxu1 %v8146_v53  ;;  %v2563_v37 = vadd.f32 %v8367_v25, %v8402_v18 }
 0x356   : > { %v8525_v26 = vpop.f32.mrf.mxu0  ;;  %4807 = vmatmul.mubr.f32.gmra.mxu0 %v8110_v45  ;;  %5005 = vmatprep.mubr.f32.mxu1 %v9941_v54  ;;  %v2545_v45 = vadd.f32 %v8334_v7, %v8365_v5  ;;  %v2878_v61 = vadd.f32 %v8434_v62, %v2698_v9  ;;  %v2705_v7 = vadd.f32 %v8474_v48, %v2539_v10 }
 0x357   : > { %9978 = vst [vmem:[#allocation73_spill] sm:$0xff] %v8525_v26  ;;  %v3225_v47 = vpop.f32.mrf.mxu1  ;;  %4812 = vmatprep.mubr.f32.mxu0 %v9941_v54  ;;  %v2551_v9 = vadd.f32 %v8352_v28, %v8387_v1  ;;  %v2740_v50 = vadd.f32 %v8491_v58, %v2569_v0  ;;  %v2581_v10 = vadd.f32 %v8374_v41, %v8409_v46 }
 0x358   : > { %v8532_v27 = vpop.f32.mrf.mxu0  ;;  %v2712_v40 = vadd.f32 %v6016_v16, %v2545_v45  ;;  %v2886_v1 = vadd.f32 %v8453_v19, %v2705_v7  ;;  %v2733_v25 = vadd.f32 %v8498_v56, %v2563_v37  ;;  %v2575_v41 = vadd.f32 %v8380_v38, %v8418_v34 }
 0x359   : > { %9979 = vst [vmem:[#allocation74_spill] sm:$0xff] %v8532_v27  ;;  %v6094_v32 = vpop.f32.mrf.mxu1  ;;  %5007 = vmatmul.mubr.f32.gmra.mxu1 %v8166_v57  ;;  %v2593_v34 = vadd.f32 %v8391_v22, %v8425_v59  ;;  %v2587_v59 = vadd.f32 %v8396_v11, %v8431_v2  ;;  %v2605_v11 = vadd.f32 %v8405_v23, %v8436_v30  ;;  %v9983_v23 = vld [vmem:[#allocation62_spill] sm:$0xff] }
 0x35a   : > { %v8537_v26 = vpop.f32.mrf.mxu0  ;;  %4814 = vmatmul.mubr.f32.gmra.mxu0 %v8138_v63  ;;  %5012 = vmatprep.mubr.f32.mxu1 %v9941_v54  ;;  %v2557_v63 = vadd.f32 %v8349_v20, %v8383_v52 }
 0x35b   : > { %9980 = vst [vmem:[#allocation75_spill] sm:$0xff] %v8537_v26  ;;  %v3237_v15 = vpop.f32.mrf.mxu1  ;;  %4819 = vmatprep.mubr.f32.mxu0 %v9941_v54 }
 0x35c   : > { %v8544_v27 = vpop.f32.mrf.mxu0  ;;  %v2726_v21 = vadd.f32 %v8479_v24, %v2557_v63 }
 0x35d   : > { %v6097_v51 = vpop.f32.mrf.mxu1  ;;  %5014 = vmatmul.mubr.f32.gmra.mxu1 %v8183_v14 }
 0x35e   : > { %v6065_v26 = vpop.f32.mrf.mxu0  ;;  %4821 = vmatmul.mubr.f32.gmra.mxu0 %v8146_v53  ;;  %5019 = vmatprep.mubr.f32.mxu1 %v9941_v54  ;;  %v2894_v53 = vadd.f32 %v8446_v42, %v2712_v40 }
 0x35f   : > { %v3070_v5 = vadd.f32 %v6065_v26, %v2878_v61  ;;  %v3249_v35 = vpop.f32.mrf.mxu1  ;;  %4826 = vmatprep.mubr.f32.mxu0 %v9941_v54  ;;  %v2719_v26 = vadd.f32 %v8486_v33, %v2551_v9 }
 0x360   : > { %v3063_v62 = vpop.f32.mrf.mxu0 }
 0x361   : > { %v3232_v20 = vadd.f32 %v6091_v44, %v3070_v5  ;;  %v3064_v52 = vadd.f32 %v3063_v62, %v2870_v13  ;;  %v8561_v36 = vpop.f32.mrf.mxu1  ;;  %5021 = vmatmul.mubr.f32.gmra.mxu1 %v8211_v17 }
 0x362   : > { %v6068_v16 = vpop.f32.mrf.mxu0  ;;  %4828 = vmatmul.mubr.f32.gmra.mxu0 %v8166_v57  ;;  %5026 = vmatprep.mubr.f32.mxu1 %v9941_v54  ;;  %v2910_v57 = vadd.f32 %v8458_v29, %v2726_v21  ;;  %v2902_v29 = vadd.f32 %v8463_v43, %v2719_v26  ;;  %v2926_v43 = vadd.f32 %v8466_v3, %v2740_v50  ;;  %v9984_v50 = vld [vmem:[#allocation60_spill] sm:$0xff] }
 0x363   : > { %v3226_v24 = vadd.f32 %v3225_v47, %v3064_v52  ;;  %v3082_v44 = vadd.f32 %v6068_v16, %v2894_v53  ;;  %v8570_v28 = vpop.f32.mrf.mxu1  ;;  %4833 = vmatprep.mubr.f32.mxu0 %v9941_v54  ;;  %v8573_v42 = vmul.f32 200.0, %v3232_v20  ;;  %v2918_v3 = vadd.f32 %v8471_v60, %v2733_v25 }
 0x364   : > { %v3075_v48 = vpop.f32.mrf.mxu0  ;;  %v3791_v16 = vlaneseq }
 0x365   : > { %v3244_v33 = vadd.f32 %v6094_v32, %v3082_v44  ;;  %v3076_v45 = vadd.f32 %v3075_v48, %v2886_v1  ;;  %v8579_v47 = vpop.f32.mrf.mxu1  ;;  %v3339_v19 = vsel %vm3335_vm3, %v8573_v42, -inf  ;;  %5028 = vmatmul.mubr.f32.gmra.mxu1 %v8230_v4  ;;  %v8584_v12 = vmul.f32 200.0, %v3226_v24  ;;  %v9985_v48 = vld [vmem:[#allocation73_spill] sm:$0xff] }
 0x366   : > { %3340 = vmax.xlane.f32.xlu1 %v3339_v19  ;;  %v6071_v18 = vpop.f32.mrf.mxu0  ;;  %4835 = vmatmul.mubr.f32.gmra.mxu0 %v8183_v14  ;;  %v2754_v14 = vadd.f32 %v8503_v39, %v2581_v10  ;;  %v2747_v39 = vadd.f32 %v8510_v8, %v2575_v41  ;;  %v9987_v19 = vmov 0  }
 0x367   : > { %v3238_v58 = vadd.f32 %v3237_v15, %v3076_v45  ;;  %v3094_v32 = vadd.f32 %v6071_v18, %v2910_v57  ;;  %v8591_v40 = vpop.f32.mrf.mxu1  ;;  %v3336_v61 = vsel %vm3335_vm3, %v8584_v12, -inf  ;;  %4840 = vmatprep.mubr.f32.mxu0 %v9941_v54  ;;  %5033 = vmatprep.mubr.f32.mxu1 %v9941_v54  ;;  %v8597_v46 = vmul.f32 200.0, %v3244_v33 }
 0x368   : > { %v3087_v56 = vpop.f32.mrf.mxu0  ;;  %3337 = vmax.xlane.f32.xlu0 %v3336_v61  ;;  %v2942_v60 = vadd.f32 %v8476_v31, %v2754_v14  ;;  %v9982_v31 = vld [vmem:[#allocation65_spill] sm:$0xff]  ;;  %v2782_v57 = vadd.f32 %v9985_v48, %v2605_v11  ;;  %v1908_v25 = vsel %vm1860_vm14, 1, %v9987_v19  ;;  %v9989_v61 = vld [vmem:[#allocation59_spill] sm:$0xff] }
 0x369   : > { %v3256_v15 = vadd.f32 %v6097_v51, %v3094_v32  ;;  %v3088_v63 = vadd.f32 %v3087_v56, %v2902_v29  ;;  %v8603_v7 = vpop.f32.mrf.mxu1  ;;  %v3345_v5 = vsel %vm3335_vm3, %v8597_v46, -inf  ;;  %5035 = vmatmul.mubr.f32.gmra.mxu1 %v8246_v49  ;;  %v8608_v13 = vmul.f32 200.0, %v3238_v58  ;;  %v9990_v14 = vld [vmem:[#allocation63_spill] sm:$0xff]  ;;  %v9991_v56 = vld [vmem:[#allocation61_spill] sm:$0xff] }
 0x36a   : > { %3346 = vmax.xlane.f32.xlu1 %v3345_v5  ;;  %v6074_v38 = vpop.f32.mrf.mxu0  ;;  %4842 = vmatmul.mubr.f32.gmra.mxu0 %v8211_v17  ;;  %v2768_v17 = vadd.f32 %v8515_v55, %v2593_v34  ;;  %v9981_v55 = vld [vmem:[#allocation72_spill] sm:$0xff] }
 0x36b   : > { %v3250_v51 = vadd.f32 %v3249_v35, %v3088_v63  ;;  %v3106_v9 = vadd.f32 %v6074_v38, %v2926_v43  ;;  %v8615_v21 = vpop.f32.mrf.mxu1  ;;  %v3342_v62 = vsel %vm3335_vm3, %v8608_v13, -inf  ;;  %4847 = vmatprep.mubr.f32.mxu0 %v9941_v54  ;;  %5040 = vmatprep.mubr.f32.mxu1 %v9941_v54  ;;  %v8621_v22 = vmul.f32 200.0, %v3256_v15  ;;  %v9992_v15 = vld [vmem:[#allocation74_spill] sm:$0xff] }
 0x36c   : > { %v3099_v8 = vpop.f32.mrf.mxu0  ;;  %3343 = vmax.xlane.f32.xlu0 %v3342_v62  ;;  %v2761_v2 = vadd.f32 %v9981_v55, %v2587_v59  ;;  %v2617_v43 = vadd.f32 %v9991_v56, %v9990_v14  ;;  %v9994_v59 = vld [vmem:[#allocation75_spill] sm:$0xff] }
 0x36d   : > { %v3268_v35 = vadd.f32 %v8561_v36, %v3106_v9  ;;  %v3100_v20 = vadd.f32 %v3099_v8, %v2918_v3  ;;  %v8628_v52 = vpop.f32.mrf.mxu1  ;;  %v3351_v53 = vsel %vm3335_vm3, %v8621_v22, -inf  ;;  %5042 = vmatmul.mubr.f32.gmra.mxu1 %v8262_v6  ;;  %v8633_v0 = vmul.f32 200.0, %v3250_v51 }
 0x36e   : > { %3352 = vmax.xlane.f32.xlu1 %v3351_v53  ;;  %v6077_v26 = vpop.f32.mrf.mxu0  ;;  %4849 = vmatmul.mubr.f32.gmra.mxu0 %v8230_v4  ;;  %v2934_v36 = vadd.f32 %v9982_v31, %v2747_v39  ;;  %v2599_v4 = vadd.f32 %v9984_v50, %v9983_v23  ;;  %v3792_v39 = vshrl.u32 %v3791_v16, 7  ;;  %v8842_v16 = vpop.xlane.xlu1 %1954 }
 0x36f   : > { %v3262_v24 = vadd.f32 %v8570_v28, %v3100_v20  ;;  %v3118_v44 = vadd.f32 %v6077_v26, %v2942_v60  ;;  %v8641_v1 = vpop.f32.mrf.mxu1  ;;  %v3348_v37 = vsel %vm3335_vm3, %v8633_v0, -inf  ;;  %4854 = vmatprep.mubr.f32.mxu0 %v9941_v54  ;;  %5047 = vmatprep.mubr.f32.mxu1 %v9941_v54  ;;  %v8647_v30 = vmul.f32 200.0, %v3268_v35  ;;  %v9986_v28 = vld [vmem:[#allocation66_spill] sm:$0xff] }
 0x370   : > { %v3111_v33 = vpop.f32.mrf.mxu0  ;;  %3349 = vmax.xlane.f32.xlu0 %v3348_v37  ;;  %v2958_v45 = vadd.f32 %v9986_v28, %v2768_v17  ;;  %v2775_v63 = vadd.f32 %v9992_v15, %v2599_v4  ;;  %v2796_v17 = vadd.f32 %v9994_v59, %v2617_v43  ;;  %v3793_v31 = vsub.s32 0, %v3792_v39  ;;  %v3789_v4 = vld [vmem:[%s9649_s7] sm:$0x3] }
 0x371   : > { %v3280_v18 = vadd.f32 %v8579_v47, %v3118_v44  ;;  %v3112_v29 = vadd.f32 %v3111_v33, %v2934_v36  ;;  %v8657_v58 = vpop.f32.mrf.mxu1  ;;  %v3357_v32 = vsel %vm3335_vm3, %v8647_v30, -inf  ;;  %5049 = vmatmul.mubr.f32.gmra.mxu1 %v9989_v61  ;;  %v8662_v41 = vmul.f32 200.0, %v3262_v24  ;;  %v9993_v47 = vld [vmem:[#allocation67_spill] sm:$0xff]  ;;  %v8689_v36 = vld [vmem:[%s9646_s4] ss:$0 sm:$0xff] }
 0x372   : > { %3358 = vmax.xlane.f32.xlu1 %v3357_v32  ;;  %v6080_v5 = vpop.f32.mrf.mxu0  ;;  %4856 = vmatmul.mubr.f32.gmra.mxu0 %v8246_v49  ;;  %v2950_v34 = vadd.f32 %v9993_v47, %v2761_v2  ;;  %v9995_v49 = vld [vmem:[#allocation68_spill] sm:$0xff]  ;;  %v9996_v2 = vld [vmem:[#allocation69_spill] sm:$0xff]  ;;  %v1909_v24 = vsel %vm1861_vm15, 1, %v9987_v19  ;;  %v3797_v28 = vsub.s32 1, %v3792_v39  ;;  %v8711_v32 = vrot.slane %v3789_v4, %v3793_v31 }
 0x373   : > { %v3274_v38 = vadd.f32 %v8591_v40, %v3112_v29  ;;  %v3130_v3 = vadd.f32 %v6080_v5, %v2958_v45  ;;  %v8670_v51 = vpop.f32.mrf.mxu1  ;;  %v3354_v9 = vsel %vm3335_vm3, %v8662_v41, -inf  ;;  %4861 = vmatprep.mubr.f32.mxu0 %v9941_v54  ;;  %v8675_v62 = vmul.f32 200.0, %v3280_v18 }
 0x374   : > { %v3123_v8 = vpop.f32.mrf.mxu0  ;;  %3355 = vmax.xlane.f32.xlu0 %v3354_v9  ;;  %v2974_v60 = vadd.f32 %v9995_v49, %v2782_v57  ;;  %v2966_v26 = vadd.f32 %v9996_v2, %v2775_v63  ;;  %v9998_v57 = vld [vmem:[#allocation70_spill] sm:$0xff]  ;;  %v1930_v56 = vmul.u32 %v8689_v36, %v1909_v24  ;;  %v1911_v31 = vsel %vm1863_vm2, 1, %v9987_v19 }
 0x375   : > { %v3292_v35 = vadd.f32 %v8603_v7, %v3130_v3  ;;  %v3124_v20 = vadd.f32 %v3123_v8, %v2950_v34  ;;  %v4175_v40 = vpop.f32.mrf.mxu1  ;;  %v3363_v53 = vsel %vm3335_vm3, %v8675_v62, -inf  ;;  %v8682_v11 = vmul.f32 200.0, %v3274_v38  ;;  %10019 = vst [vmem:[#allocation70_spill] sm:$0xff] %v8842_v16 }
 0x376   : > { %3364 = vmax.xlane.f32.xlu1 %v3363_v53  ;;  %v6083_v55 = vpop.f32.mrf.mxu0  ;;  %4863 = vmatmul.mubr.f32.gmra.mxu0 %v8262_v6  ;;  %v1929_v7 = vmul.u32 %v8689_v36, %v1908_v25  ;;  %v2990_v33 = vadd.f32 %v9998_v57, %v2796_v17  ;;  %v1910_v34 = vsel %vm1862_vm1, 1, %v9987_v19  ;;  %v8728_v3 = vrot.slane %v3789_v4, %v3797_v28 }
 0x377   : > { %v3286_v44 = vadd.f32 %v8615_v21, %v3124_v20  ;;  %v3142_v37 = vadd.f32 %v6083_v55, %v2974_v60  ;;  %v4177_v23 = vpop.f32.mrf.mxu1  ;;  %v3360_v6 = vsel %vm3335_vm3, %v8682_v11, -inf  ;;  %4868 = vmatprep.mubr.f32.mxu0 %v9941_v54  ;;  %v8699_v50 = vmul.f32 200.0, %v3292_v35  ;;  %v10000_v55 = vld [vmem:[#allocation32_spill] sm:$0xff] }
 0x378   : > { %v3135_v48 = vpop.f32.mrf.mxu0  ;;  %3361 = vmax.xlane.f32.xlu0 %v3360_v6  ;;  %v2077_v14 = vsel %vm1752_vm0, %v1929_v7, 0  ;;  %v2090_v8 = vsel %vm1752_vm0, %v1930_v56, 0  ;;  %v1931_v20 = vmul.u32 %v8689_v36, %v1910_v34  ;;  %v2066_v2 = vshrl.u32 %v10000_v55, 16 }
 0x379   : > { %v3304_v21 = vadd.f32 %v8628_v52, %v3142_v37  ;;  %v3136_v45 = vadd.f32 %v3135_v48, %v2966_v26  ;;  %v4182_v25 = vpop.f32.mrf.mxu1  ;;  %v3369_v18 = vsel %vm3335_vm3, %v8699_v50, -inf  ;;  %v8708_v29 = vmul.f32 200.0, %v3286_v44 }
 0x37a   : > { %3370 = vmax.xlane.f32.xlu1 %v3369_v18  ;;  %v6086_v54 = vpop.f32.mrf.mxu0  ;;  %4870 = vmatmul.mubr.f32.gmra.mxu0 %v9989_v61  ;;  %v2078_v17 = vand.u32 65535, %v2077_v14  ;;  %v2091_v48 = vand.u32 65535, %v2090_v8  ;;  %v2103_v28 = vsel %vm1752_vm0, %v1931_v20, 0  ;;  %v2079_v56 = vshrl.u32 %v2077_v14, 16 }
 0x37b   : > { %v3298_v43 = vadd.f32 %v8641_v1, %v3136_v45  ;;  %v3154_v52 = vadd.f32 %v6086_v54, %v2990_v33  ;;  %v4184_v15 = vpop.f32.mrf.mxu1  ;;  %v3366_v63 = vsel %vm3335_vm3, %v8708_v29, -inf  ;;  %v8718_v5 = vmul.f32 200.0, %v3304_v21 }
 0x37c   : > { %v8720_v47 = vpop.f32.mrf.mxu0  ;;  %3367 = vmax.xlane.f32.xlu0 %v3366_v63  ;;  %v2080_v4 = vcvt.s32.f32 %v2078_v17  ;;  %v1932_v21 = vmul.u32 %v8689_v36, %v1911_v31  ;;  %v2068_v54 = vcvt.s32.f32 %v2066_v2  ;;  %v2104_v17 = vand.u32 65535, %v2103_v28  ;;  %v10004_v2 = vld [vmem:[#allocation71_spill] sm:$0xff] }
 0x37d   : > { %v3316_v39 = vadd.f32 %v8657_v58, %v3154_v52  ;;  %v4189_v38 = vpop.f32.mrf.mxu1  ;;  %v3375_v1 = vsel %vm3335_vm3, %v8718_v5, -inf  ;;  %v8730_v9 = vmul.f32 200.0, %v3298_v43  ;;  %v1912_v43 = vsel %vm1864_vm13, 1, %v9987_v19  ;;  %v10003_v52 = vld [vmem:[#allocation64_spill] sm:$0xff] }
 0x37e   : > { %3376 = vmax.xlane.f32.xlu1 %v3375_v1  ;;  %v3928_v59 = vpop.f32.mrf.mxu0  ;;  %v2789_v63 = vadd.f32 %v8544_v27, %v10003_v52  ;;  %v2116_v14 = vsel %vm1752_vm0, %v1932_v21, 0  ;;  %v1933_v20 = vmul.u32 %v8689_v36, %v1912_v43  ;;  %v2081_v27 = vcvt.s32.f32 %v2079_v56 }
 0x37f   : > { %v3929_v49 = vadd.f32 %v3928_v59, %v8711_v32  ;;  %v4191_v60 = vpop.f32.mrf.mxu1  ;;  %v3372_v35 = vsel %vm3335_vm3, %v8730_v9, -inf  ;;  %v8736_v58 = vmul.f32 200.0, %v3316_v39  ;;  %v2092_v55 = vshrl.u32 %v2090_v8, 16 }
 0x380   : > { %v3930_v53 = vpop.f32.mrf.mxu0  ;;  %3373 = vmax.xlane.f32.xlu0 %v3372_v35  ;;  %v2129_v21 = vsel %vm1752_vm0, %v1933_v20, 0  ;;  %v2105_v56 = vshrl.u32 %v2103_v28, 16  ;;  %v2118_v28 = vshrl.u32 %v2116_v14, 16 }
 0x381   : > { %v3931_v7 = vadd.f32 %v3930_v53, %v8728_v3  ;;  %v4196_v24 = vpop.f32.mrf.mxu1  ;;  %v3381_v44 = vsel %vm3335_vm3, %v8736_v58, -inf  ;;  %v8746_v37 = vadd.f32 %v4175_v40, %v3929_v49 }
 0x382   : > { %3382 = vmax.xlane.f32.xlu1 %v3381_v44  ;;  %v3939_v6 = vpop.f32.mrf.mxu0 }
 0x383   : > { %v3940_v57 = vadd.f32 %v3939_v6, %v8711_v32  ;;  %v4198_v33 = vpop.f32.mrf.mxu1  ;;  %v8751_v45 = vadd.f32 %v4177_v23, %v3931_v7  ;;  %v2093_v23 = vcvt.s32.f32 %v2091_v48  ;;  %v2117_v48 = vand.u32 65535, %v2116_v14 }
 0x384   : > { %v3941_v18 = vpop.f32.mrf.mxu0  ;;  %2082 = vadd.xlane.f32.xlu0 %v2080_v4  ;;  %v2106_v4 = vcvt.s32.f32 %v2104_v17 }
 0x385   : > { %v3942_v34 = vadd.f32 %v3941_v18, %v8728_v3  ;;  %v4203_v39 = vpop.f32.mrf.mxu1  ;;  %v8759_v1 = vadd.f32 %v4182_v25, %v3940_v57  ;;  %v2982_v25 = vadd.f32 %v10004_v2, %v2789_v63  ;;  %v2119_v63 = vcvt.s32.f32 %v2117_v48 }
 0x386   : > { %2071 = vadd.xlane.f32.xlu1 %v2068_v54  ;;  %v3950_v59 = vpop.f32.mrf.mxu0  ;;  %v2094_v54 = vcvt.s32.f32 %v2092_v55 }
 0x387   : > { %v3951_v49 = vadd.f32 %v3950_v59, %v8711_v32  ;;  %v4205_v35 = vpop.f32.mrf.mxu1  ;;  %v8764_v19 = vadd.f32 %v4184_v15, %v3942_v34  ;;  %v3148_v57 = vadd.f32 %v8720_v47, %v2982_v25  ;;  %v2130_v47 = vand.u32 65535, %v2129_v21 }
 0x388   : > { %v3952_v53 = vpop.f32.mrf.mxu0  ;;  %2095 = vadd.xlane.f32.xlu0 %v2093_v23 }
 0x389   : > { %v3953_v31 = vadd.f32 %v3952_v53, %v8728_v3  ;;  %v4210_v7 = vpop.f32.mrf.mxu1  ;;  %v8768_v44 = vadd.f32 %v4189_v38, %v3951_v49  ;;  %v3310_v34 = vadd.f32 %v8670_v51, %v3148_v57  ;;  %v2107_v49 = vcvt.s32.f32 %v2105_v56 }
 0x38a   : > { %2084 = vadd.xlane.f32.xlu1 %v2081_v27  ;;  %v3961_v6 = vpop.f32.mrf.mxu0  ;;  %v2132_v55 = vcvt.s32.f32 %v2130_v47 }
 0x38b   : > { %v3962_v36 = vadd.f32 %v3961_v6, %v8711_v32  ;;  %v4212_v15 = vpop.f32.mrf.mxu1  ;;  %v8773_v18 = vadd.f32 %v4191_v60, %v3953_v31  ;;  %v8786_v25 = vmul.f32 200.0, %v3310_v34  ;;  %v2120_v6 = vcvt.s32.f32 %v2118_v28 }
 0x38c   : > { %v3963_v8 = vpop.f32.mrf.mxu0  ;;  %2108 = vadd.xlane.f32.xlu0 %v2106_v4  ;;  %v2131_v4 = vshrl.u32 %v2129_v21, 16 }
 0x38d   : > { %v3964_v38 = vadd.f32 %v3963_v8, %v8728_v3  ;;  %v4217_v40 = vpop.f32.mrf.mxu1  ;;  %v8776_v43 = vadd.f32 %v4196_v24, %v3962_v36  ;;  %10005 = vst [vmem:[#allocation72_spill] sm:$0xff] %v8786_v25 }
 0x38e   : > { %2097 = vadd.xlane.f32.xlu1 %v2094_v54  ;;  %v3972_v52 = vpop.f32.mrf.mxu0  ;;  %v3378_v54 = vsel %vm3335_vm3, %v8786_v25, -inf }
 0x38f   : > { %v3973_v59 = vadd.f32 %v3972_v52, %v8711_v32  ;;  %v4219_v23 = vpop.f32.mrf.mxu1  ;;  %v8780_v60 = vadd.f32 %v4198_v33, %v3964_v38  ;;  %v2133_v38 = vcvt.s32.f32 %v2131_v4 }
 0x390   : > { %v3974_v17 = vpop.f32.mrf.mxu0  ;;  %2121 = vadd.xlane.f32.xlu0 %v2119_v63 }
 0x391   : > { %v3975_v20 = vadd.f32 %v3974_v17, %v8728_v3  ;;  %v4224_v53 = vpop.f32.mrf.mxu1  ;;  %v8783_v24 = vadd.f32 %v4203_v39, %v3973_v59 }
 0x392   : > { %2110 = vadd.xlane.f32.xlu1 %v2107_v49  ;;  %v3983_v27 = vpop.f32.mrf.mxu0 }
 0x393   : > { %v3984_v2 = vadd.f32 %v3983_v27, %v8711_v32  ;;  %v4226_v51 = vpop.f32.mrf.mxu1  ;;  %v8788_v31 = vadd.f32 %v4205_v35, %v3975_v20 }
 0x394   : > { %v3985_v33 = vpop.f32.mrf.mxu0  ;;  %2134 = vadd.xlane.f32.xlu0 %v2132_v55 }
 0x395   : > { %v3986_v14 = vadd.f32 %v3985_v33, %v8728_v3  ;;  %v4231_v48 = vpop.f32.mrf.mxu1  ;;  %v8791_v57 = vadd.f32 %v4210_v7, %v3984_v2 }
 0x396   : > { %v3994_v39 = vpop.f32.mrf.mxu0  ;;  %2123 = vadd.xlane.f32.xlu1 %v2120_v6 }
 0x397   : > { %v3995_v36 = vadd.f32 %v3994_v39, %v8711_v32  ;;  %v4233_v8 = vpop.f32.mrf.mxu1  ;;  %v8796_v56 = vadd.f32 %v4212_v15, %v3986_v14 }
 0x398   : > { %v3996_v35 = vpop.f32.mrf.mxu0  ;;  %3379 = vmax.xlane.f32.xlu0 %v3378_v54 }
 0x399   : > { %v3997_v21 = vadd.f32 %v3996_v35, %v8728_v3  ;;  %v4238_v52 = vpop.f32.mrf.mxu1  ;;  %v8799_v63 = vadd.f32 %v4217_v40, %v3995_v36 }
 0x39a   : > { %v4005_v7 = vpop.f32.mrf.mxu0  ;;  %2136 = vadd.xlane.f32.xlu1 %v2133_v38 }
 0x39b   : > { %v4006_v47 = vadd.f32 %v4005_v7, %v8711_v32  ;;  %v4240_v34 = vpop.f32.mrf.mxu1  ;;  %v8802_v59 = vadd.f32 %v4219_v23, %v3997_v21 }
 0x39c   : > { %v4007_v17 = vpop.f32.mrf.mxu0 }
 0x39d   : > { %v4008_v49 = vadd.f32 %v4007_v17, %v8728_v3  ;;  %v4245_v15 = vpop.f32.mrf.mxu1  ;;  %v8805_v28 = vadd.f32 %v4224_v53, %v4006_v47 }
 0x39e   : > { %v4016_v20 = vpop.f32.mrf.mxu0 }
 0x39f   : > { %10006 = vst [vmem:[#allocation65_spill] sm:$0xff] %v8805_v28  ;;  %v4017_v27 = vadd.f32 %v4016_v20, %v8711_v32  ;;  %v4247_v55 = vpop.f32.mrf.mxu1  ;;  %v8808_v2 = vadd.f32 %v4226_v51, %v4008_v49 }
 0x3a0   : > { %v4018_v40 = vpop.f32.mrf.mxu0 }
 0x3a1   : > { %10007 = vst [vmem:[#allocation62_spill] sm:$0xff] %v8808_v2  ;;  %v4019_v33 = vadd.f32 %v4018_v40, %v8728_v3  ;;  %v4252_v6 = vpop.f32.mrf.mxu1  ;;  %v8811_v4 = vadd.f32 %v4231_v48, %v4017_v27 }
 0x3a2   : > { %v4027_v23 = vpop.f32.mrf.mxu0 }
 0x3a3   : > { %10008 = vst [vmem:[#allocation60_spill] sm:$0xff] %v8811_v4  ;;  %v4028_v14 = vadd.f32 %v4027_v23, %v8711_v32  ;;  %v4254_v39 = vpop.f32.mrf.mxu1  ;;  %v8814_v36 = vadd.f32 %v4233_v8, %v4019_v33 }
 0x3a4   : > { %v4029_v53 = vpop.f32.mrf.mxu0 }
 0x3a5   : > { %10009 = vst [vmem:[#allocation73_spill] sm:$0xff] %v8814_v36  ;;  %v4030_v54 = vadd.f32 %v4029_v53, %v8728_v3  ;;  %v4259_v35 = vpop.f32.mrf.mxu1  ;;  %v8817_v38 = vadd.f32 %v4238_v52, %v4028_v14 }
 0x3a6   : > { %v4038_v51 = vpop.f32.mrf.mxu0 }
 0x3a7   : > { %10010 = vst [vmem:[#allocation66_spill] sm:$0xff] %v8817_v38  ;;  %v4039_v21 = vadd.f32 %v4038_v51, %v8711_v32  ;;  %v4261_v7 = vpop.f32.mrf.mxu1  ;;  %v8820_v47 = vadd.f32 %v4240_v34, %v4030_v54 }
 0x3a8   : > { %v4040_v48 = vpop.f32.mrf.mxu0 }
 0x3a9   : > { %10011 = vst [vmem:[#allocation59_spill] sm:$0xff] %v8820_v47  ;;  %v4041_v17 = vadd.f32 %v4040_v48, %v8728_v3  ;;  %v4266_v49 = vpop.f32.mrf.mxu1  ;;  %v8823_v20 = vadd.f32 %v4245_v15, %v4039_v21  ;;  %v8834_v21 = vpop.xlane.xlu0 %1952 }
 0x3aa   : > { %v4049_v8 = vpop.f32.mrf.mxu0  ;;  %10016 = vst [vmem:[#allocation75_spill] sm:$0xff] %v8834_v21 }
 0x3ab   : > { %10012 = vst [vmem:[#allocation63_spill] sm:$0xff] %v8823_v20  ;;  %v4050_v27 = vadd.f32 %v4049_v8, %v8711_v32  ;;  %v4268_v40 = vpop.f32.mrf.mxu1  ;;  %v8826_v33 = vadd.f32 %v4247_v55, %v4041_v17 }
 0x3ac   : > { %v4051_v52 = vpop.f32.mrf.mxu0 }
 0x3ad   : > { %10013 = vst [vmem:[#allocation61_spill] sm:$0xff] %v8826_v33  ;;  %v4052_v23 = vadd.f32 %v4051_v52, %v8728_v3  ;;  %v4273_v14 = vpop.f32.mrf.mxu1  ;;  %v8829_v53 = vadd.f32 %v4252_v6, %v4050_v27 }
 0x3ae   : > { %v4060_v34 = vpop.f32.mrf.mxu0 }
 0x3af   : > { %10014 = vst [vmem:[#allocation74_spill] sm:$0xff] %v8829_v53  ;;  %v4061_v54 = vadd.f32 %v4060_v34, %v8711_v32  ;;  %v4275_v51 = vpop.f32.mrf.mxu1  ;;  %v8832_v48 = vadd.f32 %v4254_v39, %v4052_v23 }
 0x3b0   : > { %v4062_v15 = vpop.f32.mrf.mxu0 }
 0x3b1   : > { %10015 = vst [vmem:[#allocation67_spill] sm:$0xff] %v8832_v48  ;;  %v4063_v8 = vadd.f32 %v4062_v15, %v8728_v3  ;;  %v4280_v26 = vpop.f32.mrf.mxu1  ;;  %v8837_v55 = vadd.f32 %v4259_v35, %v4061_v54  ;;  %v8849_v15 = vpop.xlane.xlu0 %1939 }
 0x3b2   : > { %v4071_v17 = vpop.f32.mrf.mxu0  ;;  %10021 = vst [vmem:[#allocation30_spill] sm:$0xff] %v8849_v15 }
 0x3b3   : > { %10017 = vst [vmem:[#allocation68_spill] sm:$0xff] %v8837_v55  ;;  %v4072_v52 = vadd.f32 %v4071_v17, %v8711_v32  ;;  %v4282_v61 = vpop.f32.mrf.mxu1  ;;  %v8840_v6 = vadd.f32 %v4261_v7, %v4063_v8 }
 0x3b4   : > { %v4073_v27 = vpop.f32.mrf.mxu0 }
 0x3b5   : > { %10018 = vst [vmem:[#allocation69_spill] sm:$0xff] %v8840_v6  ;;  %v4074_v39 = vadd.f32 %v4073_v27, %v8728_v3  ;;  %v8845_v23 = vpop.f32.mrf.mxu1  ;;  %v8847_v34 = vadd.f32 %v4266_v49, %v4072_v52  ;;  %v8861_v6 = vpop.xlane.xlu1 %1941 }
 0x3b6   : > { %v4082_v21 = vpop.f32.mrf.mxu0  ;;  %10024 = vst [vmem:[#allocation76_spill] sm:$0xff] %v8861_v6 }
 0x3b7   : > { %10020 = vst [vmem:[#allocation32_spill] sm:$0xff] %v8847_v34  ;;  %v4083_v35 = vadd.f32 %v4082_v21, %v8711_v32  ;;  %v8852_v54 = vpop.f32.mrf.mxu1  ;;  %v8854_v17 = vadd.f32 %v4268_v40, %v4074_v39  ;;  %v8868_v34 = vpop.xlane.xlu0 %1978 }
 0x3b8   : > { %v4084_v7 = vpop.f32.mrf.mxu0  ;;  %10026 = vst [vmem:[#allocation78_spill] sm:$0xff] %v8868_v34 }
 0x3b9   : > { %10022 = vst [vmem:[#allocation64_spill] sm:$0xff] %v8854_v17  ;;  %v4085_v8 = vadd.f32 %v4084_v7, %v8728_v3  ;;  %v8857_v10 = vpop.f32.mrf.mxu1  ;;  %v8859_v16 = vadd.f32 %v4273_v14, %v4083_v35 }
 0x3ba   : > { %v4093_v27 = vpop.f32.mrf.mxu0 }
 0x3bb   : > { %10023 = vst [vmem:[#allocation71_spill] sm:$0xff] %v8859_v16  ;;  %v4094_v49 = vadd.f32 %v4093_v27, %v8711_v32  ;;  %v8864_v52 = vpop.f32.mrf.mxu1  ;;  %v8866_v15 = vadd.f32 %v4275_v51, %v4085_v8  ;;  %v8883_v27 = vpop.xlane.xlu1 %1980 }
 0x3bc   : > { %v4095_v21 = vpop.f32.mrf.mxu0  ;;  %10029 = vst [vmem:[#allocation81_spill] sm:$0xff] %v8883_v27  ;;  %v8889_v34 = vpop.xlane.xlu0 %1965 }
 0x3bd   : > { %10025 = vst [vmem:[#allocation77_spill] sm:$0xff] %v8866_v15  ;;  %v4096_v40 = vadd.f32 %v4095_v21, %v8728_v3  ;;  %v8871_v39 = vpop.f32.mrf.mxu1  ;;  %v8873_v7 = vadd.f32 %v4280_v26, %v4094_v49  ;;  %10030 = vst [vmem:[#allocation82_spill] sm:$0xff] %v8889_v34 }
 0x3be   : > { %v8875_v14 = vpop.f32.mrf.mxu0 }
 0x3bf   : > { %10027 = vst [vmem:[#allocation79_spill] sm:$0xff] %v8873_v7  ;;  %v8877_v35 = vpop.f32.mrf.mxu1  ;;  %v8879_v6 = vadd.f32 %v4282_v61, %v4096_v40  ;;  %v8899_v61 = vpop.xlane.xlu1 %1967 }
 0x3c0   : > { %v8881_v32 = vpop.f32.mrf.mxu0  ;;  %10031 = vst [vmem:[#allocation83_spill] sm:$0xff] %v8899_v61  ;;  %v8905_v27 = vpop.xlane.xlu0 %2004 }
 0x3c1   : > { %10028 = vst [vmem:[#allocation80_spill] sm:$0xff] %v8879_v6  ;;  %v8885_v51 = vpop.f32.mrf.mxu1  ;;  %10032 = vst [vmem:[#allocation84_spill] sm:$0xff] %v8905_v27 }
 0x3c2   : > { %v8887_v8 = vpop.f32.mrf.mxu0 }
 0x3c3   : > { %v8891_v3 = vpop.f32.mrf.mxu1  ;;  %v8915_v17 = vpop.xlane.xlu1 %2006 }
 0x3c4   : > { %v8893_v26 = vpop.f32.mrf.mxu0  ;;  %10034 = vst [vmem:[#allocation86_spill] sm:$0xff] %v8915_v17  ;;  %v8921_v61 = vpop.xlane.xlu0 %1991 }
 0x3c5   : > { %v8895_v49 = vpop.f32.mrf.mxu1  ;;  %10036 = vst [vmem:[#allocation88_spill] sm:$0xff] %v8921_v61 }
 0x3c6   : > { %v8897_v21 = vpop.f32.mrf.mxu0 }
 0x3c7   : > { %v8901_v40 = vpop.f32.mrf.mxu1  ;;  %v8931_v20 = vpop.xlane.xlu1 %1993 }
 0x3c8   : > { %v8903_v6 = vpop.f32.mrf.mxu0  ;;  %10039 = vst [vmem:[#allocation91_spill] sm:$0xff] %v8931_v20  ;;  %v8937_v17 = vpop.xlane.xlu0 %2030 }
 0x3c9   : > { %v8907_v7 = vpop.f32.mrf.mxu1  ;;  %10041 = vst [vmem:[#allocation93_spill] sm:$0xff] %v8937_v17 }
 0x3ca   : > { %v8909_v15 = vpop.f32.mrf.mxu0 }
 0x3cb   : > { %v8911_v34 = vpop.f32.mrf.mxu1  ;;  %v8947_v2 = vpop.xlane.xlu1 %2032 }
 0x3cc   : > { %10033 = vst [vmem:[#allocation85_spill] sm:$0xff] %v8911_v34  ;;  %v8913_v16 = vpop.f32.mrf.mxu0  ;;  %10045 = vst [vmem:[#allocation97_spill] sm:$0xff] %v8947_v2  ;;  %v8953_v20 = vpop.xlane.xlu0 %2017 }
 0x3cd   : > { %v8917_v55 = vpop.f32.mrf.mxu1  ;;  %10048 = vst [vmem:[#allocation100_spill] sm:$0xff] %v8953_v20 }
 0x3ce   : > { %10035 = vst [vmem:[#allocation87_spill] sm:$0xff] %v8917_v55  ;;  %v8919_v48 = vpop.f32.mrf.mxu0 }
 0x3cf   : > { %v8923_v53 = vpop.f32.mrf.mxu1  ;;  %v8963_v34 = vpop.xlane.xlu1 %2019 }
 0x3d0   : > { %10037 = vst [vmem:[#allocation89_spill] sm:$0xff] %v8923_v53  ;;  %v8925_v33 = vpop.f32.mrf.mxu0  ;;  %10053 = vst [vmem:[#allocation105_spill] sm:$0xff] %v8963_v34  ;;  %v8969_v2 = vpop.xlane.xlu0 %2056 }
 0x3d1   : > { %v8927_v27 = vpop.f32.mrf.mxu1  ;;  %10056 = vst [vmem:[#allocation108_spill] sm:$0xff] %v8969_v2 }
 0x3d2   : > { %10038 = vst [vmem:[#allocation90_spill] sm:$0xff] %v8927_v27  ;;  %v8929_v25 = vpop.f32.mrf.mxu0 }
 0x3d3   : > { %v8933_v47 = vpop.f32.mrf.mxu1 }
 0x3d4   : > { %10040 = vst [vmem:[#allocation92_spill] sm:$0xff] %v8933_v47  ;;  %v8935_v38 = vpop.f32.mrf.mxu0  ;;  %v8985_v34 = vpop.xlane.xlu0 %2043 }
 0x3d5   : > { %v8939_v36 = vpop.f32.mrf.mxu1  ;;  %10064 = vst [vmem:[#allocation116_spill] sm:$0xff] %v8985_v34 }
 0x3d6   : > { %10042 = vst [vmem:[#allocation94_spill] sm:$0xff] %v8939_v36  ;;  %v8941_v4 = vpop.f32.mrf.mxu0 }
 0x3d7   : > { %v8943_v61 = vpop.f32.mrf.mxu1 }
 0x3d8   : > { %10043 = vst [vmem:[#allocation95_spill] sm:$0xff] %v8943_v61  ;;  %v8945_v53 = vpop.f32.mrf.mxu0 }
 0x3d9   : > { %10044 = vst [vmem:[#allocation96_spill] sm:$0xff] %v8945_v53  ;;  %v8949_v27 = vpop.f32.mrf.mxu1 }
 0x3da   : > { %10046 = vst [vmem:[#allocation98_spill] sm:$0xff] %v8949_v27  ;;  %v8951_v55 = vpop.f32.mrf.mxu0 }
 0x3db   : > { %10047 = vst [vmem:[#allocation99_spill] sm:$0xff] %v8951_v55  ;;  %v8955_v47 = vpop.f32.mrf.mxu1 }
 0x3dc   : > { %10049 = vst [vmem:[#allocation101_spill] sm:$0xff] %v8955_v47  ;;  %v8957_v28 = vpop.f32.mrf.mxu0 }
 0x3dd   : > { %10050 = vst [vmem:[#allocation102_spill] sm:$0xff] %v8957_v28  ;;  %v8959_v17 = vpop.f32.mrf.mxu1  ;;  %v8979_v28 = vpop.xlane.xlu1 %2058 }
 0x3de   : > { %10051 = vst [vmem:[#allocation103_spill] sm:$0xff] %v8959_v17  ;;  %v8961_v36 = vpop.f32.mrf.mxu0  ;;  %10061 = vst [vmem:[#allocation113_spill] sm:$0xff] %v8979_v28  ;;  %v9001_v28 = vpop.xlane.xlu0 %2069 }
 0x3df   : > { %10052 = vst [vmem:[#allocation104_spill] sm:$0xff] %v8961_v36  ;;  %v8965_v61 = vpop.f32.mrf.mxu1  ;;  %10072 = vst [vmem:[#allocation124_spill] sm:$0xff] %v9001_v28 }
 0x3e0   : > { %10054 = vst [vmem:[#allocation106_spill] sm:$0xff] %v8965_v61  ;;  %v8967_v53 = vpop.f32.mrf.mxu0 }
 0x3e1   : > { %10055 = vst [vmem:[#allocation107_spill] sm:$0xff] %v8967_v53  ;;  %v8971_v27 = vpop.f32.mrf.mxu1 }
 0x3e2   : > { %10057 = vst [vmem:[#allocation109_spill] sm:$0xff] %v8971_v27  ;;  %v8973_v55 = vpop.f32.mrf.mxu0 }
 0x3e3   : > { %10058 = vst [vmem:[#allocation110_spill] sm:$0xff] %v8973_v55  ;;  %v8975_v20 = vpop.f32.mrf.mxu1  ;;  %v8995_v55 = vpop.xlane.xlu1 %2045 }
 0x3e4   : > { %10059 = vst [vmem:[#allocation111_spill] sm:$0xff] %v8975_v20  ;;  %v8977_v47 = vpop.f32.mrf.mxu0  ;;  %10069 = vst [vmem:[#allocation121_spill] sm:$0xff] %v8995_v55 }
 0x3e5   : > { %10060 = vst [vmem:[#allocation112_spill] sm:$0xff] %v8977_v47  ;;  %v8981_v17 = vpop.f32.mrf.mxu1 }
 0x3e6   : > { %10062 = vst [vmem:[#allocation114_spill] sm:$0xff] %v8981_v17  ;;  %v8983_v36 = vpop.f32.mrf.mxu0 }
 0x3e7   : > { %10063 = vst [vmem:[#allocation115_spill] sm:$0xff] %v8983_v36  ;;  %v8987_v61 = vpop.f32.mrf.mxu1 }
 0x3e8   : > { %10065 = vst [vmem:[#allocation117_spill] sm:$0xff] %v8987_v61  ;;  %v8989_v53 = vpop.f32.mrf.mxu0 }
 0x3e9   : > { %10066 = vst [vmem:[#allocation118_spill] sm:$0xff] %v8989_v53  ;;  %v8991_v2 = vpop.f32.mrf.mxu1 }
 0x3ea   : > { %10067 = vst [vmem:[#allocation119_spill] sm:$0xff] %v8991_v2  ;;  %v8993_v27 = vpop.f32.mrf.mxu0 }
 0x3eb   : > { %10068 = vst [vmem:[#allocation120_spill] sm:$0xff] %v8993_v27  ;;  %v8997_v20 = vpop.f32.mrf.mxu1 }
 0x3ec   : > { %10070 = vst [vmem:[#allocation122_spill] sm:$0xff] %v8997_v20  ;;  %v8999_v47 = vpop.f32.mrf.mxu0 }
 0x3ed   : > { %10071 = vst [vmem:[#allocation123_spill] sm:$0xff] %v8999_v47  ;;  %v9003_v17 = vpop.f32.mrf.mxu1 }
 0x3ee   : > { %10073 = vst [vmem:[#allocation125_spill] sm:$0xff] %v9003_v17  ;;  %v9005_v36 = vpop.f32.mrf.mxu0 }
 0x3ef   : > { %10074 = vst [vmem:[#allocation126_spill] sm:$0xff] %v9005_v36  ;;  %v3341_v34 = vpop.xlane.xlu1 %3340  ;;  %v9007_v61 = vpop.f32.mrf.mxu1 }
 0x3f0   : > { %10075 = vst [vmem:[#allocation127_spill] sm:$0xff] %v9007_v61  ;;  %v9010_v53 = vsub.f32 %v8573_v42, %v3341_v34  ;;  %v9012_v2 = vpop.f32.mrf.mxu0 }
 0x3f1   : > { %10077 = vst [vmem:[#allocation129_spill] sm:$0xff] %v9012_v2  ;;  %v3338_v27 = vpop.xlane.xlu0 %3337  ;;  %v9014_v55 = vpop.f32.mrf.mxu1 }
 0x3f2   : > { %10076 = vst [vmem:[#allocation128_spill] sm:$0xff] %v9010_v53  ;;  %10078 = vst [vmem:[#allocation130_spill] sm:$0xff] %v9014_v55  ;;  %v3402_v20 = vmul.f32 1.442695, %v9010_v53  ;;  %v9018_v47 = vsub.f32 %v8584_v12, %v3338_v27  ;;  %v9020_v28 = vpop.f32.mrf.mxu0 }
 0x3f3   : > { %10080 = vst [vmem:[#allocation132_spill] sm:$0xff] %v9020_v28  ;;  %v3347_v17 = vpop.xlane.xlu1 %3346  ;;  %v9022_v36 = vpop.f32.mrf.mxu1 }
 0x3f4   : > { %10079 = vst [vmem:[#allocation131_spill] sm:$0xff] %v9018_v47  ;;  %10081 = vst [vmem:[#allocation133_spill] sm:$0xff] %v9022_v36  ;;  %6217 = vpow2.f32 %v3402_v20  ;;  %v3400_v61 = vmul.f32 1.442695, %v9018_v47  ;;  %v9026_v42 = vsub.f32 %v8597_v46, %v3347_v17  ;;  %v9028_v34 = vpop.f32.mrf.mxu0 }
 0x3f5   : > { %v3344_v2 = vpop.xlane.xlu0 %3343  ;;  %v4945_v55 = vpop.f32.mrf.mxu1 }
 0x3f6   : > { %10082 = vst [vmem:[#allocation134_spill] sm:$0xff] %v9026_v42  ;;  %6219 = vpow2.f32 %v3400_v61  ;;  %v3406_v53 = vmul.f32 1.442695, %v9026_v42  ;;  %v9032_v12 = vsub.f32 %v8608_v13, %v3344_v2  ;;  %v9034_v27 = vpop.f32.mrf.mxu0  ;;  %v4358_v61 = vadd.f32 %v8875_v14, %v8746_v37 }
 0x3f7   : > { %10084 = vst [vmem:[#allocation136_spill] sm:$0xff] %v9034_v27  ;;  %v3353_v28 = vpop.xlane.xlu1 %3352  ;;  %v4947_v36 = vpop.f32.mrf.mxu1 }
 0x3f8   : > { %10083 = vst [vmem:[#allocation135_spill] sm:$0xff] %v9032_v12  ;;  %6221 = vpow2.f32 %v3406_v53  ;;  %v3404_v20 = vmul.f32 1.442695, %v9032_v12  ;;  %v9038_v46 = vsub.f32 %v8621_v22, %v3353_v28  ;;  %v9040_v17 = vpop.f32.mrf.mxu0  ;;  %v4360_v53 = vadd.f32 %v8881_v32, %v8751_v45 }
 0x3f9   : > { %v3350_v47 = vpop.xlane.xlu0 %3349  ;;  %v4952_v42 = vpop.f32.mrf.mxu1 }
 0x3fa   : > { %10085 = vst [vmem:[#allocation137_spill] sm:$0xff] %v9038_v46  ;;  %6223 = vpow2.f32 %v3404_v20  ;;  %v3410_v13 = vmul.f32 1.442695, %v9038_v46  ;;  %v9046_v2 = vsub.f32 %v8633_v0, %v3350_v47  ;;  %v9048_v27 = vpop.f32.mrf.mxu0  ;;  %v4366_v0 = vadd.f32 %v8887_v8, %v8759_v1 }
 0x3fb   : > { %v3359_v22 = vpop.xlane.xlu1 %3358  ;;  %v9052_v28 = vpop.f32.mrf.mxu1  ;;  %v4554_v20 = vadd.f32 %v8845_v23, %v4358_v61  ;;  %v4374_v61 = vadd.f32 %v8897_v21, %v8768_v44  ;;  %v4376_v44 = vadd.f32 %v8903_v6, %v8773_v18 }
 0x3fc   : > { %10086 = vst [vmem:[#allocation138_spill] sm:$0xff] %v9046_v2  ;;  %6225 = vpow2.f32 %v3410_v13  ;;  %v3408_v12 = vmul.f32 1.442695, %v9046_v2  ;;  %v9056_v37 = vsub.f32 %v8647_v30, %v3359_v22  ;;  %v9058_v14 = vpop.f32.mrf.mxu0  ;;  %v4368_v30 = vadd.f32 %v8893_v26, %v8764_v19 }
 0x3fd   : > { %10087 = vst [vmem:[#allocation139_spill] sm:$0xff] %v9058_v14  ;;  %v3356_v47 = vpop.xlane.xlu0 %3355  ;;  %v9063_v46 = vpop.f32.mrf.mxu1  ;;  %v4556_v14 = vadd.f32 %v8852_v54, %v4360_v53  ;;  %v4563_v54 = vadd.f32 %v8857_v10, %v4366_v0 }
 0x3fe   : > { %6227 = vpow2.f32 %v3408_v12  ;;  %v3414_v45 = vmul.f32 1.442695, %v9056_v37  ;;  %v9067_v32 = vsub.f32 %v8662_v41, %v3356_v47  ;;  %v4766_v13 = vpop.f32.mrf.mxu0 }
 0x3ff   : > { %v4767_v22 = vadd.f32 %v4766_v13, %v4554_v20  ;;  %v3365_v2 = vpop.xlane.xlu1 %3364  ;;  %v9072_v1 = vpop.f32.mrf.mxu1 }
 0x400   : > { %6229 = vpow2.f32 %v3414_v45  ;;  %v3412_v23 = vmul.f32 1.442695, %v9067_v32  ;;  %v9076_v8 = vsub.f32 %v8675_v62, %v3365_v2  ;;  %v4768_v12 = vpop.f32.mrf.mxu0 }
 0x401   : > { %v9078_v41 = vpop.eup %6217  ;;  %v4946_v19 = vadd.f32 %v4945_v55, %v4767_v22  ;;  %v4769_v26 = vadd.f32 %v4768_v12, %v4556_v14  ;;  %v3362_v47 = vpop.xlane.xlu0 %3361  ;;  %v4565_v14 = vadd.f32 %v8864_v52, %v4368_v30 }
 0x402   : > { %v9083_v53 = vpop.f32.mrf.mxu1  ;;  %6231 = vpow2.f32 %v3412_v23  ;;  %v3418_v20 = vmul.f32 1.442695, %v9076_v8  ;;  %v9087_v62 = vsub.f32 %v8682_v11, %v3362_v47  ;;  %v4773_v2 = vpop.f32.mrf.mxu0  ;;  %v3435_v45 = vsel %vm3335_vm3, %v9078_v41, 0.0 }
 0x403   : > { %v9091_v13 = vpop.eup %6219  ;;  %5055 = vst [vmem:[%s6631_s16] sm:$0xff] %v4946_v19  ;;  %v4948_v10 = vadd.f32 %v4947_v36, %v4769_v26  ;;  %v4774_v55 = vadd.f32 %v4773_v2, %v4563_v54  ;;  %v3371_v21 = vpop.xlane.xlu1 %3370  ;;  %3436 = vadd.xlane.f32.xlu1 %v3435_v45  ;;  %v4382_v36 = vadd.f32 %v8909_v15, %v8776_v43 }
 0x404   : > { %v9097_v0 = vpop.f32.mrf.mxu1  ;;  %6233 = vpow2.f32 %v3418_v20  ;;  %v3416_v11 = vmul.f32 1.442695, %v9087_v62  ;;  %v9101_v22 = vsub.f32 %v8699_v50, %v3371_v21  ;;  %v4775_v23 = vpop.f32.mrf.mxu0  ;;  %v3432_v12 = vsel %vm3335_vm3, %v9091_v13, 0.0 }
 0x405   : > { %v9105_v18 = vpop.eup %6221  ;;  %5056 = vst [vmem:[%s6631_s16 + $0x8] sm:$0xff] %v4948_v10  ;;  %v4953_v6 = vadd.f32 %v4952_v42, %v4774_v55  ;;  %v4776_v52 = vadd.f32 %v4775_v23, %v4565_v14  ;;  %3433 = vadd.xlane.f32.xlu0 %v3432_v12  ;;  %v3368_v30 = vpop.xlane.xlu0 %3367  ;;  %v4572_v19 = vadd.f32 %v8871_v39, %v4374_v61 }
 0x406   : > { %v9111_v26 = vpop.f32.mrf.mxu1  ;;  %6235 = vpow2.f32 %v3416_v11  ;;  %v3422_v50 = vmul.f32 1.442695, %v9101_v22  ;;  %v9115_v47 = vsub.f32 %v8708_v29, %v3368_v30  ;;  %v4780_v54 = vpop.f32.mrf.mxu0  ;;  %v3441_v20 = vsel %vm3335_vm3, %v9105_v18, 0.0 }
 0x407   : > { %v9119_v43 = vpop.eup %6223  ;;  %v4384_v15 = vadd.f32 %v8913_v16, %v8780_v60  ;;  %5057 = vst [vmem:[%s6631_s16 + $0x10] sm:$0xff] %v4953_v6  ;;  %v4955_v39 = vadd.f32 %v9052_v28, %v4776_v52  ;;  %v4781_v42 = vadd.f32 %v4780_v54, %v4572_v19  ;;  %v3377_v61 = vpop.xlane.xlu1 %3376  ;;  %3442 = vadd.xlane.f32.xlu1 %v3441_v20 }
 0x408   : > { %v4574_v2 = vadd.f32 %v8877_v35, %v4376_v44  ;;  %v9126_v29 = vpop.f32.mrf.mxu1  ;;  %6237 = vpow2.f32 %v3422_v50  ;;  %v3420_v45 = vmul.f32 1.442695, %v9115_v47  ;;  %v9130_v10 = vsub.f32 %v8718_v5, %v3377_v61  ;;  %v4782_v55 = vpop.f32.mrf.mxu0 }
 0x409   : > { %v3438_v16 = vsel %vm3335_vm3, %v9119_v43, 0.0  ;;  %v9134_v60 = vpop.eup %6225  ;;  %v4390_v28 = vadd.f32 %v8919_v48, %v8783_v24  ;;  %5058 = vst [vmem:[%s6631_s16 + $0x18] sm:$0xff] %v4955_v39  ;;  %v4960_v35 = vadd.f32 %v9063_v46, %v4781_v42  ;;  %v3374_v21 = vpop.xlane.xlu0 %3373  ;;  %v4581_v14 = vadd.f32 %v8885_v51, %v4382_v36 }
 0x40a   : > { %v4783_v44 = vadd.f32 %v4782_v55, %v4574_v2  ;;  %3439 = vadd.xlane.f32.xlu0 %v3438_v16  ;;  %v9141_v5 = vpop.f32.mrf.mxu1  ;;  %6239 = vpow2.f32 %v3420_v45  ;;  %v3426_v11 = vmul.f32 1.442695, %v9130_v10  ;;  %v9145_v23 = vsub.f32 %v8730_v9, %v3374_v21  ;;  %v4787_v12 = vpop.f32.mrf.mxu0 }
 0x40b   : > { %v3447_v24 = vsel %vm3335_vm3, %v9134_v60, 0.0  ;;  %v9149_v48 = vpop.eup %6227  ;;  %v4392_v46 = vadd.f32 %v8925_v33, %v8788_v31  ;;  %5059 = vst [vmem:[%s6631_s16 + $0x20] sm:$0xff] %v4960_v35  ;;  %v4788_v36 = vadd.f32 %v4787_v12, %v4581_v14  ;;  %v3383_v6 = vpop.xlane.xlu1 %3382  ;;  %v4583_v52 = vadd.f32 %v8891_v3, %v4384_v15  ;;  %v10089_v12 = vld [vmem:[#allocation96_spill] sm:$0xff] }
 0x40c   : > { %v4962_v51 = vadd.f32 %v9072_v1, %v4783_v44  ;;  %3448 = vadd.xlane.f32.xlu1 %v3447_v24  ;;  %v9156_v9 = vpop.f32.mrf.mxu1  ;;  %6241 = vpow2.f32 %v3426_v11  ;;  %v3424_v30 = vmul.f32 1.442695, %v9145_v23  ;;  %v9160_v19 = vsub.f32 %v8736_v58, %v3383_v6  ;;  %v4789_v50 = vpop.f32.mrf.mxu0  ;;  %v10090_v24 = vld [vmem:[#allocation85_spill] sm:$0xff] }
 0x40d   : > { %v3444_v31 = vsel %vm3335_vm3, %v9149_v48, 0.0  ;;  %v9164_v33 = vpop.eup %6229  ;;  %v4398_v1 = vadd.f32 %v8929_v25, %v8791_v57  ;;  %v4967_v3 = vadd.f32 %v9083_v53, %v4788_v36  ;;  %v4790_v54 = vadd.f32 %v4789_v50, %v4583_v52  ;;  %v9170_v20 = vpop.xlane.xlu0 %2082  ;;  %v10091_v52 = vld [vmem:[#allocation65_spill] sm:$0xff] }
 0x40e   : > { %10088 = vst [vmem:[#allocation140_spill] sm:$0xff] %v9160_v19  ;;  %5060 = vst [vmem:[%s6631_s16 + $0x28] sm:$0xff] %v4962_v51  ;;  %3445 = vadd.xlane.f32.xlu0 %v3444_v31  ;;  %v4590_v58 = vadd.f32 %v8895_v49, %v4390_v28  ;;  %v4987_v15 = vpop.f32.mrf.mxu1  ;;  %6243 = vpow2.f32 %v3424_v30  ;;  %v3430_v39 = vmul.f32 1.442695, %v9160_v19  ;;  %v4794_v42 = vpop.f32.mrf.mxu0  ;;  %v3453_v61 = vsel %vm3335_vm3, %v9164_v33, 0.0  ;;  %v10092_v30 = vld [vmem:[#allocation99_spill] sm:$0xff] }
 0x40f   : > { %v9176_v2 = vpop.eup %6231  ;;  %v4400_v25 = vadd.f32 %v8935_v38, %v8796_v56  ;;  %5061 = vst [vmem:[%s6631_s16 + $0x30] sm:$0xff] %v4967_v3  ;;  %v4969_v57 = vadd.f32 %v9097_v0, %v4790_v54  ;;  %v4592_v49 = vadd.f32 %v8901_v40, %v4392_v46  ;;  %v4406_v35 = vadd.f32 %v8941_v4, %v8799_v63 }
 0x410   : > { %v4795_v53 = vadd.f32 %v4794_v42, %v4590_v58  ;;  %3454 = vadd.xlane.f32.xlu1 %v3453_v61  ;;  %v4989_v45 = vpop.f32.mrf.mxu1  ;;  %6245 = vpow2.f32 %v3430_v39  ;;  %v4796_v55 = vpop.f32.mrf.mxu0  ;;  %v3450_v16 = vsel %vm3335_vm3, %v9176_v2, 0.0  ;;  %v4599_v40 = vadd.f32 %v8907_v7, %v4398_v1  ;;  %v10093_v1 = vld [vmem:[#allocation87_spill] sm:$0xff]  ;;  %v10094_v61 = vld [vmem:[#allocation62_spill] sm:$0xff] }
 0x411   : > { %v9185_v28 = vpop.eup %6233  ;;  %5062 = vst [vmem:[%s6631_s16 + $0x38] sm:$0xff] %v4969_v57  ;;  %v4797_v38 = vadd.f32 %v4796_v55, %v4592_v49  ;;  %v9191_v0 = vpop.xlane.xlu0 %2095  ;;  %v4408_v63 = vadd.f32 %v10089_v12, %v8802_v59  ;;  %v4601_v46 = vadd.f32 %v10090_v24, %v4400_v25  ;;  %v4414_v50 = vadd.f32 %v10092_v30, %v10091_v52  ;;  %v10095_v25 = vld [vmem:[#allocation102_spill] sm:$0xff]  ;;  %v10096_v49 = vld [vmem:[#allocation89_spill] sm:$0xff] }
 0x412   : > { %v4974_v56 = vadd.f32 %v9111_v26, %v4795_v53  ;;  %3451 = vadd.xlane.f32.xlu0 %v3450_v16  ;;  %v4994_v44 = vpop.f32.mrf.mxu1  ;;  %v4801_v21 = vpop.f32.mrf.mxu0  ;;  %v3459_v14 = vsel %vm3335_vm3, %v9185_v28, 0.0  ;;  %v4608_v3 = vadd.f32 %v10093_v1, %v4406_v35  ;;  %v4416_v57 = vadd.f32 %v10095_v25, %v10094_v61  ;;  %v10101_v52 = vld [vmem:[#allocation37_spill] sm:$0xff]  ;;  %v10103_v1 = vld [vmem:[#allocation107_spill] sm:$0xff] }
 0x413   : > { %v9196_v11 = vpop.eup %6235  ;;  %v4976_v4 = vadd.f32 %v9126_v29, %v4797_v38  ;;  %v4802_v26 = vadd.f32 %v4801_v21, %v4599_v40  ;;  %v4610_v55 = vadd.f32 %v10096_v49, %v4408_v63  ;;  %v10097_v40 = vld [vmem:[#allocation60_spill] sm:$0xff]  ;;  %v10105_v49 = vld [vmem:[#allocation66_spill] sm:$0xff] }
 0x414   : > { %5063 = vst [vmem:[%s6631_s16 + $0x40] sm:$0xff] %v4974_v56  ;;  %3460 = vadd.xlane.f32.xlu1 %v3459_v14  ;;  %v4996_v51 = vpop.f32.mrf.mxu1  ;;  %v4803_v7 = vpop.f32.mrf.mxu0  ;;  %v3456_v36 = vsel %vm3335_vm3, %v9196_v11, 0.0  ;;  %v10098_v21 = vld [vmem:[#allocation104_spill] sm:$0xff] }
 0x415   : > { %v9205_v6 = vpop.eup %6237  ;;  %5064 = vst [vmem:[%s6631_s16 + $0x48] sm:$0xff] %v4976_v4  ;;  %v4981_v59 = vadd.f32 %v9141_v5, %v4802_v26  ;;  %v4804_v31 = vadd.f32 %v4803_v7, %v4601_v46  ;;  %v9211_v29 = vpop.xlane.xlu0 %2108  ;;  %v4422_v14 = vadd.f32 %v10098_v21, %v10097_v40  ;;  %v10099_v26 = vld [vmem:[#allocation90_spill] sm:$0xff] }
 0x416   : > { %3457 = vadd.xlane.f32.xlu0 %v3456_v36  ;;  %v5001_v54 = vpop.f32.mrf.mxu1  ;;  %v4808_v58 = vpop.f32.mrf.mxu0  ;;  %v3465_v39 = vsel %vm3335_vm3, %v9205_v6, 0.0  ;;  %v4617_v24 = vadd.f32 %v10099_v26, %v4414_v50  ;;  %v10100_v36 = vld [vmem:[#allocation43_spill] sm:$0xff]  ;;  %v10107_v21 = vld [vmem:[#allocation94_spill] sm:$0xff] }
 0x417   : > { %v9216_v42 = vpop.eup %6239  ;;  %5065 = vst [vmem:[%s6631_s16 + $0x50] sm:$0xff] %v4981_v59  ;;  %v4983_v5 = vadd.f32 %v9156_v9, %v4804_v31  ;;  %v4809_v53 = vadd.f32 %v4808_v58, %v4608_v3  ;;  %v3624_v30 = vsub.f32 %v10101_v52, %v10100_v36  ;;  %v10102_v31 = vld [vmem:[#allocation73_spill] sm:$0xff]  ;;  %v10110_v52 = vld [vmem:[#allocation59_spill] sm:$0xff] }
 0x418   : > { %3466 = vadd.xlane.f32.xlu1 %v3465_v39  ;;  %v5003_v16 = vpop.f32.mrf.mxu1  ;;  %v4810_v35 = vpop.f32.mrf.mxu0  ;;  %v3462_v56 = vsel %vm3335_vm3, %v9216_v42, 0.0  ;;  %v10104_v39 = vld [vmem:[#allocation92_spill] sm:$0xff] }
 0x419   : > { %v9225_v38 = vpop.eup %6241  ;;  %5066 = vst [vmem:[%s6631_s16 + $0x58] sm:$0xff] %v4983_v5  ;;  %v4988_v12 = vadd.f32 %v4987_v15, %v4809_v53  ;;  %v4811_v4 = vadd.f32 %v4810_v35, %v4610_v55  ;;  %v9230_v9 = vpop.xlane.xlu0 %2121  ;;  %v4424_v15 = vadd.f32 %v10103_v1, %v10102_v31  ;;  %v4619_v50 = vadd.f32 %v10104_v39, %v4416_v57  ;;  %v10106_v55 = vld [vmem:[#allocation110_spill] sm:$0xff]  ;;  %v10111_v31 = vld [vmem:[#allocation112_spill] sm:$0xff] }
 0x41a   : > { %3463 = vadd.xlane.f32.xlu0 %v3462_v56  ;;  %v5008_v63 = vpop.f32.mrf.mxu1  ;;  %v4815_v46 = vpop.f32.mrf.mxu0  ;;  %v3471_v7 = vsel %vm3335_vm3, %v9225_v38, 0.0  ;;  %v4430_v35 = vadd.f32 %v10106_v55, %v10105_v49  ;;  %v4626_v57 = vadd.f32 %v10107_v21, %v4422_v14  ;;  %v4432_v1 = vadd.f32 %v10111_v31, %v10110_v52  ;;  %v10116_v52 = vld [vmem:[#allocation72_spill] sm:$0xff]  ;;  %v10119_v31 = vld [vmem:[#allocation61_spill] sm:$0xff] }
 0x41b   : > { %v9237_v59 = vpop.eup %6243  ;;  %5067 = vst [vmem:[%s6631_s16 + $0x60] sm:$0xff] %v4988_v12  ;;  %v4990_v3 = vadd.f32 %v4989_v45, %v4811_v4  ;;  %v4816_v58 = vadd.f32 %v4815_v46, %v4617_v24  ;;  %v3702_v24 = vmul.f32 %v3624_v30, %v3624_v30  ;;  %v10108_v46 = vld [vmem:[#allocation44_spill] sm:$0xff] }
 0x41c   : > { %3472 = vadd.xlane.f32.xlu1 %v3471_v7  ;;  %v5010_v61 = vpop.f32.mrf.mxu1  ;;  %v4817_v25 = vpop.f32.mrf.mxu0  ;;  %v3468_v5 = vsel %vm3335_vm3, %v9237_v59, 0.0  ;;  %v10109_v7 = vld [vmem:[#allocation41_spill] sm:$0xff] }
 0x41d   : > { %v9245_v53 = vpop.eup %6245  ;;  %5068 = vst [vmem:[%s6631_s16 + $0x68] sm:$0xff] %v4990_v3  ;;  %v4995_v56 = vadd.f32 %v4994_v44, %v4816_v58  ;;  %v4818_v40 = vadd.f32 %v4817_v25, %v4619_v50  ;;  %v9250_v45 = vpop.xlane.xlu0 %2134  ;;  %v3625_v36 = vsub.f32 %v10109_v7, %v10108_v46  ;;  %v10112_v58 = vld [vmem:[#allocation95_spill] sm:$0xff]  ;;  %v10115_v46 = vld [vmem:[#allocation98_spill] sm:$0xff] }
 0x41e   : > { %3469 = vadd.xlane.f32.xlu0 %v3468_v5  ;;  %v5015_v12 = vpop.f32.mrf.mxu1  ;;  %v4822_v4 = vpop.f32.mrf.mxu0  ;;  %v3477_v26 = vsel %vm3335_vm3, %v9245_v53, 0.0  ;;  %v4628_v39 = vadd.f32 %v10112_v58, %v4424_v15  ;;  %v10113_v25 = vld [vmem:[#allocation63_spill] sm:$0xff]  ;;  %v4635_v7 = vadd.f32 %v10115_v46, %v4430_v35  ;;  %v3718_v15 = vsel %vm1752_vm0, %v3702_v24, 0.0  ;;  %v10120_v58 = vld [vmem:[#allocation118_spill] sm:$0xff]  ;;  %v10121_v35 = vld [vmem:[#allocation101_spill] sm:$0xff] }
 0x41f   : > { %5069 = vst [vmem:[%s6631_s16 + $0x70] sm:$0xff] %v4995_v56  ;;  %v4997_v44 = vadd.f32 %v4996_v51, %v4818_v40  ;;  %v4823_v3 = vadd.f32 %v4822_v4, %v4626_v57  ;;  %v10114_v5 = vld [vmem:[#allocation115_spill] sm:$0xff]  ;;  %v3703_v40 = vmul.f32 %v3625_v36, %v3625_v36  ;;  %v10117_v57 = vld [vmem:[#allocation46_spill] sm:$0xff]  ;;  %v10118_v4 = vld [vmem:[#allocation40_spill] sm:$0xff] }
 0x420   : > { %3478 = vadd.xlane.f32.xlu1 %v3477_v26  ;;  %v5017_v14 = vpop.f32.mrf.mxu1  ;;  %v4824_v50 = vpop.f32.mrf.mxu0  ;;  %v4438_v49 = vadd.f32 %v10114_v5, %v10113_v25  ;;  %v3626_v26 = vsub.f32 %v10118_v4, %v10117_v57  ;;  %v10123_v24 = vld [vmem:[#allocation120_spill] sm:$0xff]  ;;  %v10124_v57 = vld [vmem:[#allocation103_spill] sm:$0xff] }
 0x421   : > { %5070 = vst [vmem:[%s6631_s16 + $0x78] sm:$0xff] %v4997_v44  ;;  %v5002_v30 = vadd.f32 %v5001_v54, %v4823_v3  ;;  %v4825_v55 = vadd.f32 %v4824_v50, %v4628_v39  ;;  %v3380_v21 = vpop.xlane.xlu0 %3379  ;;  %v4440_v44 = vadd.f32 %v10120_v58, %v10119_v31  ;;  %v4637_v39 = vadd.f32 %v10121_v35, %v4432_v1  ;;  %v10127_v31 = vld [vmem:[#allocation67_spill] sm:$0xff] }
 0x422   : > { %v5022_v19 = vpop.f32.mrf.mxu1  ;;  %v9266_v51 = vsub.f32 %v10116_v52, %v3380_v21  ;;  %v4829_v56 = vpop.f32.mrf.mxu0  ;;  %v10122_v21 = vld [vmem:[#allocation74_spill] sm:$0xff]  ;;  %v4644_v4 = vadd.f32 %v10124_v57, %v4438_v49  ;;  %v3704_v1 = vmul.f32 %v3626_v26, %v3626_v26  ;;  %v10128_v58 = vld [vmem:[#allocation123_spill] sm:$0xff]  ;;  %v10132_v57 = vld [vmem:[#allocation109_spill] sm:$0xff] }
 0x423   : > { %5071 = vst [vmem:[%s6631_s16 + $0x80] sm:$0xff] %v5002_v30  ;;  %v5004_v54 = vadd.f32 %v5003_v16, %v4825_v55  ;;  %v4830_v3 = vadd.f32 %v4829_v56, %v4635_v7  ;;  %v4446_v36 = vadd.f32 %v10123_v24, %v10122_v21  ;;  %v3721_v55 = vsel %vm1752_vm0, %v3703_v40, 0.0  ;;  %v10125_v7 = vld [vmem:[#allocation47_spill] sm:$0xff]  ;;  %v10126_v56 = vld [vmem:[#allocation42_spill] sm:$0xff] }
 0x424   : > { %3719 = vadd.xlane.f32.xlu1 %v3718_v15  ;;  %v5024_v50 = vpop.f32.mrf.mxu1  ;;  %v3428_v25 = vmul.f32 1.442695, %v9266_v51  ;;  %v4831_v5 = vpop.f32.mrf.mxu0  ;;  %v3627_v15 = vsub.f32 %v10126_v56, %v10125_v7  ;;  %v4448_v35 = vadd.f32 %v10128_v58, %v10127_v31 }
 0x425   : > { %5072 = vst [vmem:[%s6631_s16 + $0x88] sm:$0xff] %v5004_v54  ;;  %v5009_v46 = vadd.f32 %v5008_v63, %v4830_v3  ;;  %v4832_v52 = vadd.f32 %v4831_v5, %v4637_v39  ;;  %v10129_v63 = vld [vmem:[#allocation106_spill] sm:$0xff]  ;;  %v4653_v7 = vadd.f32 %v10132_v57, %v4446_v36  ;;  %v10138_v36 = vld [vmem:[#allocation32_spill] sm:$0xff] }
 0x426   : > { %v5029_v30 = vpop.f32.mrf.mxu1  ;;  %6247 = vpow2.f32 %v3428_v25  ;;  %v4836_v16 = vpop.f32.mrf.mxu0  ;;  %v4646_v49 = vadd.f32 %v10129_v63, %v4440_v44  ;;  %v10130_v25 = vld [vmem:[#allocation68_spill] sm:$0xff]  ;;  %v10131_v5 = vld [vmem:[#allocation126_spill] sm:$0xff]  ;;  %v10135_v44 = vld [vmem:[#allocation69_spill] sm:$0xff] }
 0x427   : > { %5073 = vst [vmem:[%s6631_s16 + $0x90] sm:$0xff] %v5009_v46  ;;  %v5011_v21 = vadd.f32 %v5010_v61, %v4832_v52  ;;  %v4837_v54 = vadd.f32 %v4836_v16, %v4644_v4  ;;  %v4454_v24 = vadd.f32 %v10131_v5, %v10130_v25  ;;  %v3724_v61 = vsel %vm1752_vm0, %v3704_v1, 0.0  ;;  %v10133_v52 = vld [vmem:[#allocation48_spill] sm:$0xff]  ;;  %v10134_v4 = vld [vmem:[#allocation27_spill] sm:$0xff]  ;;  %v10140_v5 = vld [vmem:[#allocation114_spill] sm:$0xff] }
 0x428   : > { %3722 = vadd.xlane.f32.xlu1 %v3721_v55  ;;  %v5031_v3 = vpop.f32.mrf.mxu1  ;;  %v4838_v39 = vpop.f32.mrf.mxu0  ;;  %v3705_v46 = vmul.f32 %v3627_v15, %v3627_v15  ;;  %v3628_v16 = vsub.f32 %v10134_v4, %v10133_v52  ;;  %v10136_v55 = vld [vmem:[#allocation129_spill] sm:$0xff] }
 0x429   : > { %5074 = vst [vmem:[%s6631_s16 + $0x98] sm:$0xff] %v5011_v21  ;;  %v5016_v40 = vadd.f32 %v5015_v12, %v4837_v54  ;;  %v4839_v26 = vadd.f32 %v4838_v39, %v4646_v49  ;;  %v4456_v58 = vadd.f32 %v10136_v55, %v10135_v44  ;;  %v10137_v12 = vld [vmem:[#allocation111_spill] sm:$0xff]  ;;  %v10139_v39 = vld [vmem:[#allocation132_spill] sm:$0xff]  ;;  %v4662_v57 = vadd.f32 %v10140_v5, %v4454_v24 }
 0x42a   : > { %v4843_v56 = vpop.f32.mrf.mxu0  ;;  %v5036_v31 = vpop.f32.mrf.mxu1  ;;  %v4655_v54 = vadd.f32 %v10137_v12, %v4448_v35  ;;  %v4462_v25 = vadd.f32 %v10139_v39, %v10138_v36  ;;  %v10145_v24 = vld [vmem:[#allocation71_spill] sm:$0xff]  ;;  %v10146_v12 = vld [vmem:[#allocation136_spill] sm:$0xff] }
 0x42b   : > { %5075 = vst [vmem:[%s6631_s16 + $0xa0] sm:$0xff] %v5016_v40  ;;  %v5018_v63 = vadd.f32 %v5017_v14, %v4839_v26  ;;  %v4844_v21 = vadd.f32 %v4843_v56, %v4653_v7  ;;  %v3727_v40 = vsel %vm1752_vm0, %v3705_v46, 0.0  ;;  %v3706_v14 = vmul.f32 %v3628_v16, %v3628_v16  ;;  %v10141_v26 = vld [vmem:[#allocation49_spill] sm:$0xff]  ;;  %v10142_v7 = vld [vmem:[#allocation38_spill] sm:$0xff] }
 0x42c   : > { %3725 = vadd.xlane.f32.xlu1 %v3724_v61  ;;  %v4845_v49 = vpop.f32.mrf.mxu0  ;;  %v5038_v52 = vpop.f32.mrf.mxu1  ;;  %v3629_v56 = vsub.f32 %v10142_v7, %v10141_v26  ;;  %v10143_v61 = vld [vmem:[#allocation64_spill] sm:$0xff]  ;;  %v10151_v7 = vld [vmem:[#allocation122_spill] sm:$0xff] }
 0x42d   : > { %5076 = vst [vmem:[%s6631_s16 + $0xa8] sm:$0xff] %v5018_v63  ;;  %v5023_v1 = vadd.f32 %v5022_v19, %v4844_v21  ;;  %v4846_v15 = vadd.f32 %v4845_v49, %v4655_v54  ;;  %v4464_v35 = vadd.f32 %v9028_v34, %v10143_v61  ;;  %v10144_v19 = vld [vmem:[#allocation117_spill] sm:$0xff]  ;;  %v4470_v54 = vadd.f32 %v10146_v12, %v10145_v24  ;;  %v10147_v49 = vld [vmem:[#allocation119_spill] sm:$0xff] }
 0x42e   : > { %v4850_v4 = vpop.f32.mrf.mxu0  ;;  %v4664_v63 = vadd.f32 %v10144_v19, %v4456_v58  ;;  %v4671_v36 = vadd.f32 %v10147_v49, %v4462_v25  ;;  %v5043_v39 = vpop.f32.mrf.mxu1  ;;  %v3730_v34 = vsel %vm1752_vm0, %v3706_v14, 0.0  ;;  %v10150_v58 = vld [vmem:[#allocation77_spill] sm:$0xff]  ;;  %v10156_v49 = vld [vmem:[#allocation80_spill] sm:$0xff] }
 0x42f   : > { %5077 = vst [vmem:[%s6631_s16 + $0xb0] sm:$0xff] %v5023_v1  ;;  %v5025_v44 = vadd.f32 %v5024_v50, %v4846_v15  ;;  %v4851_v55 = vadd.f32 %v4850_v4, %v4662_v57  ;;  %v3707_v50 = vmul.f32 %v3629_v56, %v3629_v56  ;;  %v10148_v1 = vld [vmem:[#allocation50_spill] sm:$0xff]  ;;  %v4673_v25 = vadd.f32 %v10151_v7, %v4464_v35  ;;  %v10152_v56 = vld [vmem:[#allocation79_spill] sm:$0xff] }
 0x430   : > { %3728 = vadd.xlane.f32.xlu1 %v3727_v40  ;;  %v4852_v21 = vpop.f32.mrf.mxu0  ;;  %v10149_v15 = vld [vmem:[#allocation26_spill] sm:$0xff]  ;;  %v4472_v40 = vadd.f32 %v9040_v17, %v10150_v58  ;;  %v10153_v17 = vld [vmem:[#allocation125_spill] sm:$0xff]  ;;  %v10154_v35 = vld [vmem:[#allocation51_spill] sm:$0xff] }
 0x431   : > { %5078 = vst [vmem:[%s6631_s16 + $0xb8] sm:$0xff] %v5025_v44  ;;  %v5030_v46 = vadd.f32 %v5029_v30, %v4851_v55  ;;  %v4853_v16 = vadd.f32 %v4852_v21, %v4664_v63  ;;  %v3630_v57 = vsub.f32 %v10149_v15, %v10148_v1  ;;  %v4478_v44 = vadd.f32 %v9048_v27, %v10152_v56 }
 0x432   : > { %v4857_v5 = vpop.f32.mrf.mxu0  ;;  %v4680_v63 = vadd.f32 %v10153_v17, %v4470_v54  ;;  %v3733_v24 = vsel %vm1752_vm0, %v3707_v50, 0.0  ;;  %v10159_v50 = vld [vmem:[#allocation130_spill] sm:$0xff] }
 0x433   : > { %v9316_v4 = vpop.eup %6247  ;;  %5079 = vst [vmem:[%s6631_s16 + $0xc0] sm:$0xff] %v5030_v46  ;;  %v5032_v26 = vadd.f32 %v5031_v3, %v4853_v16  ;;  %v4858_v30 = vadd.f32 %v4857_v5, %v4671_v36  ;;  %v5045_v3 = vpop.f32.mrf.mxu1  ;;  %v3708_v12 = vmul.f32 %v3630_v57, %v3630_v57  ;;  %v10155_v46 = vld [vmem:[#allocation39_spill] sm:$0xff]  ;;  %v4689_v57 = vadd.f32 %v10159_v50, %v4478_v44 }
 0x434   : > { %3731 = vadd.xlane.f32.xlu1 %v3730_v34  ;;  %v4859_v61 = vpop.f32.mrf.mxu0  ;;  %v3474_v14 = vsel %vm3335_vm3, %v9316_v4, 0.0  ;;  %v3631_v16 = vsub.f32 %v10155_v46, %v10154_v35  ;;  %v10157_v36 = vld [vmem:[#allocation139_spill] sm:$0xff]  ;;  %v10164_v35 = vld [vmem:[#allocation33_spill] sm:$0xff] }
 0x435   : > { %5080 = vst [vmem:[%s6631_s16 + $0xc8] sm:$0xff] %v5032_v26  ;;  %v5037_v55 = vadd.f32 %v5036_v31, %v4858_v30  ;;  %v4860_v19 = vadd.f32 %v4859_v61, %v4673_v25  ;;  %3475 = vadd.xlane.f32.xlu0 %v3474_v14  ;;  %v4480_v5 = vadd.f32 %v10157_v36, %v10156_v49  ;;  %v10158_v34 = vld [vmem:[#allocation127_spill] sm:$0xff]  ;;  %v5050_v26 = vpop.f32.mrf.mxu1  ;;  %v3736_v7 = vsel %vm1752_vm0, %v3708_v12, 0.0  ;;  %v10160_v61 = vld [vmem:[#allocation52_spill] sm:$0xff]  ;;  %v10163_v12 = vld [vmem:[#allocation53_spill] sm:$0xff] }
 0x436   : > { %v4864_v21 = vpop.f32.mrf.mxu0  ;;  %v4682_v1 = vadd.f32 %v10158_v34, %v4472_v40  ;;  %v3709_v25 = vmul.f32 %v3631_v16, %v3631_v16  ;;  %v10161_v14 = vld [vmem:[#allocation31_spill] sm:$0xff]  ;;  %v3633_v46 = vsub.f32 %v10164_v35, %v10163_v12  ;;  %v10165_v36 = vld [vmem:[#allocation54_spill] sm:$0xff] }
 0x437   : > { %5081 = vst [vmem:[%s6631_s16 + $0xd0] sm:$0xff] %v5037_v55  ;;  %v5039_v27 = vadd.f32 %v5038_v52, %v4860_v19  ;;  %v4865_v31 = vadd.f32 %v4864_v21, %v4680_v63  ;;  %v3632_v52 = vsub.f32 %v10161_v14, %v10160_v61  ;;  %v10162_v55 = vld [vmem:[#allocation133_spill] sm:$0xff]  ;;  %v5052_v63 = vpop.f32.mrf.mxu1  ;;  %v10171_v14 = vld [vmem:[#allocation76_spill] sm:$0xff] }
 0x438   : > { %3734 = vadd.xlane.f32.xlu1 %v3733_v24  ;;  %v4866_v15 = vpop.f32.mrf.mxu0  ;;  %v4691_v19 = vadd.f32 %v10162_v55, %v4480_v5  ;;  %v3739_v21 = vsel %vm1752_vm0, %v3709_v25, 0.0  ;;  %v3711_v49 = vmul.f32 %v3633_v46, %v3633_v46  ;;  %v10166_v5 = vld [vmem:[#allocation28_spill] sm:$0xff]  ;;  %v10176_v46 = vld [vmem:[#allocation81_spill] sm:$0xff] }
 0x439   : > { %5082 = vst [vmem:[%s6631_s16 + $0xd8] sm:$0xff] %v5039_v27  ;;  %v5044_v54 = vadd.f32 %v5043_v39, %v4865_v31  ;;  %v4867_v58 = vadd.f32 %v4866_v15, %v4682_v1  ;;  %v3710_v24 = vmul.f32 %v3632_v52, %v3632_v52  ;;  %v3634_v27 = vsub.f32 %v10166_v5, %v10165_v36  ;;  %v10167_v1 = vld [vmem:[#allocation55_spill] sm:$0xff]  ;;  %v10168_v15 = vld [vmem:[#allocation29_spill] sm:$0xff] }
 0x43a   : > { %v4871_v30 = vpop.f32.mrf.mxu0  ;;  %v3745_v31 = vsel %vm1752_vm0, %v3711_v49, 0.0  ;;  %v1944_v52 = vcvt.f32.s32 %v10171_v14  ;;  %v10177_v49 = vld [vmem:[#allocation82_spill] sm:$0xff]  ;;  %v10182_v14 = vld [vmem:[#allocation105_spill] sm:$0xff] }
 0x43b   : > { %5083 = vst [vmem:[%s6631_s16 + $0xe0] sm:$0xff] %v5044_v54  ;;  %v5046_v56 = vadd.f32 %v5045_v3, %v4867_v58  ;;  %v4872_v40 = vadd.f32 %v4871_v30, %v4689_v57  ;;  %v3742_v3 = vsel %vm1752_vm0, %v3710_v24, 0.0  ;;  %v3712_v34 = vmul.f32 %v3634_v27, %v3634_v27  ;;  %v10169_v57 = vld [vmem:[#allocation56_spill] sm:$0xff]  ;;  %v10175_v24 = vld [vmem:[#allocation75_spill] sm:$0xff] }
 0x43c   : > { %3737 = vadd.xlane.f32.xlu1 %v3736_v7  ;;  %v4873_v39 = vpop.f32.mrf.mxu0  ;;  %v3635_v54 = vsub.f32 %v10168_v15, %v10167_v1  ;;  %v1945_v55 = vshll.u32 %v1944_v52, 16  ;;  %v1956_v12 = vcvt.f32.s32 %v10175_v24  ;;  %v1969_v36 = vcvt.f32.s32 %v10177_v49  ;;  %v10179_v1 = vld [vmem:[#allocation78_spill] sm:$0xff] }
 0x43d   : > { %5084 = vst [vmem:[%s6631_s16 + $0xe8] sm:$0xff] %v5046_v56  ;;  %v5051_v17 = vadd.f32 %v5050_v26, %v4872_v40  ;;  %v4874_v44 = vadd.f32 %v4873_v39, %v4691_v19  ;;  %v3748_v58 = vsel %vm1752_vm0, %v3712_v34, 0.0  ;;  %v10170_v26 = vld [vmem:[#allocation36_spill] sm:$0xff]  ;;  %v10172_v56 = vld [vmem:[#allocation70_spill] sm:$0xff]  ;;  %v1982_v15 = vcvt.f32.s32 %v10179_v1 }
 0x43e   : > { %v3713_v50 = vmul.f32 %v3635_v54, %v3635_v54  ;;  %v3636_v30 = vsub.f32 %v10170_v26, %v10169_v57  ;;  %v1957_v40 = vcvt.f32.s32 %v10172_v56  ;;  %v10173_v19 = vld [vmem:[#allocation30_spill] sm:$0xff]  ;;  %v2072_v54 = vpop.xlane.xlu1 %2071  ;;  %v2022_v52 = vcvt.f32.s32 %v10182_v14  ;;  %v10189_v1 = vld [vmem:[#allocation116_spill] sm:$0xff] }
 0x43f   : > { %5085 = vst [vmem:[%s6631_s16 + $0xf0] sm:$0xff] %v5051_v17  ;;  %v5053_v16 = vadd.f32 %v5052_v63, %v4874_v44  ;;  %v1943_v39 = vcvt.f32.s32 %v10173_v19  ;;  %v10174_v44 = vld [vmem:[#allocation83_spill] sm:$0xff] }
 0x440   : > { %3740 = vadd.xlane.f32.xlu1 %v3739_v21  ;;  %v3751_v7 = vsel %vm1752_vm0, %v3713_v50, 0.0  ;;  %v3714_v25 = vmul.f32 %v3636_v30, %v3636_v30  ;;  %v1958_v17 = vshll.u32 %v1957_v40, 16  ;;  %v1970_v63 = vcvt.f32.s32 %v10174_v44  ;;  %v10180_v50 = vld [vmem:[#allocation86_spill] sm:$0xff]  ;;  %v10181_v30 = vld [vmem:[#allocation88_spill] sm:$0xff] }
 0x441   : > { %5086 = vst [vmem:[%s6631_s16 + $0xf8] sm:$0xff] %v5053_v16  ;;  %v1946_v21 = vadd.s32 %v1945_v55, %v1943_v39  ;;  %v1983_v16 = vcvt.f32.s32 %v10176_v46  ;;  %v2009_v57 = vcvt.f32.s32 %v10180_v50  ;;  %v10183_v40 = vld [vmem:[#allocation84_spill] sm:$0xff]  ;;  %v10184_v39 = vld [vmem:[#allocation97_spill] sm:$0xff]  ;;  %v2023_v44 = vshll.u32 %v2022_v52, 16 }
 0x442   : > { %v3754_v61 = vsel %vm1752_vm0, %v3714_v25, 0.0  ;;  %v1959_v35 = vadd.s32 %v1958_v17, %v1956_v12  ;;  %v2085_v56 = vpop.xlane.xlu1 %2084  ;;  %v2008_v55 = vcvt.f32.s32 %v10183_v40  ;;  %v2035_v17 = vcvt.f32.s32 %v10184_v39  ;;  %v10186_v46 = vld [vmem:[#allocation121_spill] sm:$0xff]  ;;  %v10191_v52 = vld [vmem:[#allocation124_spill] sm:$0xff] }
 0x443   : > { %v1984_v5 = vshll.u32 %v1983_v16, 16  ;;  %v2010_v25 = vshll.u32 %v2009_v57, 16  ;;  %v2048_v16 = vcvt.f32.s32 %v10186_v46  ;;  %v2074_v57 = vcvt.f32.s32 %v2072_v54 }
 0x444   : > { %3743 = vadd.xlane.f32.xlu1 %v3742_v3  ;;  %v1971_v3 = vshll.u32 %v1970_v63, 16  ;;  %v10185_v63 = vld [vmem:[#allocation100_spill] sm:$0xff]  ;;  %v2036_v12 = vshll.u32 %v2035_v17, 16  ;;  %v2087_v14 = vcvt.f32.s32 %v2085_v56  ;;  %v2073_v40 = vcvt.f32.s32 %v10191_v52 }
 0x445   : > { %v2011_v19 = vadd.s32 %v2010_v25, %v2008_v55 }
 0x446   : > { %v1972_v27 = vadd.s32 %v1971_v3, %v1969_v36  ;;  %v2098_v24 = vpop.xlane.xlu1 %2097  ;;  %v10187_v3 = vld [vmem:[#allocation93_spill] sm:$0xff] }
 0x447   : > { %v2034_v49 = vcvt.f32.s32 %v10187_v3  ;;  %v2100_v39 = vcvt.f32.s32 %v2098_v24 }
 0x448   : > { %3746 = vadd.xlane.f32.xlu1 %v3745_v31  ;;  %v10178_v31 = vld [vmem:[#allocation91_spill] sm:$0xff] }
 0x449   : > { %v1996_v34 = vcvt.f32.s32 %v10178_v31  ;;  %v2037_v36 = vadd.s32 %v2036_v12, %v2034_v49  ;;  %v2049_v31 = vshll.u32 %v2048_v16, 16 }
 0x44b   : > { %v1997_v26 = vshll.u32 %v1996_v34, 16  ;;  %v2111_v34 = vpop.xlane.xlu1 %2110 }
 0x44c   : > { %3749 = vadd.xlane.f32.xlu1 %v3748_v58  ;;  %v1985_v58 = vadd.s32 %v1984_v5, %v1982_v15  ;;  %v10188_v5 = vld [vmem:[#allocation113_spill] sm:$0xff]  ;;  %v2047_v15 = vcvt.f32.s32 %v10189_v1  ;;  %v2113_v54 = vcvt.f32.s32 %v2111_v34 }
 0x44e   : > { %v2050_v50 = vadd.s32 %v2049_v31, %v2047_v15  ;;  %v2114_v24 = vshll.u32 %v2113_v54, 16  ;;  %v2125_v31 = vcvt.f32.s32 %v9230_v9 }
 0x450   : > { %3752 = vadd.xlane.f32.xlu1 %v3751_v7  ;;  %v1995_v7 = vcvt.f32.s32 %v10181_v30 }
 0x454   : > { %3755 = vadd.xlane.f32.xlu1 %v3754_v61  ;;  %v1998_v61 = vadd.s32 %v1997_v26, %v1995_v7  ;;  %v10190_v26 = vld [vmem:[#allocation108_spill] sm:$0xff]  ;;  %v2124_v7 = vpop.xlane.xlu1 %2123 }
 0x455   : > { %v2060_v30 = vcvt.f32.s32 %v10190_v26  ;;  %v2126_v16 = vcvt.f32.s32 %v2124_v7 }
 0x458   : > { %v2137_v17 = vpop.xlane.xlu1 %2136 }
 0x462   : > { %2142 = vxpose.xlu0.b32.start [1/16] (narrow) %v1946_v21, 8  ;;  %v2021_v21 = vcvt.f32.s32 %v10185_v63 }
 0x466   : > { %2143 = vxpose.xlu0.b32.cont [2/16] (narrow) %v1959_v35, 8  ;;  %v2024_v35 = vadd.s32 %v2023_v44, %v2021_v21  ;;  %v2086_v44 = vcvt.f32.s32 %v9170_v20  ;;  %v2101_v21 = vshll.u32 %v2100_v39, 16  ;;  %v2112_v20 = vcvt.f32.s32 %v9211_v29 }
 0x46a   : > { %2144 = vxpose.xlu0.b32.cont [3/16] (narrow) %v1972_v27, 8  ;;  %v2061_v27 = vcvt.f32.s32 %v10188_v5  ;;  %v2139_v5 = vcvt.f32.s32 %v2137_v17 }
 0x46c   : > { %v2140_v1 = vshll.u32 %v2139_v5, 16 }
 0x46e   : > { %2145 = vxpose.xlu0.b32.cont [4/16] (narrow) %v1985_v58, 8  ;;  %v2062_v58 = vshll.u32 %v2061_v27, 16 }
 0x470   : > { %v2063_v25 = vadd.s32 %v2062_v58, %v2060_v30 }
 0x472   : > { %2146 = vxpose.xlu0.b32.cont [5/16] (narrow) %v1998_v61, 8  ;;  %v2075_v61 = vshll.u32 %v2074_v57, 16 }
 0x474   : > { %v2076_v55 = vadd.s32 %v2075_v61, %v2073_v40  ;;  %v10193_v40 = vld [vmem:[#allocation131_spill] sm:$0xff] }
 0x476   : > { %2147 = vxpose.xlu0.b32.cont [6/16] (narrow) %v2011_v19, 8  ;;  %v2088_v19 = vshll.u32 %v2087_v14, 16 }
 0x478   : > { %v2089_v63 = vadd.s32 %v2088_v19, %v2086_v44 }
 0x47a   : > { %2148 = vxpose.xlu0.b32.cont [7/16] (narrow) %v2024_v35, 8  ;;  %v2099_v35 = vcvt.f32.s32 %v9191_v0  ;;  %v2115_v0 = vadd.s32 %v2114_v24, %v2112_v20 }
 0x47c   : > { %v2102_v46 = vadd.s32 %v2101_v21, %v2099_v35 }
 0x47e   : > { %2149 = vxpose.xlu0.b32.cont [8/16] (narrow) %v2037_v36, 8  ;;  %v2127_v36 = vshll.u32 %v2126_v16, 16 }
 0x480   : > { %v2128_v29 = vadd.s32 %v2127_v36, %v2125_v31 }
 0x482   : > { %2150 = vxpose.xlu0.b32.cont [9/16] (narrow) %v2050_v50, 8  ;;  %v2138_v50 = vcvt.f32.s32 %v9250_v45 }
 0x484   : > { %v2141_v30 = vadd.s32 %v2140_v1, %v2138_v50 }
 0x486   : > { %2151 = vxpose.xlu0.b32.cont [10/16] (narrow) %v2063_v25, 8  ;;  %v10192_v25 = vld [vmem:[#allocation128_spill] sm:$0xff] }
 0x48a   : > { %2152 = vxpose.xlu0.b32.cont [11/16] (narrow) %v2076_v55, 8 }
 0x48c   : > { %v9381_v12 = vpop.xlane.xlu1 %3436 }
 0x48d   : > { %6249 = vrcp.f32 %v9381_v12 }
 0x48e   : > { %2153 = vxpose.xlu0.b32.cont [12/16] (narrow) %v2089_v63, 8  ;;  %v9385_v56 = vpop.xlane.xlu0 %3433 }
 0x48f   : > { %6251 = vrcp.f32 %v9385_v56 }
 0x490   : > { %v9388_v3 = vpop.xlane.xlu1 %3442 }
 0x491   : > { %6253 = vrcp.f32 %v9388_v3 }
 0x492   : > { %2154 = vxpose.xlu0.b32.cont [13/16] (narrow) %v2102_v46, 8  ;;  %v10194_v46 = vld [vmem:[#allocation134_spill] sm:$0xff] }
 0x493   : > { %v9392_v49 = vpop.xlane.xlu0 %3439 }
 0x494   : > { %6255 = vrcp.f32 %v9392_v49 }
 0x495   : > { %v9395_v27 = vpop.xlane.xlu1 %3448 }
 0x496   : > { %6257 = vrcp.f32 %v9395_v27  ;;  %2155 = vxpose.xlu0.b32.cont [14/16] (narrow) %v2115_v0, 8 }
 0x497   : > { %v9399_v34 = vpop.xlane.xlu0 %3445 }
 0x498   : > { %6259 = vrcp.f32 %v9399_v34 }
 0x499   : > { %v9402_v15 = vpop.xlane.xlu1 %3454 }
 0x49a   : > { %v6250_v58 = vpop.eup %6249  ;;  %2156 = vxpose.xlu0.b32.cont [15/16] (narrow) %v2128_v29, 8  ;;  %v10195_v29 = vld [vmem:[#allocation135_spill] sm:$0xff] }
 0x49b   : > { %v9405_v57 = vpop.xlane.xlu0 %3451  ;;  %v3497_v9 = vmul.f32 %v6250_v58, %v9078_v41 }
 0x49c   : > { %6261 = vrcp.f32 %v9405_v57  ;;  %v6252_v26 = vpop.eup %6251 }
 0x49d   : > { %v9409_v7 = vpop.xlane.xlu1 %3460  ;;  %v3545_v61 = vmul.f32 %v3497_v9, %v10192_v25  ;;  %v3496_v14 = vmul.f32 %v6252_v26, %v9091_v13  ;;  %6263 = vrcp.f32 %v9402_v15  ;;  %v3641_v13 = vsel %vm3335_vm3, %v3497_v9, 0.0 }
 0x49e   : > { %v6254_v52 = vpop.eup %6253  ;;  %2157 = vxpose.xlu0.b32.end [16/16] (narrow) %v2141_v30, 8 }
 0x49f   : > { %v3563_v45 = vsel %vm3335_vm3, %v3545_v61, 0.0  ;;  %v3544_v55 = vmul.f32 %v3496_v14, %v10193_v40  ;;  %v3640_v19 = vsel %vm3335_vm3, %v3496_v14, 0.0  ;;  %v9417_v41 = vpop.xlane.xlu0 %3457  ;;  %v3499_v44 = vmul.f32 %v6254_v52, %v9105_v18  ;;  %v10196_v61 = vld [vmem:[#allocation137_spill] sm:$0xff] }
 0x4a0   : > { %3564 = vadd.xlane.f32.xlu1 %v3563_v45  ;;  %v3642_v21 = vadd.f32 %v3641_v13, %v3640_v19  ;;  %6265 = vrcp.f32 %v9417_v41 }
 0x4a1   : > { %v6256_v39 = vpop.eup %6255  ;;  %v9419_v17 = vpop.xlane.xlu1 %3466  ;;  %v3560_v35 = vsel %vm3335_vm3, %v3544_v55, 0.0  ;;  %v3547_v24 = vmul.f32 %v3499_v44, %v10194_v46  ;;  %v3645_v18 = vsel %vm3335_vm3, %v3499_v44, 0.0  ;;  %6267 = vrcp.f32 %v9409_v7 }
 0x4a2   : > { %v3498_v63 = vmul.f32 %v6256_v39, %v9119_v43  ;;  %v10197_v39 = vld [vmem:[#allocation138_spill] sm:$0xff] }
 0x4a3   : > { %v6258_v54 = vpop.eup %6257  ;;  %v3569_v31 = vsel %vm3335_vm3, %v3547_v24, 0.0  ;;  %v9436_v9 = vpop.xlane.xlu0 %3463 }
 0x4a4   : > { %v3643_v16 = vsel %vm3335_vm3, %v3498_v63, 0.0  ;;  %3561 = vadd.xlane.f32.xlu1 %v3560_v35  ;;  %v3546_v1 = vmul.f32 %v3498_v63, %v10195_v29  ;;  %v3501_v58 = vmul.f32 %v6258_v54, %v9134_v60  ;;  %6269 = vrcp.f32 %v9436_v9 }
 0x4a5   : > { %v6260_v20 = vpop.eup %6259  ;;  %v9428_v0 = vpop.xlane.xlu1 %3472  ;;  %v3644_v36 = vadd.f32 %v3643_v16, %v3642_v21  ;;  %6271 = vrcp.f32 %v9419_v17 }
 0x4a6   : > { %v3500_v43 = vmul.f32 %v6260_v20, %v9149_v48  ;;  %v3566_v48 = vsel %vm3335_vm3, %v3546_v1, 0.0  ;;  %v3549_v14 = vmul.f32 %v3501_v58, %v10196_v61  ;;  %v3649_v60 = vsel %vm3335_vm3, %v3501_v58, 0.0 }
 0x4a7   : > { %v3646_v5 = vadd.f32 %v3645_v18, %v3644_v36  ;;  %v9451_v54 = vpop.xlane.xlu0 %3469 }
 0x4a8   : > { %3570 = vadd.xlane.f32.xlu1 %v3569_v31  ;;  %v3647_v30 = vsel %vm3335_vm3, %v3500_v43, 0.0  ;;  %v3575_v19 = vsel %vm3335_vm3, %v3549_v14, 0.0  ;;  %v3548_v44 = vmul.f32 %v3500_v43, %v10197_v39  ;;  %6273 = vrcp.f32 %v9451_v54 }
 0x4a9   : > { %v6262_v50 = vpop.eup %6261  ;;  %v9438_v26 = vpop.xlane.xlu1 %3478  ;;  %v3648_v25 = vadd.f32 %v3647_v30, %v3646_v5  ;;  %6275 = vrcp.f32 %v9428_v0 }
 0x4aa   : > { %v3502_v52 = vmul.f32 %v6262_v50, %v9176_v2  ;;  %v6264_v45 = vpop.eup %6263  ;;  %v3572_v16 = vsel %vm3335_vm3, %v3548_v44, 0.0  ;;  %6277 = vrcp.f32 %v9438_v26 }
 0x4ab   : > { %v3650_v55 = vadd.f32 %v3649_v60, %v3648_v25  ;;  %v3503_v13 = vmul.f32 %v6264_v45, %v9164_v33 }
 0x4ac   : > { %3567 = vadd.xlane.f32.xlu1 %v3566_v48  ;;  %v3651_v63 = vsel %vm3335_vm3, %v3502_v52, 0.0  ;;  %v3550_v1 = vmul.f32 %v3502_v52, %v9067_v32 }
 0x4ad   : > { %v3720_v40 = vpop.xlane.xlu1 %3719  ;;  %v6266_v21 = vpop.eup %6265  ;;  %v3652_v46 = vadd.f32 %v3651_v63, %v3650_v55  ;;  %v3551_v20 = vmul.f32 %v3503_v13, %v9056_v37  ;;  %v3653_v43 = vsel %vm3335_vm3, %v3503_v13, 0.0 }
 0x4ae   : > { %v6268_v24 = vpop.eup %6267  ;;  %v3504_v36 = vmul.f32 %v6266_v21, %v9196_v11  ;;  %v3578_v61 = vsel %vm3335_vm3, %v3550_v1, 0.0 }
 0x4af   : > { %v3505_v5 = vmul.f32 %v6268_v24, %v9185_v28  ;;  %v3654_v31 = vadd.f32 %v3653_v43, %v3652_v46  ;;  %v3581_v29 = vsel %vm3335_vm3, %v3551_v20, 0.0 }
 0x4b0   : > { %3576 = vadd.xlane.f32.xlu1 %v3575_v19  ;;  %v3655_v58 = vsel %vm3335_vm3, %v3504_v36, 0.0 }
 0x4b1   : > { %v3723_v2 = vpop.xlane.xlu1 %3722  ;;  %v6270_v50 = vpop.eup %6269  ;;  %v3553_v30 = vmul.f32 %v3505_v5, %v9076_v8  ;;  %v3656_v25 = vadd.f32 %v3655_v58, %v3654_v31  ;;  %v3657_v32 = vsel %vm3335_vm3, %v3505_v5, 0.0  ;;  %v3552_v8 = vmul.f32 %v3504_v36, %v9087_v62 }
 0x4b2   : > { %v3766_v35 = vadd.f32 %v3723_v2, %v3720_v40  ;;  %v6272_v48 = vpop.eup %6271  ;;  %v3506_v28 = vmul.f32 %v6270_v50, %v9216_v42 }
 0x4b3   : > { %v3587_v40 = vsel %vm3335_vm3, %v3553_v30, 0.0  ;;  %v3658_v60 = vadd.f32 %v3657_v32, %v3656_v25  ;;  %v3507_v55 = vmul.f32 %v6272_v48, %v9205_v6  ;;  %v3584_v63 = vsel %vm3335_vm3, %v3552_v8, 0.0  ;;  %v10199_v30 = vld [vmem:[#allocation34_spill] sm:$0xff] }
 0x4b4   : > { %3573 = vadd.xlane.f32.xlu1 %v3572_v16  ;;  %v3659_v42 = vsel %vm3335_vm3, %v3506_v28, 0.0  ;;  %v3554_v20 = vmul.f32 %v3506_v28, %v9115_v47 }
 0x4b5   : > { %v3726_v18 = vpop.xlane.xlu1 %3725  ;;  %v6274_v19 = vpop.eup %6273  ;;  %v3660_v13 = vadd.f32 %v3659_v42, %v3658_v60  ;;  %v3555_v21 = vmul.f32 %v3507_v55, %v9101_v22  ;;  %v3661_v62 = vsel %vm3335_vm3, %v3507_v55, 0.0 }
 0x4b6   : > { %v3767_v33 = vadd.f32 %v3766_v35, %v3726_v18  ;;  %v3508_v2 = vmul.f32 %v6274_v19, %v9237_v59  ;;  %v6276_v35 = vpop.eup %6275  ;;  %v3590_v5 = vsel %vm3335_vm3, %v3554_v20, 0.0 }
 0x4b7   : > { %v3662_v6 = vadd.f32 %v3661_v62, %v3660_v13  ;;  %v3593_v16 = vsel %vm3335_vm3, %v3555_v21, 0.0  ;;  %v3509_v36 = vmul.f32 %v6276_v35, %v9225_v38  ;;  %v6278_v43 = vpop.eup %6277  ;;  %v10201_v13 = vld [vmem:[#allocation58_spill] sm:$0xff] }
 0x4b8   : > { %3582 = vadd.xlane.f32.xlu1 %v3581_v29  ;;  %v3663_v18 = vsel %vm3335_vm3, %v3508_v2, 0.0  ;;  %v3511_v38 = vmul.f32 %v6278_v43, %v9245_v53  ;;  %v3556_v28 = vmul.f32 %v3508_v2, %v9145_v23  ;;  %v10203_v43 = vld [vmem:[#allocation45_spill] sm:$0xff] }
 0x4b9   : > { %v3729_v37 = vpop.xlane.xlu1 %3728  ;;  %v3664_v59 = vadd.f32 %v3663_v18, %v3662_v6  ;;  %v3557_v31 = vmul.f32 %v3509_v36, %v9130_v10  ;;  %v3665_v50 = vsel %vm3335_vm3, %v3509_v36, 0.0 }
 0x4ba   : > { %v3768_v11 = vadd.f32 %v3767_v33, %v3729_v37  ;;  %v3669_v53 = vsel %vm3335_vm3, %v3511_v38, 0.0  ;;  %v3596_v60 = vsel %vm3335_vm3, %v3556_v28, 0.0 }
 0x4bb   : > { %v3666_v37 = vadd.f32 %v3665_v50, %v3664_v59  ;;  %v3599_v48 = vsel %vm3335_vm3, %v3557_v31, 0.0  ;;  %v3717_v59 = vmul.f32 %v10203_v43, %v10203_v43 }
 0x4bc   : > { %3579 = vadd.xlane.f32.xlu1 %v3578_v61 }
 0x4bd   : > { %v3732_v14 = vpop.xlane.xlu1 %3731 }
 0x4be   : > { %v3769_v45 = vadd.f32 %v3768_v11, %v3732_v14  ;;  %v9468_v52 = vpop.xlane.xlu0 %3475  ;;  %v10198_v11 = vld [vmem:[#allocation57_spill] sm:$0xff] }
 0x4bf   : > { %6279 = vrcp.f32 %v9468_v52  ;;  %v3637_v25 = vsub.f32 %v10199_v30, %v10198_v11 }
 0x4c0   : > { %3588 = vadd.xlane.f32.xlu1 %v3587_v40 }
 0x4c1   : > { %v3735_v39 = vpop.xlane.xlu1 %3734  ;;  %v3715_v8 = vmul.f32 %v3637_v25, %v3637_v25 }
 0x4c2   : > { %v3770_v44 = vadd.f32 %v3769_v45, %v3735_v39  ;;  %v10200_v39 = vld [vmem:[#allocation140_spill] sm:$0xff] }
 0x4c3   : > { %v3757_v23 = vsel %vm1752_vm0, %v3715_v8, 0.0 }
 0x4c4   : > { %3585 = vadd.xlane.f32.xlu1 %v3584_v63  ;;  %v10202_v63 = vld [vmem:[#allocation35_spill] sm:$0xff] }
 0x4c5   : > { %v3738_v46 = vpop.xlane.xlu1 %3737  ;;  %v3638_v21 = vsub.f32 %v10202_v63, %v10201_v13 }
 0x4c6   : > { %v3771_v24 = vadd.f32 %v3770_v44, %v3738_v46  ;;  %v3559_v44 = vmul.f32 %v3511_v38, %v10200_v39 }
 0x4c7   : > { %v3716_v6 = vmul.f32 %v3638_v21, %v3638_v21 }
 0x4c8   : > { %3594 = vadd.xlane.f32.xlu1 %v3593_v16  ;;  %v3605_v62 = vsel %vm3335_vm3, %v3559_v44, 0.0 }
 0x4c9   : > { %v3741_v33 = vpop.xlane.xlu1 %3740 }
 0x4ca   : > { %v3772_v22 = vadd.f32 %v3771_v24, %v3741_v33 }
 0x4cc   : > { %v6280_v29 = vpop.eup %6279  ;;  %3591 = vadd.xlane.f32.xlu1 %v3590_v5  ;;  %v3763_v5 = vsel %vm1752_vm0, %v3717_v59, 0.0 }
 0x4cd   : > { %v3744_v1 = vpop.xlane.xlu1 %3743  ;;  %v3510_v47 = vmul.f32 %v6280_v29, %v9316_v4 }
 0x4ce   : > { %v3773_v58 = vadd.f32 %v3772_v22, %v3744_v1  ;;  %v3760_v22 = vsel %vm1752_vm0, %v3716_v6, 0.0 }
 0x4cf   : > { %v3558_v61 = vmul.f32 %v3510_v47, %v9266_v51  ;;  %v3667_v10 = vsel %vm3335_vm3, %v3510_v47, 0.0 }
 0x4d0   : > { %3600 = vadd.xlane.f32.xlu1 %v3599_v48  ;;  %v3668_v45 = vadd.f32 %v3667_v10, %v3666_v37 }
 0x4d1   : > { %v3747_v14 = vpop.xlane.xlu1 %3746  ;;  %v3602_v4 = vsel %vm3335_vm3, %v3558_v61, 0.0 }
 0x4d2   : > { %v3774_v32 = vadd.f32 %v3773_v58, %v3747_v14  ;;  %3603 = vadd.xlane.f32.xlu0 %v3602_v4  ;;  %v3670_v40 = vadd.f32 %v3669_v53, %v3668_v45 }
 0x4d4   : > { %3597 = vadd.xlane.f32.xlu1 %v3596_v60  ;;  %v3671_v51 = vrot.slane %v3670_v40, 4 }
 0x4d5   : > { %v3750_v55 = vpop.xlane.xlu1 %3749 }
 0x4d6   : > { %v3775_v42 = vadd.f32 %v3774_v32, %v3750_v55  ;;  %v3672_v19 = vadd.f32 %v3671_v51, %v3670_v40 }
 0x4d8   : > { %3758 = vadd.xlane.f32.xlu1 %v3757_v23  ;;  %v3673_v35 = vrot.slane %v3672_v19, 2 }
 0x4d9   : > { %v3753_v2 = vpop.xlane.xlu1 %3752 }
 0x4da   : > { %v3776_v46 = vadd.f32 %v3775_v42, %v3753_v2  ;;  %v3674_v24 = vadd.f32 %v3673_v35, %v3672_v19 }
 0x4dc   : > { %3606 = vadd.xlane.f32.xlu1 %v3605_v62  ;;  %v3675_v20 = vrot.slane %v3674_v24, 1 }
 0x4dd   : > { %v3756_v16 = vpop.xlane.xlu1 %3755 }
 0x4de   : > { %v9502_v36 = vadd.f32 %v3776_v46, %v3756_v16  ;;  %v2158_v18 = vpop.trf.xlu0  ;;  %v3676_v33 = vadd.f32 %v3675_v20, %v3674_v24 }
 0x4df   : > { %2174 = vst [vmem:[%s10204_s23] sm:$0x1] %v2158_v18  ;;  %s6354_s23 = scalar_lea.vmem %s6353_s25, 32 }
 0x4e0   : > { %3761 = vadd.xlane.f32.xlu1 %v3760_v22  ;;  %3678 = vst.msk [vmem:[%s10205_s24] sm:$0x1] %vm3677_vm4, %v3676_v33  ;;  %p6356_p6 = scmp.lt.s32.totalorder %s6354_s23, %s6348_s20 }
 0x4e2   : > { %p6357_p7 = por %p6356_p6, %p6355_p5 }
 0x4e4   : > { %3764 = vadd.xlane.f32.xlu1 %v3763_v5  ;;  %p6358_p8 = pnand %p6357_p7, %p6351_p4 }
 0x4e6   : > { %6361 = shalt.err (!%p6358_p8)
}
 0x4e7   : > { %s6362_s24 = scalar_lea.hbm %s9517_s0, 16  ;;  %s6366_s12 = scalar_lea.hbm %s9651_s9, 32 }
 0x4e8   : > { %p6363_p9 = scmp.ne.s32.totalorder %s9517_s0, %s6362_s24  ;;  %p6367_p0 = scmp.lt.s32.totalorder %s9517_s0, %s9651_s9 }
 0x4e9   : > { %p6368_p1 = scmp.lt.s32.totalorder %s6366_s12, %s6362_s24 }
 0x4ea   : > { %p6364_p12 = pnand %p6363_p9, %p6604_p10 }
 0x4eb   : > { %p6369_p2 = por %p6368_p1, %p6367_p0 }
 0x4ec   : > { %p6365_p13 = pneg %p6364_p12 }
 0x4ee   : > { %p6370_p3 = pnand %p6369_p2, %p6365_p13 }
 0x4f0   : > { %6373 = shalt.err (!%p6370_p3)
}
 0x4f1   : > { %6114 = dma.vmem_to_hbm [thread:$0]  (%p6604_p10), %s5133_s28, 16, %s9517_s0, %s9526_s14  }
 0x4f2   : > { %s5326_s13 = sshll.u32 %s6585_s29, 12  ;;  %s5116_s18 = sshll.u32 %s6631_s16, 4  ;;  %s9552_s18 = int_to_ptr.vmem [resolvable:$true] %s5116_s18 }
 0x4f3   : > { %s9550_s25 = scalar_lea.hbm %s9650_s8, %s5326_s13  ;;  %s5088_s23 = scalar_lea.sflag [#allocation7], %s6615_s19 }
 0x4f4   : > { %s6374_s24 = scalar_lea.vmem %s9552_s18, 4096  ;;  %s6492_s30 = smov [#allocation6]  }
 0x4f5   : > { %p6375_p4 = scmp.ne.s32.totalorder %s9552_s18, %s6374_s24  ;;  %s6378_s0 = sshll.u32 %s6492_s30, 4  ;;  %s6379_s0 = int_to_ptr.vmem [resolvable:$false] %s6378_s0 }
 0x4f6   : > { %s6380_s29 = scalar_lea.vmem %s6379_s0, 8192  ;;  %p6381_p7 = scmp.lt.s32.totalorder %s9552_s18, %s6379_s0 }
 0x4f7   : > { %p6376_p5 = pnand %p6375_p4, %p6604_p10  ;;  %p6382_p8 = scmp.lt.s32.totalorder %s6380_s29, %s6374_s24 }
 0x4f9   : > { %p6377_p6 = pneg %p6376_p5  ;;  %p6383_p9 = por %p6382_p8, %p6381_p7 }
 0x4fb   : > { %p6384_p12 = pnand %p6383_p9, %p6377_p6 }
 0x4fd   : > { %6387 = shalt.err (!%p6384_p12)
}
 0x4fe   : > { %s6388_s16 = scalar_lea.hbm %s9550_s25, 4096  ;;  %s6392_s12 = scalar_lea.hbm %s9650_s8, 8192 }
 0x4ff   : > { %p6389_p13 = scmp.ne.s32.totalorder %s9550_s25, %s6388_s16  ;;  %p6393_p2 = scmp.lt.s32.totalorder %s9550_s25, %s9650_s8 }
 0x500   : > { %p6394_p3 = scmp.lt.s32.totalorder %s6392_s12, %s6388_s16 }
 0x501   : > { %p6390_p0 = pnand %p6389_p13, %p6604_p10 }
 0x502   : > { %p6395_p4 = por %p6394_p3, %p6393_p2 }
 0x503   : > { %p6391_p1 = pneg %p6390_p0 }
 0x505   : > { %p6396_p5 = pnand %p6395_p4, %p6391_p1 }
 0x507   : > { %6399 = shalt.err (!%p6396_p5)
}
 0x508   : > { %s6493_s13 = smov 256   ;;  %s6494_s20 = smov 16  }
 0x509   : > { %6113 = dma.vmem_to_hbm [thread:$0]  (%p6604_p10), %s9552_s18, 4096, %s9550_s25, %s5088_s23, %s6493_s13, %s6493_s13, %s6494_s20  }
 0x50a   : > { %s10207_s15 = scalar_lea.vmem [#allocation10], %s6615_s19  ;;  %s6495_s0 = smov [#allocation10]  }
 0x50b   : > { %s5145_s24 = sshll.u32 %s10207_s15, 4  ;;  %s6404_s29 = sshll.u32 %s6495_s0, 4  ;;  %s5146_s24 = int_to_ptr.vmem [resolvable:$true] %s5145_s24  ;;  %s6405_s29 = int_to_ptr.vmem [resolvable:$false] %s6404_s29 }
 0x50c   : > { %s6400_s30 = scalar_lea.vmem %s5146_s24, 16  ;;  %s6406_s16 = scalar_lea.vmem %s6405_s29, 32 }
 0x50d   : > { %p6401_p6 = scmp.ne.s32.totalorder %s5146_s24, %s6400_s30  ;;  %p6407_p9 = scmp.lt.s32.totalorder %s5146_s24, %s6405_s29 }
 0x50e   : > { %p6408_p12 = scmp.lt.s32.totalorder %s6406_s16, %s6400_s30 }
 0x50f   : > { %p6402_p7 = pnand %p6401_p6, %p6604_p10 }
 0x510   : > { %p6409_p13 = por %p6408_p12, %p6407_p9 }
 0x511   : > { %p6403_p8 = pneg %p6402_p7 }
 0x513   : > { %p6410_p0 = pnand %p6409_p13, %p6403_p8 }
 0x515   : > { %6413 = shalt.err (!%p6410_p0)
}
 0x516   : > { %s6414_s19 = scalar_lea.hbm %s9524_s22, 16  ;;  %s6418_s23 = scalar_lea.hbm %s9652_s10, 32 }
 0x517   : > { %p6415_p1 = scmp.ne.s32.totalorder %s9524_s22, %s6414_s19  ;;  %p6419_p4 = scmp.lt.s32.totalorder %s9524_s22, %s9652_s10 }
 0x518   : > { %p6420_p5 = scmp.lt.s32.totalorder %s6418_s23, %s6414_s19 }
 0x519   : > { %p6416_p2 = pnand %p6415_p1, %p6604_p10 }
 0x51a   : > { %p6421_p6 = por %p6420_p5, %p6419_p4 }
 0x51b   : > { %p6417_p3 = pneg %p6416_p2 }
 0x51d   : > { %p6422_p7 = pnand %p6421_p6, %p6417_p3 }
 0x51f   : > { %6425 = shalt.err (!%p6422_p7)
}
 0x520   : > { %6115 = dma.vmem_to_hbm [thread:$0]  (%p6604_p10), %s5146_s24, 16, %s9524_s22, %s9526_s14   ;;  %6281 = vlog2.f32 %v9381_v12  ;;  %vm3700_vm0 = vcmask 0  }
 0x521   : > { %6283 = vlog2.f32 %v9385_v56  ;;  %s10208_s14 = sld [smem:[#allocation141_spill]] }
 0x522   : > { %6285 = vlog2.f32 %v9392_v49  ;;  %s10210_s13 = sld [smem:[#allocation142_spill]] }
 0x523   : > { %6287 = vlog2.f32 %v9388_v3 }
 0x524   : > { %6289 = vlog2.f32 %v9399_v34 }
 0x525   : > { %6291 = vlog2.f32 %v9395_v27 }
 0x526   : > { %6293 = vlog2.f32 %v9405_v57 }
 0x527   : > { %6295 = vlog2.f32 %v9402_v15  ;;  %s10209_s12 = scalar_lea.vmem %s10208_s14, %s6620_s21 }
 0x528   : > { %6297 = vlog2.f32 %v9417_v41  ;;  %s10211_s20 = scalar_lea.vmem %s10210_s13, %s6620_s21 }
 0x529   : > { %v3565_v1 = vpop.xlane.xlu1 %3564  ;;  %6299 = vlog2.f32 %v9409_v7 }
 0x52a   : > { %6301 = vlog2.f32 %v9436_v9 }
 0x52b   : > { %6303 = vlog2.f32 %v9419_v17 }
 0x52c   : > { %6305 = vlog2.f32 %v9451_v54 }
 0x52d   : > { %v6282_v31 = vpop.eup %6281  ;;  %v3562_v47 = vpop.xlane.xlu1 %3561  ;;  %6307 = vlog2.f32 %v9428_v0 }
 0x52e   : > { %v6284_v29 = vpop.eup %6283  ;;  %v3515_v58 = vmul.f32 0.6931472, %v6282_v31  ;;  %6309 = vlog2.f32 %v9468_v52 }
 0x52f   : > { %v3513_v50 = vmul.f32 0.6931472, %v6284_v29  ;;  %v6286_v12 = vpop.eup %6285  ;;  %6311 = vlog2.f32 %v9438_v26 }
 0x530   : > { %v3609_v38 = vsub.f32 %v3515_v58, %v3565_v1  ;;  %v6288_v56 = vpop.eup %6287  ;;  %v3517_v49 = vmul.f32 0.6931472, %v6286_v12 }
 0x531   : > { %v3608_v37 = vsub.f32 %v3513_v50, %v3562_v47  ;;  %v3571_v30 = vpop.xlane.xlu1 %3570  ;;  %v3519_v25 = vmul.f32 0.6931472, %v6288_v56  ;;  %v6290_v10 = vpop.eup %6289 }
 0x532   : > { %v6292_v27 = vpop.eup %6291  ;;  %v3521_v45 = vmul.f32 0.6931472, %v6290_v10 }
 0x533   : > { %v3679_v11 = vadd.f32 %v3609_v38, %v3608_v37  ;;  %v3611_v34 = vsub.f32 %v3519_v25, %v3571_v30  ;;  %v3523_v4 = vmul.f32 0.6931472, %v6292_v27  ;;  %v6294_v60 = vpop.eup %6293 }
 0x534   : > { %v6296_v55 = vpop.eup %6295  ;;  %v3525_v51 = vmul.f32 0.6931472, %v6294_v60 }
 0x535   : > { %v3568_v3 = vpop.xlane.xlu1 %3567  ;;  %v3527_v19 = vmul.f32 0.6931472, %v6296_v55  ;;  %v6298_v44 = vpop.eup %6297 }
 0x536   : > { %v3610_v48 = vsub.f32 %v3517_v49, %v3568_v3  ;;  %v6300_v63 = vpop.eup %6299  ;;  %v3529_v21 = vmul.f32 0.6931472, %v6298_v44 }
 0x537   : > { %v3531_v35 = vmul.f32 0.6931472, %v6300_v63  ;;  %v6302_v24 = vpop.eup %6301 }
 0x538   : > { %v3680_v61 = vadd.f32 %v3679_v11, %v3610_v48  ;;  %v6304_v16 = vpop.eup %6303  ;;  %v3533_v20 = vmul.f32 0.6931472, %v6302_v24 }
 0x539   : > { %v3577_v28 = vpop.xlane.xlu1 %3576  ;;  %v3535_v33 = vmul.f32 0.6931472, %v6304_v16  ;;  %v6306_v59 = vpop.eup %6305 }
 0x53a   : > { %v3681_v14 = vadd.f32 %v3680_v61, %v3611_v34  ;;  %v3613_v53 = vsub.f32 %v3523_v4, %v3577_v28  ;;  %v6308_v31 = vpop.eup %6307  ;;  %v3537_v29 = vmul.f32 0.6931472, %v6306_v59 }
 0x53b   : > { %v6310_v52 = vpop.eup %6309  ;;  %v3539_v58 = vmul.f32 0.6931472, %v6308_v31 }
 0x53c   : > { %v3541_v37 = vmul.f32 0.6931472, %v6310_v52  ;;  %v6312_v26 = vpop.eup %6311 }
 0x53d   : > { %v3574_v32 = vpop.xlane.xlu1 %3573  ;;  %v3543_v49 = vmul.f32 0.6931472, %v6312_v26 }
 0x53e   : > { %v3612_v57 = vsub.f32 %v3521_v45, %v3574_v32 }
 0x540   : > { %v3682_v40 = vadd.f32 %v3681_v14, %v3612_v57 }
 0x541   : > { %v3583_v15 = vpop.xlane.xlu1 %3582 }
 0x542   : > { %v3683_v8 = vadd.f32 %v3682_v40, %v3613_v53  ;;  %v3615_v23 = vsub.f32 %v3527_v19, %v3583_v15 }
 0x545   : > { %v3580_v42 = vpop.xlane.xlu1 %3579 }
 0x546   : > { %v3614_v41 = vsub.f32 %v3525_v51, %v3580_v42 }
 0x548   : > { %v3684_v39 = vadd.f32 %v3683_v8, %v3614_v41 }
 0x549   : > { %v3589_v7 = vpop.xlane.xlu1 %3588 }
 0x54a   : > { %v3685_v13 = vadd.f32 %v3684_v39, %v3615_v23  ;;  %v3617_v46 = vsub.f32 %v3531_v35, %v3589_v7 }
 0x54d   : > { %v3586_v2 = vpop.xlane.xlu1 %3585 }
 0x54e   : > { %v3616_v9 = vsub.f32 %v3529_v21, %v3586_v2 }
 0x550   : > { %v3686_v17 = vadd.f32 %v3685_v13, %v3616_v9 }
 0x551   : > { %v3595_v62 = vpop.xlane.xlu1 %3594 }
 0x552   : > { %v3687_v6 = vadd.f32 %v3686_v17, %v3617_v46  ;;  %v3619_v22 = vsub.f32 %v3535_v33, %v3595_v62 }
 0x555   : > { %v3592_v18 = vpop.xlane.xlu1 %3591 }
 0x556   : > { %v3618_v54 = vsub.f32 %v3533_v20, %v3592_v18 }
 0x558   : > { %v3688_v43 = vadd.f32 %v3687_v6, %v3618_v54 }
 0x559   : > { %v3601_v0 = vpop.xlane.xlu1 %3600 }
 0x55a   : > { %v3689_v5 = vadd.f32 %v3688_v43, %v3619_v22  ;;  %v3621_v38 = vsub.f32 %v3539_v58, %v3601_v0 }
 0x55b   : > { %v3604_v47 = vpop.xlane.xlu0 %3603 }
 0x55c   : > { %v3622_v30 = vsub.f32 %v3541_v37, %v3604_v47 }
 0x55d   : > { %v3598_v1 = vpop.xlane.xlu1 %3597 }
 0x55e   : > { %v3620_v50 = vsub.f32 %v3537_v29, %v3598_v1 }
 0x560   : > { %v3690_v11 = vadd.f32 %v3689_v5, %v3620_v50 }
 0x561   : > { %v3759_v12 = vpop.xlane.xlu1 %3758 }
 0x562   : > { %v3691_v56 = vadd.f32 %v3690_v11, %v3621_v38  ;;  %v3778_v10 = vadd.f32 %v9502_v36, %v3759_v12 }
 0x564   : > { %v3692_v3 = vadd.f32 %v3691_v56, %v3622_v30 }
 0x565   : > { %v3607_v25 = vpop.xlane.xlu1 %3606 }
 0x566   : > { %v3623_v48 = vsub.f32 %v3543_v49, %v3607_v25 }
 0x568   : > { %v3693_v34 = vadd.f32 %v3692_v3, %v3623_v48 }
 0x569   : > { %v3762_v61 = vpop.xlane.xlu1 %3761 }
 0x56a   : > { %v3694_v28 = vrot.slane %v3693_v34, 4  ;;  %v3779_v27 = vadd.f32 %v3778_v10, %v3762_v61 }
 0x56c   : > { %v3695_v14 = vadd.f32 %v3694_v28, %v3693_v34 }
 0x56d   : > { %v3765_v45 = vpop.xlane.xlu1 %3764 }
 0x56e   : > { %v3696_v32 = vrot.slane %v3695_v14, 2  ;;  %v3780_v4 = vadd.f32 %v3779_v27, %v3765_v45 }
 0x570   : > { %v3697_v57 = vadd.f32 %v3696_v32, %v3695_v14  ;;  %v3781_v53 = vrot.slane %v3780_v4, 4 }
 0x572   : > { %v3698_v40 = vrot.slane %v3697_v57, 1  ;;  %v3782_v60 = vadd.f32 %v3781_v53, %v3780_v4 }
 0x574   : > { %v3699_v15 = vadd.f32 %v3698_v40, %v3697_v57  ;;  %v3783_v8 = vrot.slane %v3782_v60, 2 }
 0x576   : > { %3701 = vst.msk [vmem:[%s10209_s12] sm:$0x1] %vm3700_vm0, %v3699_v15  ;;  %v3784_v36 = vadd.f32 %v3783_v8, %v3782_v60 }
 0x578   : > { %v3785_v55 = vrot.slane %v3784_v36, 1 }
 0x57a   : > { %v3786_v51 = vadd.f32 %v3785_v55, %v3784_v36 }
 0x57c   : > { %3787 = vst.msk [vmem:[%s10211_s20] sm:$0x1] %vm3700_vm0, %v3786_v51 }
 0x57d PF: > { %s10212_s15 = sld [smem:[#allocation22_spill]] }
 0x57e   : > { %s10213_s24 = sld [smem:[#allocation19_spill]] }
 0x583   : > { %p6129_p10 = scmp.ge.s32.totalorder %s10212_s15, 2 }
 0x584   : > { %s5163_s0 = sand.u32 1, %s10213_s24  }
 0x585   : > { %p6120_p8 = pnand %p6129_p10, %p6608_p11  ;;  %s5164_s29 = scalar_lea.sflag [#allocation7], %s5163_s0 }
 0x587   : > { %p6121_p9 = pneg %p6120_p8 }
 0x589   : > { %6455 = dma.done.wait (%p6121_p9), %s5164_s29, 4096  }
 0x58a   : > { %6457 = vsyncadd (%p6121_p9), %s5164_s29, 4294963200  ;;  %s10215_s16 = sadd.s32 4294967294, %s10212_s15  }
 0x58b   : > { %s5172_s19 = sand.u32 1, %s10215_s16  }
 0x58c   : > { %s5173_s18 = scalar_lea.sflag [#allocation9], %s5172_s19 }
 0x58d   : > { %6459 = dma.done.wait (%p6121_p9), %s5173_s18, 32  }
 0x58e   : > { %6461 = vsyncadd (%p6121_p9), %s5173_s18, 4294967264  ;;  %s10216_s28 = sld [smem:[#allocation23_spill]] }
 0x58f   : > { %s10217_s26 = sld [smem:[#allocation20_spill]] }
 0x590   : > { %s10218_s0 = sld [smem:[#allocation21_spill]] }
 0x591   : > { %s10219_s27 = sld [smem:[#allocation24_spill]] }
 0x594   : > { %p32_p12 = scmp.ge.s32.totalorder %s10216_s28, 4  }
 0x596   :  { %34 = sbr.rel (!%p32_p12) target bundleno = 21 (0x15), region = 174 }
 0x59b   :  { %5197 = vsyncpa [#allocation7], 1 }
 0x59c   :  { %5199 = vsyncpa [#allocation7 + $0x1], 1 }
 0x59d   :  { %5200 = vsyncpa [#allocation9], 1 }
 0x59e   :  { %5202 = vsyncpa [#allocation9 + $0x1], 1 }
 0x59f   :  { %5203 = vsyncmov [#allocation3] }
 0x5a2   :  { %s5204_s21 = vpop.sfrf %5203 }
 0x5a3   :  { %p5324_p11 = scmp.ne.s32.totalorder %s5204_s21, 0 }
 0x5a5   :  { %5208 = shalt.err (%p5324_p11)  }

</bundles_post_ra>
